<compile_context>
chip_gen: v6e
topology: v6e:2x2x1
jax: 0.10.0
libtpu: 0.0.40
codegen_flags: <defaults>
</compile_context>

<pallas_src>
import functools

import numpy as np
import jax
import jax.numpy as jnp
from jax.experimental import pallas as pl
from jax.experimental.pallas import tpu as pltpu


def mahalanobis_kernel(x_ref, w1_ref, rhs_ref, t4_ref, out_ref, pen_ref,
                       *, num_classes, feat_dim):
    k = pl.program_id(1)

    @pl.when(k == 0)
    def _init():
        pen_ref[...] = jnp.zeros_like(pen_ref)

    # Synthetic "model.penultimate" backbone, K-tiled over F: bf16 MXU inputs
    # (x tile cast on the VPU here; W1 pre-cast once outside jit), f32 accumulation.
    pen_ref[...] += jnp.dot(x_ref[...].astype(jnp.bfloat16), w1_ref[...],
                            preferred_element_type=jnp.float32)            # [TB, D]

    @pl.when(k == pl.num_programs(1) - 1)
    def _head():
        pen = pen_ref[...]                                                  # [TB, D]
        d = feat_dim
        tb, cp = out_ref.shape

        # Single fused head matmul.  RHS = [prec | 2*P@means^T | W2], so the slices
        # below are all 128-aligned (d and cp are multiples of 128):
        r = jnp.dot(pen, rhs_ref[...], preferred_element_type=jnp.float32)  # [TB, D+2*Cp]
        y = r[:, d + cp:]                                                    # logits [TB, Cp]

        col = jax.lax.broadcasted_iota(jnp.int32, (tb, cp), 1)
        valid = col < num_classes                     # ignore lane-padding columns

        # idx = y.max(1)[1] (first occurrence) — done first to shorten live ranges.
        y_m = jnp.where(valid, y, -jnp.inf)
        ymax = jnp.max(y_m, axis=1, keepdims=True)
        first_argmax = jnp.min(jnp.where(y_m == ymax, col, cp), axis=1, keepdims=True)

        # Mahalanobis head (P symmetric; factor 2 and m^T P m hoisted to the wrapper):
        #   dist = pen P pen^T - 2 pen P m^T + m P m^T
        t1 = jnp.sum(pen * r[:, :d], axis=-1, keepdims=True)                # [TB, 1]
        dist_all = t1 - r[:, d:d + cp] + t4_ref[...]                        # [TB, Cp]
        dist = jnp.min(jnp.where(valid, dist_all, jnp.inf), axis=1, keepdims=True)

        # Scatter -dist at argmax, -inf elsewhere.
        out_ref[...] = jnp.where(col == first_argmax, -dist,
                                 -jnp.inf).astype(out_ref.dtype)


def prepare_head(w2, means, prec, *, lane=128):
    """One-time (outside jit): class-constant head terms, fused + lane-padded.

    Returns rhs = [prec | 2*P@means^T | W2]  [D, D + 2*Cp]  (f32, head stays f32)
            t4  = diag(means P means^T)      [1, Cp]
    """
    d = prec.shape[0]
    c = w2.shape[1]
    c_pad = ((c + lane - 1) // lane) * lane
    am = means.astype(jnp.float32) @ prec.astype(jnp.float32)   # [C, D] = (P m_c)^T rows
    t4 = jnp.sum(means * am, axis=-1)                           # [C]
    pm2 = 2.0 * am.T                                            # [D, C] = 2 * P @ means^T
    rhs = jnp.zeros((d, d + 2 * c_pad), jnp.float32)
    rhs = rhs.at[:, :d].set(prec.astype(jnp.float32))
    rhs = rhs.at[:, d:d + c].set(pm2)
    rhs = rhs.at[:, d + c_pad:d + c_pad + c].set(w2.astype(jnp.float32))
    t4_p = jnp.zeros((1, c_pad), jnp.float32).at[0, :c].set(t4)
    return rhs, t4_p, c_pad


@functools.partial(jax.jit, static_argnames=("num_classes", "tb", "tk"))
def mahalanobis_forward(x, w1, rhs, t4, *, num_classes, tb=256, tk=256):
    b = x.shape[0]
    f, d = w1.shape
    c_pad = t4.shape[1]

    # NCHW -> [B, F] row-major (torch .view(B, -1)); no dtype cast here (x is cast
    # to bf16 on the VPU inside the kernel, W1 is pre-cast bf16 outside jit).
    x_flat = x.reshape(b, f)

    tb = min(tb, b)
    tk = min(tk, f)
    assert b % tb == 0 and f % tk == 0, (b, tb, f, tk)

    # Derived VMEM footprint (double-buffered pipeline inputs/outputs + scratch)
    # plus headroom for compiler-internal scratch — replaces the blanket 32 MiB.
    footprint = (
        2 * tb * tk * x_flat.dtype.itemsize        # x tile
        + 2 * tk * d * w1.dtype.itemsize           # W1 slab (bf16)
        + 2 * d * (d + 2 * c_pad) * 4              # fused head RHS (grid-invariant)
        + 2 * 8 * c_pad * 4                        # t4 (sublane-padded)
        + 2 * tb * c_pad * 4                       # output tile
        + tb * d * 4                               # pen accumulator scratch
    )
    vmem_limit = int(2 * footprint) + (8 << 20)

    out = pl.pallas_call(
        functools.partial(mahalanobis_kernel, num_classes=num_classes, feat_dim=d),
        out_shape=jax.ShapeDtypeStruct((b, c_pad), jnp.float32),
        grid_spec=pltpu.PrefetchScalarGridSpec(
            num_scalar_prefetch=0,
            grid=(b // tb, f // tk),                          # (batch, K-reduction)
            in_specs=[
                pl.BlockSpec((tb, tk), lambda i, k: (i, k)),         # x slab
                pl.BlockSpec((tk, d), lambda i, k: (k, 0)),          # W1 slab (bf16)
                pl.BlockSpec((d, d + 2 * c_pad), lambda i, k: (0, 0)),  # fused head RHS
                pl.BlockSpec((1, c_pad), lambda i, k: (0, 0)),       # diag(means P means^T)
            ],
            out_specs=pl.BlockSpec((tb, c_pad), lambda i, k: (i, 0)),
            scratch_shapes=[pltpu.VMEM((tb, d), jnp.float32)],       # pen accumulator
        ),
        compiler_params=pltpu.CompilerParams(
            dimension_semantics=("parallel", "arbitrary"),
            vmem_limit_bytes=vmem_limit,
        ),
    )(x_flat, w1, rhs, t4)
    return out[:, :num_classes]


@jax.jit
def reference_forward(x, w1_bf16, w2, means, prec):
    """Pure-JAX transcription of Mahalanobis.forward (same bf16 backbone inputs)."""
    b = x.shape[0]
    pen = jnp.dot(x.reshape(b, -1).astype(jnp.bfloat16), w1_bf16,
                  preferred_element_type=jnp.float32)
    y = jnp.dot(pen, w2, preferred_element_type=jnp.float32)
    diff = pen[:, None, :] - means[None, :, :]
    vec2 = (prec[None, None, :, :] * diff[:, :, None, :]).sum(-1)
    dist = (diff * vec2).sum(-1).min(axis=1)
    idx = jnp.argmax(y, axis=1)
    out = jnp.full_like(y, -jnp.inf)
    out = out.at[jnp.arange(b), idx].set(-dist)
    return out


if __name__ == "__main__":
    # NCHW input [512, 4, 16, 16] -> F=1024, D=128, C=16.
    # B=512 with TB=256 gives full MXU M-fill (v6e/v7x) AND an even 2-step
    # "parallel" batch axis, so both v7x TensorCores get full-M work.
    B, CH, H, W = 512, 4, 16, 16
    F = CH * H * W
    D, C = 128, 16

    key = jax.random.PRNGKey(0)
    kx, k1, k2, km, kp = jax.random.split(key, 5)

    x = jax.random.normal(kx, (B, CH, H, W), jnp.float32)
    w1_f32 = jax.random.normal(k1, (F, D), jnp.float32) / np.sqrt(F)
    w2 = jax.random.normal(k2, (D, C), jnp.float32) / np.sqrt(D)
    means = jax.random.normal(km, (C, D), jnp.float32)
    # Symmetric positive-definite "precision" (stand-in for sklearn EmpiricalCovariance
    # inverse, which is symmetric by construction — required for the 2*t2 expansion).
    a = jax.random.normal(kp, (D, D), jnp.float32) / np.sqrt(D)
    prec = a @ a.T * 0.25 + 0.5 * jnp.eye(D, dtype=jnp.float32)
    prec = 0.5 * (prec + prec.T)  # enforce exact symmetry

    # One-time, outside jit: bf16 backbone weight + fused class-constant head terms
    # (no per-call HBM convert passes inside the jitted forward).
    w1 = w1_f32.astype(jnp.bfloat16)
    rhs, t4, _ = prepare_head(w2, means, prec)

    out = jax.block_until_ready(
        mahalanobis_forward(x, w1, rhs, t4, num_classes=C, tb=256, tk=256))
    ref = jax.block_until_ready(reference_forward(x, w1, w2, means, prec))

    out_np = np.asarray(out)
    ref_np = np.asarray(ref)
    finite = np.isfinite(ref_np)
    assert out_np.shape == (B, C) and out_np.dtype == np.float32
    assert np.array_equal(finite, np.isfinite(out_np)), "argmax scatter pattern mismatch"
    assert np.all(out_np[~finite] == -np.inf)
    assert np.allclose(out_np[finite], ref_np[finite], rtol=1e-3, atol=1e-2), (
        out_np[finite], ref_np[finite])
    print("KERNEL_OK")
</pallas_src>

<mosaic_0001>
module attributes {stable_mosaic.version = 11 : i64} {
  func.func @mahalanobis_kernel(%arg0: i32, %arg1: i32, %arg2: memref<256x256xf32, #tpu.memory_space<vmem>>, %arg3: memref<256x128xbf16, #tpu.memory_space<vmem>>, %arg4: memref<128x384xf32, #tpu.memory_space<vmem>>, %arg5: memref<1x128xf32, #tpu.memory_space<vmem>>, %arg6: memref<256x128xf32, #tpu.memory_space<vmem>>, %arg7: memref<256x128xf32, #tpu.memory_space<vmem>>) attributes {dimension_semantics = [#tpu.dimension_semantics<parallel>, #tpu.dimension_semantics<arbitrary>], iteration_bounds = array<i64: 2, 4>, scalar_prefetch = 0 : i64, scratch_operands = 1 : i64, tpu.core_type = #tpu.core_type<tc>, window_params = [{transform_indices = @transform_0, window_bounds = array<i64: 256, 256>}, {transform_indices = @transform_1, window_bounds = array<i64: 256, 128>}, {pipeline_mode = #tpu.pipeline_mode<synchronous>, transform_indices = @transform_2, window_bounds = array<i64: 128, 384>}, {pipeline_mode = #tpu.pipeline_mode<synchronous>, transform_indices = @transform_3, window_bounds = array<i64: 1, 128>}, {transform_indices = @transform_4, window_bounds = array<i64: 256, 128>}]} {
    %c0_i32 = arith.constant 0 : i32
    %0 = arith.cmpi eq, %arg1, %c0_i32 : i32
    %1 = arith.extui %0 : i1 to i32
    %c0_i32_0 = arith.constant 0 : i32
    %2 = arith.cmpi ne, %1, %c0_i32_0 : i32
    scf.if %2 {
      %cst_9 = arith.constant 0.000000e+00 : f32
      %13 = vector.broadcast %cst_9 : f32 to vector<256x128xf32>
      %c0_10 = arith.constant 0 : index
      %c0_11 = arith.constant 0 : index
      %14 = vector.load %arg7[%c0_10, %c0_11] : memref<256x128xf32, #tpu.memory_space<vmem>>, vector<256x128xf32>
      tpu.vector_store %arg7[%c0_10, %c0_11], %13 {strides = array<i32>} : memref<256x128xf32, #tpu.memory_space<vmem>>, vector<256x128xf32>,
    } else {
    }
    %c0 = arith.constant 0 : index
    %c0_1 = arith.constant 0 : index
    %3 = vector.load %arg7[%c0, %c0_1] : memref<256x128xf32, #tpu.memory_space<vmem>>, vector<256x128xf32>
    %c0_2 = arith.constant 0 : index
    %c0_3 = arith.constant 0 : index
    %4 = vector.load %arg2[%c0_2, %c0_3] : memref<256x256xf32, #tpu.memory_space<vmem>>, vector<256x256xf32>
    %5 = arith.truncf %4 : vector<256x256xf32> to vector<256x256xbf16>
    %c0_4 = arith.constant 0 : index
    %c0_5 = arith.constant 0 : index
    %6 = vector.load %arg3[%c0_4, %c0_5] : memref<256x128xbf16, #tpu.memory_space<vmem>>, vector<256x128xbf16>
    %cst = arith.constant dense<0.000000e+00> : vector<256x128xf32>
    %7 = tpu.matmul %5, %6, %cst {dimension_numbers = #tpu.dot_dimension_numbers<[1], [0], [0], [1], [0, 0, 1, 1], [], []>} : vector<256x256xbf16>, vector<256x128xbf16>, vector<256x128xf32> -> vector<256x128xf32>
    %8 = arith.addf %3, %7 : vector<256x128xf32>
    %c0_6 = arith.constant 0 : index
    %c0_7 = arith.constant 0 : index
    %9 = vector.load %arg7[%c0_6, %c0_7] : memref<256x128xf32, #tpu.memory_space<vmem>>, vector<256x128xf32>
    tpu.vector_store %arg7[%c0_6, %c0_7], %8 {strides = array<i32>} : memref<256x128xf32, #tpu.memory_space<vmem>>, vector<256x128xf32>,
    %c3_i32 = arith.constant 3 : i32
    %10 = arith.cmpi eq, %arg1, %c3_i32 : i32
    %11 = arith.extui %10 : i1 to i32
    %c0_i32_8 = arith.constant 0 : i32
    %12 = arith.cmpi ne, %11, %c0_i32_8 : i32
    scf.if %12 {
      %c0_9 = arith.constant 0 : index
      %c0_10 = arith.constant 0 : index
      %13 = vector.load %arg7[%c0_9, %c0_10] : memref<256x128xf32, #tpu.memory_space<vmem>>, vector<256x128xf32>
      %c0_11 = arith.constant 0 : index
      %c0_12 = arith.constant 0 : index
      %14 = vector.load %arg4[%c0_11, %c0_12] : memref<128x384xf32, #tpu.memory_space<vmem>>, vector<128x384xf32>
      %cst_13 = arith.constant dense<0.000000e+00> : vector<256x384xf32>
      %15 = tpu.matmul %13, %14, %cst_13 {dimension_numbers = #tpu.dot_dimension_numbers<[1], [0], [0], [1], [0, 0, 1, 1], [], []>} : vector<256x128xf32>, vector<128x384xf32>, vector<256x384xf32> -> vector<256x384xf32>
      %16 = vector.extract_strided_slice %15 {offsets = [0, 256], sizes = [256, 128], strides = [1, 1]} : vector<256x384xf32> to vector<256x128xf32>
      %17 = tpu.iota {dimensions = array<i32: 1>} : vector<256x128xi32>
      %c16_i32 = arith.constant 16 : i32
      %18 = vector.broadcast %c16_i32 : i32 to vector<256x128xi32>
      %19 = arith.cmpi slt, %17, %18 : vector<256x128xi32>
      %cst_14 = arith.constant 0xFF800000 : f32
      %20 = vector.broadcast %cst_14 : f32 to vector<256x128xf32>
      %21 = arith.select %19, %16, %20 : vector<256x128xi1>, vector<256x128xf32>
      %cst_15 = arith.constant dense<0xFF800000> : vector<256xf32>
      %22 = vector.multi_reduction <maximumf>, %21, %cst_15 [1] : vector<256x128xf32> to vector<256xf32>
      %23 = vector.shape_cast %22 : vector<256xf32> to vector<256x1xf32>
      %24 = vector.broadcast %23 : vector<256x1xf32> to vector<256x128xf32>
      %25 = arith.cmpf oeq, %21, %24 : vector<256x128xf32>
      %c128_i32 = arith.constant 128 : i32
      %26 = vector.broadcast %c128_i32 : i32 to vector<256x128xi32>
      %27 = arith.select %25, %17, %26 : vector<256x128xi1>, vector<256x128xi32>
      %cst_16 = arith.constant dense<2147483647> : vector<256xi32>
      %28 = vector.multi_reduction <minsi>, %27, %cst_16 [1] : vector<256x128xi32> to vector<256xi32>
      %29 = vector.shape_cast %28 : vector<256xi32> to vector<256x1xi32>
      %30 = vector.extract_strided_slice %15 {offsets = [0, 0], sizes = [256, 128], strides = [1, 1]} : vector<256x384xf32> to vector<256x128xf32>
      %31 = arith.mulf %13, %30 : vector<256x128xf32>
      %cst_17 = arith.constant dense<0.000000e+00> : vector<256xf32>
      %32 = vector.multi_reduction <add>, %31, %cst_17 [1] : vector<256x128xf32> to vector<256xf32>
      %33 = vector.shape_cast %32 : vector<256xf32> to vector<256x1xf32>
      %34 = vector.extract_strided_slice %15 {offsets = [0, 128], sizes = [256, 128], strides = [1, 1]} : vector<256x384xf32> to vector<256x128xf32>
      %35 = vector.broadcast %33 : vector<256x1xf32> to vector<256x128xf32>
      %36 = arith.subf %35, %34 : vector<256x128xf32>
      %c0_18 = arith.constant 0 : index
      %c0_19 = arith.constant 0 : index
      %37 = vector.load %arg5[%c0_18, %c0_19] : memref<1x128xf32, #tpu.memory_space<vmem>>, vector<1x128xf32>
      %38 = vector.broadcast %37 : vector<1x128xf32> to vector<256x128xf32>
      %39 = arith.addf %36, %38 : vector<256x128xf32>
      %cst_20 = arith.constant 0x7F800000 : f32
      %40 = vector.broadcast %cst_20 : f32 to vector<256x128xf32>
      %41 = arith.select %19, %39, %40 : vector<256x128xi1>, vector<256x128xf32>
      %cst_21 = arith.constant dense<0x7F800000> : vector<256xf32>
      %42 = vector.multi_reduction <minimumf>, %41, %cst_21 [1] : vector<256x128xf32> to vector<256xf32>
      %43 = vector.shape_cast %42 : vector<256xf32> to vector<256x1xf32>
      %44 = vector.broadcast %29 : vector<256x1xi32> to vector<256x128xi32>
      %45 = arith.cmpi eq, %17, %44 : vector<256x128xi32>
      %cst_22 = arith.constant 0.000000e+00 : f32
      %46 = vector.broadcast %cst_22 : f32 to vector<256x1xf32>
      %47 = arith.subf %46, %43 : vector<256x1xf32>
      %cst_23 = arith.constant 0xFF800000 : f32
      %48 = vector.shape_cast %47 : vector<256x1xf32> to vector<256x1xf32>
      %49 = vector.broadcast %48 : vector<256x1xf32> to vector<256x128xf32>
      %50 = vector.broadcast %cst_23 : f32 to vector<256x128xf32>
      %51 = arith.select %45, %49, %50 : vector<256x128xi1>, vector<256x128xf32>
      %c0_24 = arith.constant 0 : index
      %c0_25 = arith.constant 0 : index
      %52 = vector.load %arg6[%c0_24, %c0_25] : memref<256x128xf32, #tpu.memory_space<vmem>>, vector<256x128xf32>
      tpu.vector_store %arg6[%c0_24, %c0_25], %51 {strides = array<i32>} : memref<256x128xf32, #tpu.memory_space<vmem>>, vector<256x128xf32>,
    } else {
    }
    return
  }
  func.func @transform_0(%arg0: i32, %arg1: i32) -> (i32, i32) {
    %c0_i32 = arith.constant 0 : i32
    return %arg0, %arg1 : i32, i32
  }
  func.func @transform_1(%arg0: i32, %arg1: i32) -> (i32, i32) {
    %c0_i32 = arith.constant 0 : i32
    %c0_i32_0 = arith.constant 0 : i32
    return %arg1, %c0_i32 : i32, i32
  }
  func.func @transform_2(%arg0: i32, %arg1: i32) -> (i32, i32) {
    %c0_i32 = arith.constant 0 : i32
    %c0_i32_0 = arith.constant 0 : i32
    %c0_i32_1 = arith.constant 0 : i32
    return %c0_i32, %c0_i32_0 : i32, i32
  }
  func.func @transform_3(%arg0: i32, %arg1: i32) -> (i32, i32) {
    %c0_i32 = arith.constant 0 : i32
    %c0_i32_0 = arith.constant 0 : i32
    %c0_i32_1 = arith.constant 0 : i32
    return %c0_i32, %c0_i32_0 : i32, i32
  }
  func.func @transform_4(%arg0: i32, %arg1: i32) -> (i32, i32) {
    %c0_i32 = arith.constant 0 : i32
    %c0_i32_0 = arith.constant 0 : i32
    return %arg0, %c0_i32 : i32, i32
  }
}

</mosaic_0001>

<bundles_post_ra>
// kernel: mahalanobis_forward.1
= control target key start
LH: loop header
LB: loop body
LE: loop exit
PB: predicated region body
PF: predicated region fallthrough
CT: control target
= control target key end

     0   :  { %s3044_s15 = smov 0   ;;  %s3046_s16 = smov 0   ;;  %s4734_s0 = inlined_call_operand.vmem [shape: f32[512,1024], index: 0, kind: input, shape index: {}]   ;;  %s4735_s1 = inlined_call_operand.vmem [shape: bf16[1024,128], index: 1, kind: input, shape index: {}]   ;;  %s4736_s2 = inlined_call_operand.vmem [shape: f32[128,384], index: 2, kind: input, shape index: {}]   ;;  %s4737_s3 = inlined_call_operand.vmem [shape: f32[1,128], index: 3, kind: input, shape index: {}]   ;;  %s4738_s4 = inlined_call_operand.vmem [shape: f32[512,128], index: 4, kind: output, shape index: {}]  }
   0x1   :  { %s3048_s17 = smov 0   ;;  %s3050_s18 = smov 0  }
   0x2   :  { %s3052_s19 = smov 0   ;;  %s3054_s20 = smov 0  }
   0x3   :  { %s3056_s21 = smov 0  }
   0x4 LB: > { %s23_s22 = sadd.s32 1, %s3007_s19  ;;  %s26_s23 = sadd.s32 1, %s3011_s20  ;;  %s3015_s21 = sphi %s3056_s21, %s14_s21   ;;  %s3011_s20 = sphi %s3054_s20, %s4913_s20   ;;  %s3007_s19 = sphi %s3052_s19, %s4912_s19   ;;  %s3003_s18 = sphi %s3050_s18, %s4911_s18   ;;  %s2999_s17 = sphi %s3048_s17, %s4910_s17   ;;  %s2995_s16 = sphi %s3046_s16, %s4909_s16   ;;  %s2991_s15 = sphi %s3044_s15, %s4908_s15  }
   0x5   : > { %p24_p0 = scmp.ge.s32.totalorder %s23_s22, 4  ;;  %p42_p1 = scmp.ne.s32.totalorder %s2995_s16, %s2991_s15 }
   0x6   : > { %p43_p2 = scmp.eq.s32.totalorder %s3015_s21, 0  ;;  %s35_s27 = sadd.s32 1, %s2995_s16 }
   0x7   : > { %s4915_s22 = smov (%p24_p0, %s23_s22), 0  ;;  %s4917_s23 = smov (!%p24_p0, %s26_s23), %s3011_s20 }
   0x8   : > { %p44_p3 = por %p43_p2, %p42_p1  ;;  %p28_p4 = scmp.ge.s32.totalorder %s4917_s23, 2 }
   0x9   : > { %s31_s24 = ssub.s32 %s3007_s19, %s4915_s22  ;;  %p2564_p6 = scmp.ge.s32.totalorder %s3015_s21, 8 }
   0xa   : > { %s4919_s23 = smov (%p28_p4, %s4917_s23), 0 }
   0xb   : > { %s30_s25 = ssub.s32 %s3011_s20, %s4919_s23  ;;  %168 = sbr.rel (%p2564_p6) target bundleno = 55 (0x37), region = 24 }
   0xc   : > { %s32_s26 = sor.u32 %s31_s24, %s30_s25 }
   0xd   : > { %p33_p5 = scmp.eq.s32.totalorder %s32_s26, 0 }
   0xf   : > { %s3095_s28 = scalar_select %p33_p5, %s2995_s16, %s35_s27  }
  0x10   : > { %171 = sbr.rel (!%p44_p3) target bundleno = 55 (0x37), region = 28  ;;  %s173_s29 = sand.u32 (%p44_p3), 1, %s2995_s16  }
  0x11   : > { %s2567_s30 = sshll.u32 (%p44_p3), %s3007_s19, 1  ;;  %s2565_s5 = sshll.u32 (%p44_p3), %s173_s29, 9 }
  0x12   : > { %s2597_s6 = sshll.u32 (%p44_p3), %s3011_s20, 8  ;;  %s3109_s12 = scalar_lea.vmem (%p44_p3), [#allocation3], %s2565_s5 }
  0x13   : > { %s179_s7 = sadd.s32 (%p44_p3), %s2597_s6, %s2567_s30 }
  0x14   : > { %s2569_s8 = sshll.u32 (%p44_p3), %s179_s7, 3 }
  0x15   : > { %s3104_s11 = scalar_lea.vmem %s4734_s0, %s2569_s8 }
  0x16   : > { %v194_v0 = vld [vmem:[%s3104_s11] sm:$0xff]  ;;  %v196_v1 = vld [vmem:[%s3104_s11 + $0x8] sm:$0xff] }
  0x17   : > { %v198_v2 = vld [vmem:[%s3104_s11 + $0x40] sm:$0xff]  ;;  %195 = vst [vmem:[%s3109_s12] sm:$0xff] %v194_v0  ;;  %197 = vst [vmem:[%s3109_s12 + $0x8] sm:$0xff] %v196_v1  ;;  %v200_v3 = vld [vmem:[%s3104_s11 + $0x48] sm:$0xff] }
  0x18   : > { %199 = vst [vmem:[%s3109_s12 + $0x10] sm:$0xff] %v198_v2  ;;  %v202_v4 = vld [vmem:[%s3104_s11 + $0x80] sm:$0xff]  ;;  %v204_v5 = vld [vmem:[%s3104_s11 + $0x88] sm:$0xff]  ;;  %201 = vst [vmem:[%s3109_s12 + $0x18] sm:$0xff] %v200_v3 }
  0x19   : > { %203 = vst [vmem:[%s3109_s12 + $0x20] sm:$0xff] %v202_v4  ;;  %205 = vst [vmem:[%s3109_s12 + $0x28] sm:$0xff] %v204_v5  ;;  %v206_v6 = vld [vmem:[%s3104_s11 + $0xc0] sm:$0xff]  ;;  %v208_v7 = vld [vmem:[%s3104_s11 + $0xc8] sm:$0xff] }
  0x1a   : > { %v210_v8 = vld [vmem:[%s3104_s11 + $0x100] sm:$0xff]  ;;  %207 = vst [vmem:[%s3109_s12 + $0x30] sm:$0xff] %v206_v6  ;;  %209 = vst [vmem:[%s3109_s12 + $0x38] sm:$0xff] %v208_v7  ;;  %v212_v9 = vld [vmem:[%s3104_s11 + $0x108] sm:$0xff] }
  0x1b   : > { %211 = vst [vmem:[%s3109_s12 + $0x40] sm:$0xff] %v210_v8  ;;  %v214_v10 = vld [vmem:[%s3104_s11 + $0x140] sm:$0xff]  ;;  %v216_v11 = vld [vmem:[%s3104_s11 + $0x148] sm:$0xff]  ;;  %213 = vst [vmem:[%s3109_s12 + $0x48] sm:$0xff] %v212_v9 }
  0x1c   : > { %215 = vst [vmem:[%s3109_s12 + $0x50] sm:$0xff] %v214_v10  ;;  %217 = vst [vmem:[%s3109_s12 + $0x58] sm:$0xff] %v216_v11  ;;  %v218_v12 = vld [vmem:[%s3104_s11 + $0x180] sm:$0xff]  ;;  %v220_v13 = vld [vmem:[%s3104_s11 + $0x188] sm:$0xff] }
  0x1d   : > { %v222_v14 = vld [vmem:[%s3104_s11 + $0x1c0] sm:$0xff]  ;;  %219 = vst [vmem:[%s3109_s12 + $0x60] sm:$0xff] %v218_v12  ;;  %221 = vst [vmem:[%s3109_s12 + $0x68] sm:$0xff] %v220_v13  ;;  %v224_v15 = vld [vmem:[%s3104_s11 + $0x1c8] sm:$0xff] }
  0x1e   : > { %223 = vst [vmem:[%s3109_s12 + $0x70] sm:$0xff] %v222_v14  ;;  %v226_v16 = vld [vmem:[%s3104_s11 + $0x200] sm:$0xff]  ;;  %v228_v17 = vld [vmem:[%s3104_s11 + $0x208] sm:$0xff]  ;;  %225 = vst [vmem:[%s3109_s12 + $0x78] sm:$0xff] %v224_v15 }
  0x1f   : > { %227 = vst [vmem:[%s3109_s12 + $0x80] sm:$0xff] %v226_v16  ;;  %229 = vst [vmem:[%s3109_s12 + $0x88] sm:$0xff] %v228_v17  ;;  %v230_v18 = vld [vmem:[%s3104_s11 + $0x240] sm:$0xff]  ;;  %v232_v19 = vld [vmem:[%s3104_s11 + $0x248] sm:$0xff] }
  0x20   : > { %v234_v20 = vld [vmem:[%s3104_s11 + $0x280] sm:$0xff]  ;;  %231 = vst [vmem:[%s3109_s12 + $0x90] sm:$0xff] %v230_v18  ;;  %233 = vst [vmem:[%s3109_s12 + $0x98] sm:$0xff] %v232_v19  ;;  %v236_v21 = vld [vmem:[%s3104_s11 + $0x288] sm:$0xff] }
  0x21   : > { %235 = vst [vmem:[%s3109_s12 + $0xa0] sm:$0xff] %v234_v20  ;;  %v238_v22 = vld [vmem:[%s3104_s11 + $0x2c0] sm:$0xff]  ;;  %v240_v23 = vld [vmem:[%s3104_s11 + $0x2c8] sm:$0xff]  ;;  %237 = vst [vmem:[%s3109_s12 + $0xa8] sm:$0xff] %v236_v21 }
  0x22   : > { %239 = vst [vmem:[%s3109_s12 + $0xb0] sm:$0xff] %v238_v22  ;;  %241 = vst [vmem:[%s3109_s12 + $0xb8] sm:$0xff] %v240_v23  ;;  %v242_v24 = vld [vmem:[%s3104_s11 + $0x300] sm:$0xff]  ;;  %v244_v25 = vld [vmem:[%s3104_s11 + $0x308] sm:$0xff] }
  0x23   : > { %v246_v26 = vld [vmem:[%s3104_s11 + $0x340] sm:$0xff]  ;;  %243 = vst [vmem:[%s3109_s12 + $0xc0] sm:$0xff] %v242_v24  ;;  %245 = vst [vmem:[%s3109_s12 + $0xc8] sm:$0xff] %v244_v25  ;;  %v248_v27 = vld [vmem:[%s3104_s11 + $0x348] sm:$0xff] }
  0x24   : > { %247 = vst [vmem:[%s3109_s12 + $0xd0] sm:$0xff] %v246_v26  ;;  %v250_v28 = vld [vmem:[%s3104_s11 + $0x380] sm:$0xff]  ;;  %v252_v29 = vld [vmem:[%s3104_s11 + $0x388] sm:$0xff]  ;;  %249 = vst [vmem:[%s3109_s12 + $0xd8] sm:$0xff] %v248_v27 }
  0x25   : > { %251 = vst [vmem:[%s3109_s12 + $0xe0] sm:$0xff] %v250_v28  ;;  %253 = vst [vmem:[%s3109_s12 + $0xe8] sm:$0xff] %v252_v29  ;;  %v254_v30 = vld [vmem:[%s3104_s11 + $0x3c0] sm:$0xff]  ;;  %v256_v31 = vld [vmem:[%s3104_s11 + $0x3c8] sm:$0xff] }
  0x26   : > { %v258_v32 = vld [vmem:[%s3104_s11 + $0x400] sm:$0xff]  ;;  %255 = vst [vmem:[%s3109_s12 + $0xf0] sm:$0xff] %v254_v30  ;;  %257 = vst [vmem:[%s3109_s12 + $0xf8] sm:$0xff] %v256_v31  ;;  %v260_v33 = vld [vmem:[%s3104_s11 + $0x408] sm:$0xff] }
  0x27   : > { %259 = vst [vmem:[%s3109_s12 + $0x100] sm:$0xff] %v258_v32  ;;  %v262_v34 = vld [vmem:[%s3104_s11 + $0x440] sm:$0xff]  ;;  %v264_v35 = vld [vmem:[%s3104_s11 + $0x448] sm:$0xff]  ;;  %261 = vst [vmem:[%s3109_s12 + $0x108] sm:$0xff] %v260_v33 }
  0x28   : > { %263 = vst [vmem:[%s3109_s12 + $0x110] sm:$0xff] %v262_v34  ;;  %265 = vst [vmem:[%s3109_s12 + $0x118] sm:$0xff] %v264_v35  ;;  %v266_v36 = vld [vmem:[%s3104_s11 + $0x480] sm:$0xff]  ;;  %v268_v37 = vld [vmem:[%s3104_s11 + $0x488] sm:$0xff] }
  0x29   : > { %v270_v38 = vld [vmem:[%s3104_s11 + $0x4c0] sm:$0xff]  ;;  %267 = vst [vmem:[%s3109_s12 + $0x120] sm:$0xff] %v266_v36  ;;  %269 = vst [vmem:[%s3109_s12 + $0x128] sm:$0xff] %v268_v37  ;;  %v272_v39 = vld [vmem:[%s3104_s11 + $0x4c8] sm:$0xff] }
  0x2a   : > { %271 = vst [vmem:[%s3109_s12 + $0x130] sm:$0xff] %v270_v38  ;;  %v274_v40 = vld [vmem:[%s3104_s11 + $0x500] sm:$0xff]  ;;  %v276_v41 = vld [vmem:[%s3104_s11 + $0x508] sm:$0xff]  ;;  %273 = vst [vmem:[%s3109_s12 + $0x138] sm:$0xff] %v272_v39 }
  0x2b   : > { %275 = vst [vmem:[%s3109_s12 + $0x140] sm:$0xff] %v274_v40  ;;  %277 = vst [vmem:[%s3109_s12 + $0x148] sm:$0xff] %v276_v41  ;;  %v278_v42 = vld [vmem:[%s3104_s11 + $0x540] sm:$0xff]  ;;  %v280_v43 = vld [vmem:[%s3104_s11 + $0x548] sm:$0xff] }
  0x2c   : > { %v282_v44 = vld [vmem:[%s3104_s11 + $0x580] sm:$0xff]  ;;  %279 = vst [vmem:[%s3109_s12 + $0x150] sm:$0xff] %v278_v42  ;;  %281 = vst [vmem:[%s3109_s12 + $0x158] sm:$0xff] %v280_v43  ;;  %v284_v45 = vld [vmem:[%s3104_s11 + $0x588] sm:$0xff] }
  0x2d   : > { %283 = vst [vmem:[%s3109_s12 + $0x160] sm:$0xff] %v282_v44  ;;  %v286_v46 = vld [vmem:[%s3104_s11 + $0x5c0] sm:$0xff]  ;;  %v288_v47 = vld [vmem:[%s3104_s11 + $0x5c8] sm:$0xff]  ;;  %285 = vst [vmem:[%s3109_s12 + $0x168] sm:$0xff] %v284_v45 }
  0x2e   : > { %287 = vst [vmem:[%s3109_s12 + $0x170] sm:$0xff] %v286_v46  ;;  %289 = vst [vmem:[%s3109_s12 + $0x178] sm:$0xff] %v288_v47  ;;  %v290_v48 = vld [vmem:[%s3104_s11 + $0x600] sm:$0xff]  ;;  %v292_v49 = vld [vmem:[%s3104_s11 + $0x608] sm:$0xff] }
  0x2f   : > { %v294_v50 = vld [vmem:[%s3104_s11 + $0x640] sm:$0xff]  ;;  %291 = vst [vmem:[%s3109_s12 + $0x180] sm:$0xff] %v290_v48  ;;  %293 = vst [vmem:[%s3109_s12 + $0x188] sm:$0xff] %v292_v49  ;;  %v296_v51 = vld [vmem:[%s3104_s11 + $0x648] sm:$0xff] }
  0x30   : > { %295 = vst [vmem:[%s3109_s12 + $0x190] sm:$0xff] %v294_v50  ;;  %v298_v52 = vld [vmem:[%s3104_s11 + $0x680] sm:$0xff]  ;;  %v300_v53 = vld [vmem:[%s3104_s11 + $0x688] sm:$0xff]  ;;  %297 = vst [vmem:[%s3109_s12 + $0x198] sm:$0xff] %v296_v51 }
  0x31   : > { %299 = vst [vmem:[%s3109_s12 + $0x1a0] sm:$0xff] %v298_v52  ;;  %301 = vst [vmem:[%s3109_s12 + $0x1a8] sm:$0xff] %v300_v53  ;;  %v302_v54 = vld [vmem:[%s3104_s11 + $0x6c0] sm:$0xff]  ;;  %v304_v55 = vld [vmem:[%s3104_s11 + $0x6c8] sm:$0xff] }
  0x32   : > { %v306_v56 = vld [vmem:[%s3104_s11 + $0x700] sm:$0xff]  ;;  %303 = vst [vmem:[%s3109_s12 + $0x1b0] sm:$0xff] %v302_v54  ;;  %305 = vst [vmem:[%s3109_s12 + $0x1b8] sm:$0xff] %v304_v55  ;;  %v308_v57 = vld [vmem:[%s3104_s11 + $0x708] sm:$0xff] }
  0x33   : > { %307 = vst [vmem:[%s3109_s12 + $0x1c0] sm:$0xff] %v306_v56  ;;  %v310_v58 = vld [vmem:[%s3104_s11 + $0x740] sm:$0xff]  ;;  %v312_v59 = vld [vmem:[%s3104_s11 + $0x748] sm:$0xff]  ;;  %309 = vst [vmem:[%s3109_s12 + $0x1c8] sm:$0xff] %v308_v57 }
  0x34   : > { %311 = vst [vmem:[%s3109_s12 + $0x1d0] sm:$0xff] %v310_v58  ;;  %313 = vst [vmem:[%s3109_s12 + $0x1d8] sm:$0xff] %v312_v59  ;;  %v314_v60 = vld [vmem:[%s3104_s11 + $0x780] sm:$0xff]  ;;  %v316_v61 = vld [vmem:[%s3104_s11 + $0x788] sm:$0xff] }
  0x35   : > { %v318_v62 = vld [vmem:[%s3104_s11 + $0x7c0] sm:$0xff]  ;;  %315 = vst [vmem:[%s3109_s12 + $0x1e0] sm:$0xff] %v314_v60  ;;  %317 = vst [vmem:[%s3109_s12 + $0x1e8] sm:$0xff] %v316_v61  ;;  %v320_v63 = vld [vmem:[%s3104_s11 + $0x7c8] sm:$0xff] }
  0x36   : > { %319 = vst [vmem:[%s3109_s12 + $0x1f0] sm:$0xff] %v318_v62  ;;  %321 = vst [vmem:[%s3109_s12 + $0x1f8] sm:$0xff] %v320_v63 }
  0x37 PF: > { %p2570_p7 = scmp.ge.s32.totalorder %s3015_s21, 1  ;;  %p335_p8 = scmp.lt.s32.totalorder %s3015_s21, 9 }
  0x39   : > { %p336_p9 = pnand %p2570_p7, %p335_p8 }
  0x3a   : > { %s342_s13 = sand.u32 (!%p336_p9), 1, %s2991_s15   ;;  %s2572_s14 = sshll.u32 (!%p336_p9), %s2999_s17, 5 }
  0x3b   : > { %339 = sbr.rel (%p336_p9) target bundleno = 1221 (0x4c5), region = 55  ;;  %s2571_s24 = sshll.u32 (!%p336_p9), %s342_s13, 9 }
  0x3c   : > { %p375_p10 = scmp.lt.s32.totalorder (!%p336_p9), %s2572_s14, 127  ;;  %s2574_s25 = sshll.u32 (!%p336_p9), %s3003_s18, 5 }
  0x3d   : > { %p381_p11 = scmp.lt.s32.totalorder (!%p336_p9), %s2574_s25, 63  ;;  %s3251_s15 = scalar_lea.vmem (!%p336_p9), [#allocation3], %s2571_s24 }
  0x3e   : > { %p2576_p12 = scmp.ne.s32.totalorder (!%p336_p9), %s2999_s17, 0 }
  0x40   : > { %s4921_s14 = smov (!%p375_p10, %s2572_s14), 127  ;;  %s4923_s25 = smov (!%p381_p11, %s2574_s25), 63 }
  0x41   : > { %s2573_s26 = sshll.u32 %s4921_s14, 2  ;;  %s2575_s5 = sshll.u32 %s4923_s25, 3 }
  0x42   : > { %s3244_s30 = scalar_lea.vmem %s4735_s1, %s2573_s26  ;;  %s3249_s8 = scalar_lea.vmem %s4738_s4, %s2575_s5 }
  0x43   : > { %390 = sbr.rel (%p2576_p12) target bundleno = 89 (0x59), region = 63 }
  0x48   : > { %v3017_v0 = vmov 0.0  }
  0x49   : > { %391 = vst [vmem:[#allocation2 + $0xb0] sm:$0xff] %v3017_v0  ;;  %392 = vst [vmem:[#allocation2] sm:$0xff] %v3017_v0 }
  0x4a   : > { %393 = vst [vmem:[#allocation2 + $0xd8] sm:$0xff] %v3017_v0  ;;  %394 = vst [vmem:[#allocation2 + $0x18] sm:$0xff] %v3017_v0 }
  0x4b   : > { %395 = vst [vmem:[#allocation2 + $0x50] sm:$0xff] %v3017_v0  ;;  %396 = vst [vmem:[#allocation2 + $0x68] sm:$0xff] %v3017_v0 }
  0x4c   : > { %397 = vst [vmem:[#allocation2 + $0x30] sm:$0xff] %v3017_v0  ;;  %398 = vst [vmem:[#allocation2 + $0x48] sm:$0xff] %v3017_v0 }
  0x4d   : > { %399 = vst [vmem:[#allocation2 + $0x80] sm:$0xff] %v3017_v0  ;;  %400 = vst [vmem:[#allocation2 + $0x88] sm:$0xff] %v3017_v0 }
  0x4e   : > { %401 = vst [vmem:[#allocation2 + $0xe8] sm:$0xff] %v3017_v0  ;;  %402 = vst [vmem:[#allocation2 + $0xb8] sm:$0xff] %v3017_v0 }
  0x4f   : > { %403 = vst [vmem:[#allocation2 + $0x60] sm:$0xff] %v3017_v0  ;;  %404 = vst [vmem:[#allocation2 + $0xf0] sm:$0xff] %v3017_v0 }
  0x50   : > { %405 = vst [vmem:[#allocation2 + $0x8] sm:$0xff] %v3017_v0  ;;  %406 = vst [vmem:[#allocation2 + $0x78] sm:$0xff] %v3017_v0 }
  0x51   : > { %407 = vst [vmem:[#allocation2 + $0x38] sm:$0xff] %v3017_v0  ;;  %408 = vst [vmem:[#allocation2 + $0x58] sm:$0xff] %v3017_v0 }
  0x52   : > { %409 = vst [vmem:[#allocation2 + $0x40] sm:$0xff] %v3017_v0  ;;  %410 = vst [vmem:[#allocation2 + $0xc8] sm:$0xff] %v3017_v0 }
  0x53   : > { %411 = vst [vmem:[#allocation2 + $0xe0] sm:$0xff] %v3017_v0  ;;  %412 = vst [vmem:[#allocation2 + $0x90] sm:$0xff] %v3017_v0 }
  0x54   : > { %413 = vst [vmem:[#allocation2 + $0x70] sm:$0xff] %v3017_v0  ;;  %414 = vst [vmem:[#allocation2 + $0xc0] sm:$0xff] %v3017_v0 }
  0x55   : > { %415 = vst [vmem:[#allocation2 + $0xa8] sm:$0xff] %v3017_v0  ;;  %416 = vst [vmem:[#allocation2 + $0xd0] sm:$0xff] %v3017_v0 }
  0x56   : > { %417 = vst [vmem:[#allocation2 + $0x10] sm:$0xff] %v3017_v0  ;;  %418 = vst [vmem:[#allocation2 + $0x28] sm:$0xff] %v3017_v0 }
  0x57   : > { %419 = vst [vmem:[#allocation2 + $0xa0] sm:$0xff] %v3017_v0  ;;  %420 = vst [vmem:[#allocation2 + $0xf8] sm:$0xff] %v3017_v0 }
  0x58   : > { %421 = vst [vmem:[#allocation2 + $0x20] sm:$0xff] %v3017_v0  ;;  %422 = vst [vmem:[#allocation2 + $0x98] sm:$0xff] %v3017_v0 }
  0x59 PF: > { %v2944_v1 = vld [vmem:[%s3244_s30 + $0x78] sm:$0xff]   ;;  %v2946_v3 = vld [vmem:[%s3244_s30 + $0x70] sm:$0xff]   ;;  %v2948_v5 = vld [vmem:[%s3244_s30 + $0x68] sm:$0xff]   ;;  %p2593_p13 = scmp.ne.s32.totalorder %s2999_s17, 3 }
  0x5a   : > { %v2945_v2 = vld [vmem:[%s3244_s30 + $0x38] sm:$0xff]   ;;  %2598 = vmatprep.subr.bf16.mxu0 %v2944_v1  ;;  %2838 = vmatprep.subr.bf16.mxu1 %v2944_v1  ;;  %v2947_v4 = vld [vmem:[%s3244_s30 + $0x30] sm:$0xff]   ;;  %v2949_v6 = vld [vmem:[%s3244_s30 + $0x28] sm:$0xff]  }
  0x5b   : > { %2599 = vmatpush3.bf16.msra.mxu0 %v2945_v2  ;;  %2846 = vmatpush3.bf16.msra.mxu1 %v2945_v2  ;;  %v2950_v7 = vld [vmem:[%s3244_s30 + $0x60] sm:$0xff]   ;;  %v2952_v9 = vld [vmem:[%s3244_s30 + $0x58] sm:$0xff]   ;;  %v2954_v11 = vld [vmem:[%s3244_s30 + $0x50] sm:$0xff]  }
  0x5c   : > { %2600 = vmatprep.subr.bf16.mxu0 %v2946_v3  ;;  %2839 = vmatprep.subr.bf16.mxu1 %v2946_v3  ;;  %v2951_v8 = vld [vmem:[%s3244_s30 + $0x20] sm:$0xff]   ;;  %v2953_v10 = vld [vmem:[%s3244_s30 + $0x18] sm:$0xff]   ;;  %v456_v12 = vld [vmem:[%s3251_s15 + $0x8] sm:$0xff] }
  0x5d   : > { %v458_v13 = vld [vmem:[%s3251_s15 + $0x18] sm:$0xff]  ;;  %v488_v14 = vld [vmem:[%s3251_s15 + $0x108] sm:$0xff]  ;;  %v2955_v18 = vld [vmem:[%s3244_s30 + $0x10] sm:$0xff]  }
  0x5e   : > { %v520_v15 = vpack.c.bf16 %v458_v13, %v456_v12  ;;  %v490_v16 = vld [vmem:[%s3251_s15 + $0x118] sm:$0xff]  ;;  %v2956_v19 = vld [vmem:[%s3244_s30 + $0x48] sm:$0xff]   ;;  %v2958_v21 = vld [vmem:[%s3244_s30 + $0x40] sm:$0xff]  }
  0x5f   : > { %2601 = vmatpush3.bf16.msra.mxu0 %v2947_v4  ;;  %2847 = vmatpush3.bf16.msra.mxu1 %v2947_v4  ;;  %v536_v17 = vpack.c.bf16 %v490_v16, %v488_v14  ;;  %v2957_v20 = vld [vmem:[%s3244_s30 + $0x8] sm:$0xff]   ;;  %v2959_v22 = vld [vmem:[%s3244_s30] sm:$0xff]   ;;  %v457_v24 = vld [vmem:[%s3251_s15 + $0x10] sm:$0xff] }
  0x60   : > { %2602 = vmatprep.subr.bf16.mxu0 %v2948_v5  ;;  %2840 = vmatprep.subr.bf16.mxu1 %v2948_v5  ;;  %v455_v23 = vld [vmem:[%s3251_s15] sm:$0xff]  ;;  %v489_v26 = vld [vmem:[%s3251_s15 + $0x110] sm:$0xff]  ;;  %v460_v27 = vld [vmem:[%s3251_s15 + $0x28] sm:$0xff] }
  0x61   : > { %711 = vmatprep.mubr.bf16.mxu0 %v520_v15  ;;  %775 = vmatprep.mubr.bf16.mxu1 %v536_v17  ;;  %v487_v25 = vld [vmem:[%s3251_s15 + $0x100] sm:$0xff]  ;;  %v462_v28 = vld [vmem:[%s3251_s15 + $0x38] sm:$0xff]  ;;  %v492_v29 = vld [vmem:[%s3251_s15 + $0x128] sm:$0xff]  ;;  %v519_v31 = vpack.c.bf16 %v457_v24, %v455_v23 }
  0x62   : > { %v494_v30 = vld [vmem:[%s3251_s15 + $0x138] sm:$0xff]  ;;  %v535_v32 = vpack.c.bf16 %v489_v26, %v487_v25  ;;  %v522_v33 = vpack.c.bf16 %v462_v28, %v460_v27  ;;  %v459_v35 = vld [vmem:[%s3251_s15 + $0x20] sm:$0xff]  ;;  %v461_v36 = vld [vmem:[%s3251_s15 + $0x30] sm:$0xff] }
  0x63   : > { %2603 = vmatpush3.bf16.msra.mxu0 %v2949_v6  ;;  %2848 = vmatpush3.bf16.msra.mxu1 %v2949_v6  ;;  %v538_v34 = vpack.c.bf16 %v494_v30, %v492_v29  ;;  %v491_v37 = vld [vmem:[%s3251_s15 + $0x120] sm:$0xff]  ;;  %v493_v38 = vld [vmem:[%s3251_s15 + $0x130] sm:$0xff]  ;;  %v464_v39 = vld [vmem:[%s3251_s15 + $0x48] sm:$0xff]  ;;  %v521_v43 = vpack.c.bf16 %v461_v36, %v459_v35 }
  0x64   : > { %2604 = vmatprep.subr.bf16.mxu0 %v2950_v7  ;;  %2841 = vmatprep.subr.bf16.mxu1 %v2950_v7  ;;  %v466_v40 = vld [vmem:[%s3251_s15 + $0x58] sm:$0xff]  ;;  %v496_v41 = vld [vmem:[%s3251_s15 + $0x148] sm:$0xff]  ;;  %v537_v44 = vpack.c.bf16 %v493_v38, %v491_v37  ;;  %v463_v47 = vld [vmem:[%s3251_s15 + $0x40] sm:$0xff] }
  0x65   : > { %v498_v42 = vld [vmem:[%s3251_s15 + $0x158] sm:$0xff]  ;;  %v524_v45 = vpack.c.bf16 %v466_v40, %v464_v39  ;;  %v465_v48 = vld [vmem:[%s3251_s15 + $0x50] sm:$0xff]  ;;  %v495_v49 = vld [vmem:[%s3251_s15 + $0x140] sm:$0xff] }
  0x66   : > { %v540_v46 = vpack.c.bf16 %v498_v42, %v496_v41  ;;  %v497_v50 = vld [vmem:[%s3251_s15 + $0x150] sm:$0xff]  ;;  %v468_v51 = vld [vmem:[%s3251_s15 + $0x68] sm:$0xff]  ;;  %v470_v52 = vld [vmem:[%s3251_s15 + $0x78] sm:$0xff]  ;;  %v523_v55 = vpack.c.bf16 %v465_v48, %v463_v47 }
  0x67   : > { %2605 = vmatpush3.bf16.msra.mxu0 %v2951_v8  ;;  %2849 = vmatpush3.bf16.msra.mxu1 %v2951_v8  ;;  %v500_v53 = vld [vmem:[%s3251_s15 + $0x168] sm:$0xff]  ;;  %v502_v54 = vld [vmem:[%s3251_s15 + $0x178] sm:$0xff]  ;;  %v539_v56 = vpack.c.bf16 %v497_v50, %v495_v49  ;;  %v526_v57 = vpack.c.bf16 %v470_v52, %v468_v51  ;;  %v467_v59 = vld [vmem:[%s3251_s15 + $0x60] sm:$0xff] }
  0x68   : > { %2606 = vmatprep.subr.bf16.mxu0 %v2952_v9  ;;  %2842 = vmatprep.subr.bf16.mxu1 %v2952_v9  ;;  %v542_v58 = vpack.c.bf16 %v502_v54, %v500_v53  ;;  %v469_v60 = vld [vmem:[%s3251_s15 + $0x70] sm:$0xff]  ;;  %v499_v61 = vld [vmem:[%s3251_s15 + $0x160] sm:$0xff]  ;;  %v472_v63 = vld [vmem:[%s3251_s15 + $0x88] sm:$0xff] }
  0x69   : > { %v501_v62 = vld [vmem:[%s3251_s15 + $0x170] sm:$0xff]  ;;  %v474_v0 = vld [vmem:[%s3251_s15 + $0x98] sm:$0xff]  ;;  %v504_v1 = vld [vmem:[%s3251_s15 + $0x188] sm:$0xff]  ;;  %v525_v3 = vpack.c.bf16 %v469_v60, %v467_v59 }
  0x6a   : > { %v506_v2 = vld [vmem:[%s3251_s15 + $0x198] sm:$0xff]  ;;  %v541_v4 = vpack.c.bf16 %v501_v62, %v499_v61  ;;  %v528_v5 = vpack.c.bf16 %v474_v0, %v472_v63  ;;  %v471_v7 = vld [vmem:[%s3251_s15 + $0x80] sm:$0xff]  ;;  %v473_v8 = vld [vmem:[%s3251_s15 + $0x90] sm:$0xff] }
  0x6b   : > { %2607 = vmatpush3.bf16.msra.mxu0 %v2953_v10  ;;  %2850 = vmatpush3.bf16.msra.mxu1 %v2953_v10  ;;  %v544_v6 = vpack.c.bf16 %v506_v2, %v504_v1  ;;  %v503_v9 = vld [vmem:[%s3251_s15 + $0x180] sm:$0xff]  ;;  %v505_v10 = vld [vmem:[%s3251_s15 + $0x190] sm:$0xff]  ;;  %v478_v12 = vld [vmem:[%s3251_s15 + $0xb8] sm:$0xff]  ;;  %v527_v15 = vpack.c.bf16 %v473_v8, %v471_v7 }
  0x6c   : > { %2608 = vmatprep.subr.bf16.mxu0 %v2954_v11  ;;  %2843 = vmatprep.subr.bf16.mxu1 %v2954_v11  ;;  %v476_v11 = vld [vmem:[%s3251_s15 + $0xa8] sm:$0xff]  ;;  %v510_v14 = vld [vmem:[%s3251_s15 + $0x1b8] sm:$0xff]  ;;  %v543_v16 = vpack.c.bf16 %v505_v10, %v503_v9  ;;  %v423_v51 = vld [vmem:[#allocation2 + $0xb0] sm:$0xff] }
  0x6d   : > { %v508_v13 = vld [vmem:[%s3251_s15 + $0x1a8] sm:$0xff]  ;;  %v530_v17 = vpack.c.bf16 %v478_v12, %v476_v11  ;;  %v482_v24 = vld [vmem:[%s3251_s15 + $0xd8] sm:$0xff]  ;;  %v424_v61 = vld [vmem:[#allocation2] sm:$0xff] }
  0x6e   : > { %v480_v23 = vld [vmem:[%s3251_s15 + $0xc8] sm:$0xff]  ;;  %v514_v26 = vld [vmem:[%s3251_s15 + $0x1d8] sm:$0xff]  ;;  %v441_v9 = vld [vmem:[#allocation2 + $0x40] sm:$0xff] }
  0x6f   : > { %2609 = vmatpush3.bf16.msra.mxu0 %v2955_v18  ;;  %2851 = vmatpush3.bf16.msra.mxu1 %v2955_v18  ;;  %v546_v18 = vpack.c.bf16 %v510_v14, %v508_v13  ;;  %v512_v25 = vld [vmem:[%s3251_s15 + $0x1c8] sm:$0xff]  ;;  %v532_v29 = vpack.c.bf16 %v482_v24, %v480_v23  ;;  %v486_v36 = vld [vmem:[%s3251_s15 + $0xf8] sm:$0xff] }
  0x70   : > { %2610 = vmatprep.subr.bf16.mxu0 %v2956_v19  ;;  %2844 = vmatprep.subr.bf16.mxu1 %v2956_v19  ;;  %v475_v19 = vld [vmem:[%s3251_s15 + $0xa0] sm:$0xff]  ;;  %v548_v30 = vpack.c.bf16 %v514_v26, %v512_v25  ;;  %v484_v35 = vld [vmem:[%s3251_s15 + $0xe8] sm:$0xff]  ;;  %v518_v38 = vld [vmem:[%s3251_s15 + $0x1f8] sm:$0xff] }
  0x71   : > { %v516_v37 = vld [vmem:[%s3251_s15 + $0x1e8] sm:$0xff]  ;;  %v534_v41 = vpack.c.bf16 %v486_v36, %v484_v35  ;;  %v439_v53 = vld [vmem:[#allocation2 + $0x38] sm:$0xff] }
  0x72   : > { %v550_v42 = vpack.c.bf16 %v518_v38, %v516_v37  ;;  %v440_v63 = vld [vmem:[#allocation2 + $0x58] sm:$0xff]  ;;  %v428_v37 = vld [vmem:[#allocation2 + $0x68] sm:$0xff] }
  0x73   : > { %2611 = vmatpush3.bf16.msra.mxu0 %v2957_v20  ;;  %2852 = vmatpush3.bf16.msra.mxu1 %v2957_v20  ;;  %v477_v20 = vld [vmem:[%s3251_s15 + $0xb0] sm:$0xff]  ;;  %v425_v7 = vld [vmem:[#allocation2 + $0xd8] sm:$0xff] }
  0x74   : > { %2612 = vmatprep.subr.bf16.mxu0 %v2958_v21  ;;  %2845 = vmatprep.subr.bf16.mxu1 %v2958_v21  ;;  %v507_v21 = vld [vmem:[%s3251_s15 + $0x1a0] sm:$0xff]  ;;  %v529_v27 = vpack.c.bf16 %v477_v20, %v475_v19  ;;  %v442_v19 = vld [vmem:[#allocation2 + $0xc8] sm:$0xff] }
  0x77   : > { %2613 = vmatpush3.bf16.msra.mxu0 %v2959_v22  ;;  %2853 = vmatpush3.bf16.msra.mxu1 %v2959_v22  ;;  %v509_v22 = vld [vmem:[%s3251_s15 + $0x1b0] sm:$0xff] }
  0x78   : > { %v545_v28 = vpack.c.bf16 %v509_v22, %v507_v21 }
  0x7a   : > { %712 = vmatmul.mubr.bf16.vlgmr.msra.gmra.mxu0 %v519_v31  ;;  %776 = vmatmul.mubr.bf16.vlgmr.msra.gmra.mxu1 %v535_v32  ;;  %v479_v31 = vld [vmem:[%s3251_s15 + $0xc0] sm:$0xff]  ;;  %v481_v32 = vld [vmem:[%s3251_s15 + $0xd0] sm:$0xff] }
  0x7b   : > { %719 = vmatprep.mubr.bf16.mxu0 %v522_v33  ;;  %783 = vmatprep.mubr.bf16.mxu1 %v538_v34  ;;  %v511_v33 = vld [vmem:[%s3251_s15 + $0x1c0] sm:$0xff]  ;;  %v513_v34 = vld [vmem:[%s3251_s15 + $0x1d0] sm:$0xff]  ;;  %v531_v39 = vpack.c.bf16 %v481_v32, %v479_v31 }
  0x7c   : > { %v547_v40 = vpack.c.bf16 %v513_v34, %v511_v33 }
  0x82   : > { %720 = vmatmul.mubr.bf16.gmra.mxu0 %v521_v43  ;;  %784 = vmatmul.mubr.bf16.gmra.mxu1 %v537_v44  ;;  %v483_v43 = vld [vmem:[%s3251_s15 + $0xe0] sm:$0xff]  ;;  %v485_v44 = vld [vmem:[%s3251_s15 + $0xf0] sm:$0xff] }
  0x83   : > { %727 = vmatprep.mubr.bf16.mxu0 %v524_v45  ;;  %791 = vmatprep.mubr.bf16.mxu1 %v540_v46  ;;  %v515_v45 = vld [vmem:[%s3251_s15 + $0x1e0] sm:$0xff]  ;;  %v517_v46 = vld [vmem:[%s3251_s15 + $0x1f0] sm:$0xff]  ;;  %v533_v47 = vpack.c.bf16 %v485_v44, %v483_v43 }
  0x84   : > { %v549_v48 = vpack.c.bf16 %v517_v46, %v515_v45 }
  0x8a   : > { %728 = vmatmul.mubr.bf16.gmra.mxu0 %v523_v55  ;;  %792 = vmatmul.mubr.bf16.gmra.mxu1 %v539_v56 }
  0x8b   : > { %735 = vmatprep.mubr.bf16.mxu0 %v526_v57  ;;  %799 = vmatprep.mubr.bf16.mxu1 %v542_v58 }
  0x92   : > { %736 = vmatmul.mubr.bf16.gmra.mxu0 %v525_v3  ;;  %800 = vmatmul.mubr.bf16.gmra.mxu1 %v541_v4 }
  0x93   : > { %743 = vmatprep.mubr.bf16.mxu0 %v528_v5  ;;  %807 = vmatprep.mubr.bf16.mxu1 %v544_v6 }
  0x9a   : > { %744 = vmatmul.mubr.bf16.gmra.mxu0 %v527_v15  ;;  %808 = vmatmul.mubr.bf16.gmra.mxu1 %v543_v16 }
  0x9b   : > { %751 = vmatprep.mubr.bf16.mxu0 %v530_v17  ;;  %815 = vmatprep.mubr.bf16.mxu1 %v546_v18  ;;  %v426_v17 = vld [vmem:[#allocation2 + $0x18] sm:$0xff] }
  0xa2   : > { %752 = vmatmul.mubr.bf16.gmra.mxu0 %v529_v27  ;;  %816 = vmatmul.mubr.bf16.gmra.mxu1 %v545_v28  ;;  %v427_v27 = vld [vmem:[#allocation2 + $0x50] sm:$0xff] }
  0xa3   : > { %759 = vmatprep.mubr.bf16.mxu0 %v532_v29  ;;  %823 = vmatprep.mubr.bf16.mxu1 %v548_v30  ;;  %v443_v29 = vld [vmem:[#allocation2 + $0xe0] sm:$0xff] }
  0xaa   : > { %760 = vmatmul.mubr.bf16.gmra.mxu0 %v531_v39  ;;  %824 = vmatmul.mubr.bf16.gmra.mxu1 %v547_v40  ;;  %v444_v39 = vld [vmem:[#allocation2 + $0x90] sm:$0xff] }
  0xab   : > { %767 = vmatprep.mubr.bf16.mxu0 %v534_v41  ;;  %831 = vmatprep.mubr.bf16.mxu1 %v550_v42 }
  0xb2   : > { %768 = vmatmul.mubr.bf16.gmra.mxu0 %v533_v47  ;;  %832 = vmatmul.mubr.bf16.gmra.mxu1 %v549_v48  ;;  %v429_v47 = vld [vmem:[#allocation2 + $0x30] sm:$0xff] }
 0x13a   : > { %v2614_v49 = vpop.f32.mrf.mxu0  ;;  %v2662_v50 = vpop.f32.mrf.mxu1 }
 0x13c   : > { %v2615_v52 = vpop.f32.mrf.mxu0  ;;  %v2663_v54 = vpop.f32.mrf.mxu1 }
 0x13d   : > { %v2616_v55 = vadd.f32 %v2615_v52, %v2614_v49  ;;  %v2664_v56 = vadd.f32 %v2663_v54, %v2662_v50  ;;  %v445_v49 = vld [vmem:[#allocation2 + $0x70] sm:$0xff] }
 0x13e   : > { %v2617_v57 = vpop.f32.mrf.mxu0  ;;  %v2665_v58 = vpop.f32.mrf.mxu1 }
 0x13f   : > { %v840_v59 = vadd.f32 %v2616_v55, %v423_v51  ;;  %v856_v60 = vadd.f32 %v2664_v56, %v439_v53 }
 0x140   : > { %v2618_v62 = vpop.f32.mrf.mxu0  ;;  %v2666_v0 = vpop.f32.mrf.mxu1 }
 0x141   : > { %872 = vst [vmem:[#allocation2 + $0xb0] sm:$0xff] %v840_v59  ;;  %888 = vst [vmem:[#allocation2 + $0x38] sm:$0xff] %v856_v60  ;;  %v2619_v1 = vadd.f32 %v2618_v62, %v2617_v57  ;;  %v2667_v2 = vadd.f32 %v2666_v0, %v2665_v58  ;;  %v430_v57 = vld [vmem:[#allocation2 + $0x48] sm:$0xff]  ;;  %v446_v59 = vld [vmem:[#allocation2 + $0xc0] sm:$0xff] }
 0x142   : > { %v2620_v3 = vpop.f32.mrf.mxu0  ;;  %v2668_v4 = vpop.f32.mrf.mxu1 }
 0x143   : > { %v841_v5 = vadd.f32 %v2619_v1, %v424_v61  ;;  %v857_v6 = vadd.f32 %v2667_v2, %v440_v63 }
 0x144   : > { %v2621_v8 = vpop.f32.mrf.mxu0  ;;  %v2669_v10 = vpop.f32.mrf.mxu1 }
 0x145   : > { %873 = vst [vmem:[#allocation2] sm:$0xff] %v841_v5  ;;  %889 = vst [vmem:[#allocation2 + $0x58] sm:$0xff] %v857_v6  ;;  %v2622_v11 = vadd.f32 %v2621_v8, %v2620_v3  ;;  %v2670_v12 = vadd.f32 %v2669_v10, %v2668_v4  ;;  %v431_v3 = vld [vmem:[#allocation2 + $0x80] sm:$0xff]  ;;  %v447_v5 = vld [vmem:[#allocation2 + $0xa8] sm:$0xff] }
 0x146   : > { %v2623_v13 = vpop.f32.mrf.mxu0  ;;  %v2671_v14 = vpop.f32.mrf.mxu1 }
 0x147   : > { %v842_v15 = vadd.f32 %v2622_v11, %v425_v7  ;;  %v858_v16 = vadd.f32 %v2670_v12, %v441_v9 }
 0x148   : > { %v2624_v18 = vpop.f32.mrf.mxu0  ;;  %v2672_v20 = vpop.f32.mrf.mxu1 }
 0x149   : > { %874 = vst [vmem:[#allocation2 + $0xd8] sm:$0xff] %v842_v15  ;;  %890 = vst [vmem:[#allocation2 + $0x40] sm:$0xff] %v858_v16  ;;  %v2625_v21 = vadd.f32 %v2624_v18, %v2623_v13  ;;  %v2673_v22 = vadd.f32 %v2672_v20, %v2671_v14  ;;  %v432_v13 = vld [vmem:[#allocation2 + $0x88] sm:$0xff]  ;;  %v448_v15 = vld [vmem:[#allocation2 + $0xd0] sm:$0xff] }
 0x14a   : > { %v2626_v23 = vpop.f32.mrf.mxu0  ;;  %v2674_v24 = vpop.f32.mrf.mxu1 }
 0x14b   : > { %v843_v25 = vadd.f32 %v2625_v21, %v426_v17  ;;  %v859_v26 = vadd.f32 %v2673_v22, %v442_v19 }
 0x14c   : > { %v2627_v28 = vpop.f32.mrf.mxu0  ;;  %v2675_v30 = vpop.f32.mrf.mxu1 }
 0x14d   : > { %875 = vst [vmem:[#allocation2 + $0x18] sm:$0xff] %v843_v25  ;;  %891 = vst [vmem:[#allocation2 + $0xc8] sm:$0xff] %v859_v26  ;;  %v2628_v31 = vadd.f32 %v2627_v28, %v2626_v23  ;;  %v2676_v32 = vadd.f32 %v2675_v30, %v2674_v24  ;;  %v433_v23 = vld [vmem:[#allocation2 + $0xe8] sm:$0xff]  ;;  %v449_v25 = vld [vmem:[#allocation2 + $0x10] sm:$0xff] }
 0x14e   : > { %v2629_v33 = vpop.f32.mrf.mxu0  ;;  %v2677_v34 = vpop.f32.mrf.mxu1 }
 0x14f   : > { %v844_v35 = vadd.f32 %v2628_v31, %v427_v27  ;;  %v860_v36 = vadd.f32 %v2676_v32, %v443_v29 }
 0x150   : > { %v2630_v38 = vpop.f32.mrf.mxu0  ;;  %v2678_v40 = vpop.f32.mrf.mxu1 }
 0x151   : > { %876 = vst [vmem:[#allocation2 + $0x50] sm:$0xff] %v844_v35  ;;  %892 = vst [vmem:[#allocation2 + $0xe0] sm:$0xff] %v860_v36  ;;  %v2631_v41 = vadd.f32 %v2630_v38, %v2629_v33  ;;  %v2679_v42 = vadd.f32 %v2678_v40, %v2677_v34  ;;  %v434_v33 = vld [vmem:[#allocation2 + $0xb8] sm:$0xff]  ;;  %v450_v35 = vld [vmem:[#allocation2 + $0x28] sm:$0xff] }
 0x152   : > { %v2632_v43 = vpop.f32.mrf.mxu0  ;;  %v2680_v44 = vpop.f32.mrf.mxu1 }
 0x153   : > { %v845_v45 = vadd.f32 %v2631_v41, %v428_v37  ;;  %v861_v46 = vadd.f32 %v2679_v42, %v444_v39 }
 0x154   : > { %v2633_v48 = vpop.f32.mrf.mxu0  ;;  %v2681_v50 = vpop.f32.mrf.mxu1 }
 0x155   : > { %877 = vst [vmem:[#allocation2 + $0x68] sm:$0xff] %v845_v45  ;;  %893 = vst [vmem:[#allocation2 + $0x90] sm:$0xff] %v861_v46  ;;  %v2634_v51 = vadd.f32 %v2633_v48, %v2632_v43  ;;  %v2682_v52 = vadd.f32 %v2681_v50, %v2680_v44  ;;  %v435_v43 = vld [vmem:[#allocation2 + $0x60] sm:$0xff] }
 0x156   : > { %v2635_v53 = vpop.f32.mrf.mxu0  ;;  %v2683_v54 = vpop.f32.mrf.mxu1  ;;  %v451_v45 = vld [vmem:[#allocation2 + $0xa0] sm:$0xff] }
 0x157   : > { %v846_v55 = vadd.f32 %v2634_v51, %v429_v47  ;;  %v862_v56 = vadd.f32 %v2682_v52, %v445_v49 }
 0x158   : > { %v2636_v58 = vpop.f32.mrf.mxu0  ;;  %v2684_v60 = vpop.f32.mrf.mxu1 }
 0x159   : > { %878 = vst [vmem:[#allocation2 + $0x30] sm:$0xff] %v846_v55  ;;  %894 = vst [vmem:[#allocation2 + $0x70] sm:$0xff] %v862_v56  ;;  %v2637_v61 = vadd.f32 %v2636_v58, %v2635_v53  ;;  %v2685_v62 = vadd.f32 %v2684_v60, %v2683_v54  ;;  %v436_v53 = vld [vmem:[#allocation2 + $0xf0] sm:$0xff]  ;;  %v452_v55 = vld [vmem:[#allocation2 + $0xf8] sm:$0xff] }
 0x15a   : > { %v2638_v63 = vpop.f32.mrf.mxu0  ;;  %v2686_v0 = vpop.f32.mrf.mxu1 }
 0x15b   : > { %v847_v1 = vadd.f32 %v2637_v61, %v430_v57  ;;  %v863_v2 = vadd.f32 %v2685_v62, %v446_v59 }
 0x15c   : > { %v2639_v4 = vpop.f32.mrf.mxu0  ;;  %v2687_v6 = vpop.f32.mrf.mxu1 }
 0x15d   : > { %879 = vst [vmem:[#allocation2 + $0x48] sm:$0xff] %v847_v1  ;;  %895 = vst [vmem:[#allocation2 + $0xc0] sm:$0xff] %v863_v2  ;;  %v2640_v7 = vadd.f32 %v2639_v4, %v2638_v63  ;;  %v2688_v8 = vadd.f32 %v2687_v6, %v2686_v0  ;;  %v437_v63 = vld [vmem:[#allocation2 + $0x8] sm:$0xff]  ;;  %v453_v1 = vld [vmem:[#allocation2 + $0x20] sm:$0xff] }
 0x15e   : > { %v2641_v9 = vpop.f32.mrf.mxu0  ;;  %v2689_v10 = vpop.f32.mrf.mxu1 }
 0x15f   : > { %v848_v11 = vadd.f32 %v2640_v7, %v431_v3  ;;  %v864_v12 = vadd.f32 %v2688_v8, %v447_v5 }
 0x160   : > { %v2642_v14 = vpop.f32.mrf.mxu0  ;;  %v2690_v16 = vpop.f32.mrf.mxu1 }
 0x161   : > { %880 = vst [vmem:[#allocation2 + $0x80] sm:$0xff] %v848_v11  ;;  %896 = vst [vmem:[#allocation2 + $0xa8] sm:$0xff] %v864_v12  ;;  %v2643_v17 = vadd.f32 %v2642_v14, %v2641_v9  ;;  %v2691_v18 = vadd.f32 %v2690_v16, %v2689_v10  ;;  %v438_v9 = vld [vmem:[#allocation2 + $0x78] sm:$0xff] }
 0x162   : > { %v2644_v19 = vpop.f32.mrf.mxu0  ;;  %v2692_v20 = vpop.f32.mrf.mxu1  ;;  %v454_v11 = vld [vmem:[#allocation2 + $0x98] sm:$0xff] }
 0x163   : > { %v849_v21 = vadd.f32 %v2643_v17, %v432_v13  ;;  %v865_v22 = vadd.f32 %v2691_v18, %v448_v15 }
 0x164   : > { %v2645_v24 = vpop.f32.mrf.mxu0  ;;  %v2693_v26 = vpop.f32.mrf.mxu1 }
 0x165   : > { %881 = vst [vmem:[#allocation2 + $0x88] sm:$0xff] %v849_v21  ;;  %897 = vst [vmem:[#allocation2 + $0xd0] sm:$0xff] %v865_v22  ;;  %v2646_v27 = vadd.f32 %v2645_v24, %v2644_v19  ;;  %v2694_v28 = vadd.f32 %v2693_v26, %v2692_v20 }
 0x166   : > { %v2647_v29 = vpop.f32.mrf.mxu0  ;;  %v2695_v30 = vpop.f32.mrf.mxu1 }
 0x167   : > { %v850_v31 = vadd.f32 %v2646_v27, %v433_v23  ;;  %v866_v32 = vadd.f32 %v2694_v28, %v449_v25 }
 0x168   : > { %v2648_v34 = vpop.f32.mrf.mxu0  ;;  %v2696_v36 = vpop.f32.mrf.mxu1 }
 0x169   : > { %882 = vst [vmem:[#allocation2 + $0xe8] sm:$0xff] %v850_v31  ;;  %898 = vst [vmem:[#allocation2 + $0x10] sm:$0xff] %v866_v32  ;;  %v2649_v37 = vadd.f32 %v2648_v34, %v2647_v29  ;;  %v2697_v38 = vadd.f32 %v2696_v36, %v2695_v30 }
 0x16a   : > { %v2650_v39 = vpop.f32.mrf.mxu0  ;;  %v2698_v40 = vpop.f32.mrf.mxu1 }
 0x16b   : > { %v851_v41 = vadd.f32 %v2649_v37, %v434_v33  ;;  %v867_v42 = vadd.f32 %v2697_v38, %v450_v35 }
 0x16c   : > { %v2651_v44 = vpop.f32.mrf.mxu0  ;;  %v2699_v46 = vpop.f32.mrf.mxu1 }
 0x16d   : > { %883 = vst [vmem:[#allocation2 + $0xb8] sm:$0xff] %v851_v41  ;;  %899 = vst [vmem:[#allocation2 + $0x28] sm:$0xff] %v867_v42  ;;  %v2652_v47 = vadd.f32 %v2651_v44, %v2650_v39  ;;  %v2700_v48 = vadd.f32 %v2699_v46, %v2698_v40 }
 0x16e   : > { %v2653_v49 = vpop.f32.mrf.mxu0  ;;  %v2701_v50 = vpop.f32.mrf.mxu1 }
 0x16f   : > { %v852_v51 = vadd.f32 %v2652_v47, %v435_v43  ;;  %v868_v52 = vadd.f32 %v2700_v48, %v451_v45 }
 0x170   : > { %v2654_v54 = vpop.f32.mrf.mxu0  ;;  %v2702_v56 = vpop.f32.mrf.mxu1 }
 0x171   : > { %884 = vst [vmem:[#allocation2 + $0x60] sm:$0xff] %v852_v51  ;;  %900 = vst [vmem:[#allocation2 + $0xa0] sm:$0xff] %v868_v52  ;;  %v2655_v57 = vadd.f32 %v2654_v54, %v2653_v49  ;;  %v2703_v58 = vadd.f32 %v2702_v56, %v2701_v50 }
 0x172   : > { %v2656_v59 = vpop.f32.mrf.mxu0  ;;  %v2704_v60 = vpop.f32.mrf.mxu1 }
 0x173   : > { %v853_v61 = vadd.f32 %v2655_v57, %v436_v53  ;;  %v869_v62 = vadd.f32 %v2703_v58, %v452_v55 }
 0x174   : > { %v2657_v0 = vpop.f32.mrf.mxu0  ;;  %v2705_v2 = vpop.f32.mrf.mxu1 }
 0x175   : > { %885 = vst [vmem:[#allocation2 + $0xf0] sm:$0xff] %v853_v61  ;;  %901 = vst [vmem:[#allocation2 + $0xf8] sm:$0xff] %v869_v62  ;;  %v2658_v3 = vadd.f32 %v2657_v0, %v2656_v59  ;;  %v2706_v4 = vadd.f32 %v2705_v2, %v2704_v60 }
 0x176   : > { %v2659_v5 = vpop.f32.mrf.mxu0  ;;  %v2707_v6 = vpop.f32.mrf.mxu1 }
 0x177   : > { %v854_v7 = vadd.f32 %v2658_v3, %v437_v63  ;;  %v870_v8 = vadd.f32 %v2706_v4, %v453_v1 }
 0x178   : > { %v2660_v10 = vpop.f32.mrf.mxu0  ;;  %v2708_v12 = vpop.f32.mrf.mxu1 }
 0x179   : > { %886 = vst [vmem:[#allocation2 + $0x8] sm:$0xff] %v854_v7  ;;  %902 = vst [vmem:[#allocation2 + $0x20] sm:$0xff] %v870_v8  ;;  %v2661_v13 = vadd.f32 %v2660_v10, %v2659_v5  ;;  %v2709_v14 = vadd.f32 %v2708_v12, %v2707_v6  ;;  %907 = sbr.rel (%p2593_p13) target bundleno = 1221 (0x4c5), region = 67 }
 0x17b   : > { %v855_v15 = vadd.f32 %v2661_v13, %v438_v9  ;;  %v871_v16 = vadd.f32 %v2709_v14, %v454_v11 }
 0x17d   : > { %887 = vst [vmem:[#allocation2 + $0x78] sm:$0xff] %v855_v15  ;;  %903 = vst [vmem:[#allocation2 + $0x98] sm:$0xff] %v871_v16 }
 0x17e   : > { %v986_v17 = vld [vmem:[%s4736_s2 + $0x170] sm:$0xff]  ;;  %v985_v18 = vld [vmem:[%s4736_s2 + $0x168] sm:$0xff]  ;;  %v983_v19 = vld [vmem:[%s4736_s2 + $0x158] sm:$0xff]  ;;  %v3018_v52 = vmov 0.0  }
 0x17f   : > { %988 = vmatprep.subr.mxu0 %v986_v17  ;;  %2854 = vmatprep.subr.mxu1 %v986_v17  ;;  %v982_v20 = vld [vmem:[%s4736_s2 + $0x150] sm:$0xff]  ;;  %v980_v21 = vld [vmem:[%s4736_s2 + $0x140] sm:$0xff]  ;;  %v979_v22 = vld [vmem:[%s4736_s2 + $0x138] sm:$0xff] }
 0x180   : > { %989 = vmatpush1.msra.mxu0 %v985_v18  ;;  %2870 = vmatpush1.msra.mxu1 %v985_v18  ;;  %v977_v23 = vld [vmem:[%s4736_s2 + $0x128] sm:$0xff]  ;;  %v976_v24 = vld [vmem:[%s4736_s2 + $0x120] sm:$0xff]  ;;  %v974_v25 = vld [vmem:[%s4736_s2 + $0x110] sm:$0xff] }
 0x181   : > { %990 = vmatprep.subr.mxu0 %v983_v19  ;;  %2855 = vmatprep.subr.mxu1 %v983_v19  ;;  %v973_v26 = vld [vmem:[%s4736_s2 + $0x108] sm:$0xff]  ;;  %v971_v27 = vld [vmem:[%s4736_s2 + $0xf8] sm:$0xff]  ;;  %v970_v28 = vld [vmem:[%s4736_s2 + $0xf0] sm:$0xff] }
 0x182   : > { %991 = vmatpush1.msra.mxu0 %v982_v20  ;;  %2871 = vmatpush1.msra.mxu1 %v982_v20  ;;  %v968_v29 = vld [vmem:[%s4736_s2 + $0xe0] sm:$0xff]  ;;  %v967_v30 = vld [vmem:[%s4736_s2 + $0xd8] sm:$0xff]  ;;  %v965_v31 = vld [vmem:[%s4736_s2 + $0xc8] sm:$0xff] }
 0x183   : > { %992 = vmatprep.subr.mxu0 %v980_v21  ;;  %2856 = vmatprep.subr.mxu1 %v980_v21  ;;  %v964_v32 = vld [vmem:[%s4736_s2 + $0xc0] sm:$0xff]  ;;  %v962_v33 = vld [vmem:[%s4736_s2 + $0xb0] sm:$0xff]  ;;  %v961_v34 = vld [vmem:[%s4736_s2 + $0xa8] sm:$0xff] }
 0x184   : > { %993 = vmatpush1.msra.mxu0 %v979_v22  ;;  %2872 = vmatpush1.msra.mxu1 %v979_v22  ;;  %v959_v35 = vld [vmem:[%s4736_s2 + $0x98] sm:$0xff]  ;;  %v958_v36 = vld [vmem:[%s4736_s2 + $0x90] sm:$0xff]  ;;  %v956_v37 = vld [vmem:[%s4736_s2 + $0x80] sm:$0xff] }
 0x185   : > { %994 = vmatprep.subr.mxu0 %v977_v23  ;;  %2857 = vmatprep.subr.mxu1 %v977_v23  ;;  %v955_v38 = vld [vmem:[%s4736_s2 + $0x78] sm:$0xff]  ;;  %v953_v39 = vld [vmem:[%s4736_s2 + $0x68] sm:$0xff]  ;;  %v952_v40 = vld [vmem:[%s4736_s2 + $0x60] sm:$0xff] }
 0x186   : > { %995 = vmatpush1.msra.mxu0 %v976_v24  ;;  %2873 = vmatpush1.msra.mxu1 %v976_v24  ;;  %v950_v41 = vld [vmem:[%s4736_s2 + $0x50] sm:$0xff]  ;;  %v949_v42 = vld [vmem:[%s4736_s2 + $0x48] sm:$0xff]  ;;  %v947_v43 = vld [vmem:[%s4736_s2 + $0x38] sm:$0xff] }
 0x187   : > { %996 = vmatprep.subr.mxu0 %v974_v25  ;;  %2858 = vmatprep.subr.mxu1 %v974_v25  ;;  %v946_v44 = vld [vmem:[%s4736_s2 + $0x30] sm:$0xff]  ;;  %v944_v45 = vld [vmem:[%s4736_s2 + $0x20] sm:$0xff]  ;;  %v943_v46 = vld [vmem:[%s4736_s2 + $0x18] sm:$0xff] }
 0x188   : > { %997 = vmatpush1.msra.mxu0 %v973_v26  ;;  %2874 = vmatpush1.msra.mxu1 %v973_v26  ;;  %v941_v47 = vld [vmem:[%s4736_s2 + $0x8] sm:$0xff]  ;;  %v940_v48 = vld [vmem:[%s4736_s2] sm:$0xff]  ;;  %v3431_v49 = vld [vmem:[#allocation2 + $0xb0] sm:$0xff] }
 0x189   : > { %998 = vmatprep.subr.mxu0 %v971_v27  ;;  %2859 = vmatprep.subr.mxu1 %v971_v27  ;;  %v3433_v50 = vld [vmem:[#allocation2 + $0xa8] sm:$0xff]  ;;  %v987_v51 = vld [vmem:[%s4736_s2 + $0x178] sm:$0xff]  ;;  %v984_v53 = vld [vmem:[%s4736_s2 + $0x160] sm:$0xff] }
 0x18a   : > { %999 = vmatpush1.msra.mxu0 %v970_v28  ;;  %2875 = vmatpush1.msra.mxu1 %v970_v28  ;;  %v3446_v54 = vld [vmem:[#allocation2] sm:$0xff]  ;;  %v3449_v55 = vld [vmem:[#allocation2 + $0xd0] sm:$0xff]  ;;  %v981_v56 = vld [vmem:[%s4736_s2 + $0x148] sm:$0xff] }
 0x18b   : > { %1000 = vmatprep.subr.mxu0 %v968_v29  ;;  %2860 = vmatprep.subr.mxu1 %v968_v29  ;;  %v978_v57 = vld [vmem:[%s4736_s2 + $0x130] sm:$0xff]  ;;  %v3459_v58 = vld [vmem:[#allocation2 + $0xd8] sm:$0xff]  ;;  %v972_v61 = vld [vmem:[%s4736_s2 + $0x100] sm:$0xff] }
 0x18c   : > { %1001 = vmatpush1.msra.mxu0 %v967_v30  ;;  %2876 = vmatpush1.msra.mxu1 %v967_v30  ;;  %v3462_v59 = vld [vmem:[#allocation2 + $0x10] sm:$0xff]  ;;  %v975_v60 = vld [vmem:[%s4736_s2 + $0x118] sm:$0xff]  ;;  %v3476_v63 = vld [vmem:[#allocation2 + $0x28] sm:$0xff] }
 0x18d   : > { %1002 = vmatprep.subr.mxu0 %v965_v31  ;;  %2861 = vmatprep.subr.mxu1 %v965_v31  ;;  %v3473_v62 = vld [vmem:[#allocation2 + $0x18] sm:$0xff]  ;;  %v969_v0 = vld [vmem:[%s4736_s2 + $0xe8] sm:$0xff]  ;;  %v966_v1 = vld [vmem:[%s4736_s2 + $0xd0] sm:$0xff] }
 0x18e   : > { %1003 = vmatpush1.msra.mxu0 %v964_v32  ;;  %2877 = vmatpush1.msra.mxu1 %v964_v32  ;;  %v3487_v2 = vld [vmem:[#allocation2 + $0x50] sm:$0xff]  ;;  %v3490_v3 = vld [vmem:[#allocation2 + $0xa0] sm:$0xff]  ;;  %v963_v4 = vld [vmem:[%s4736_s2 + $0xb8] sm:$0xff] }
 0x18f   : > { %1004 = vmatprep.subr.mxu0 %v962_v33  ;;  %2862 = vmatprep.subr.mxu1 %v962_v33  ;;  %v960_v5 = vld [vmem:[%s4736_s2 + $0xa0] sm:$0xff]  ;;  %v3501_v6 = vld [vmem:[#allocation2 + $0x68] sm:$0xff]  ;;  %v3504_v7 = vld [vmem:[#allocation2 + $0xf8] sm:$0xff] }
 0x190   : > { %1005 = vmatpush1.msra.mxu0 %v961_v34  ;;  %2878 = vmatpush1.msra.mxu1 %v961_v34  ;;  %v957_v8 = vld [vmem:[%s4736_s2 + $0x88] sm:$0xff]  ;;  %v954_v9 = vld [vmem:[%s4736_s2 + $0x70] sm:$0xff]  ;;  %v3518_v11 = vld [vmem:[#allocation2 + $0x20] sm:$0xff] }
 0x191   : > { %1006 = vmatprep.subr.mxu0 %v959_v35  ;;  %2863 = vmatprep.subr.mxu1 %v959_v35  ;;  %v3515_v10 = vld [vmem:[#allocation2 + $0x30] sm:$0xff]  ;;  %v951_v12 = vld [vmem:[%s4736_s2 + $0x58] sm:$0xff]  ;;  %v948_v13 = vld [vmem:[%s4736_s2 + $0x40] sm:$0xff] }
 0x192   : > { %1007 = vmatpush1.msra.mxu0 %v958_v36  ;;  %2879 = vmatpush1.msra.mxu1 %v958_v36  ;;  %v3529_v14 = vld [vmem:[#allocation2 + $0x48] sm:$0xff]  ;;  %v3532_v15 = vld [vmem:[#allocation2 + $0x98] sm:$0xff]  ;;  %v942_v17 = vld [vmem:[%s4736_s2 + $0x10] sm:$0xff] }
 0x193   : > { %1008 = vmatprep.subr.mxu0 %v956_v37  ;;  %2864 = vmatprep.subr.mxu1 %v956_v37  ;;  %v945_v16 = vld [vmem:[%s4736_s2 + $0x28] sm:$0xff]  ;;  %v3543_v18 = vld [vmem:[#allocation2 + $0x80] sm:$0xff]  ;;  %v3562_v21 = vld [vmem:[#allocation2 + $0xb8] sm:$0xff] }
 0x194   : > { %1009 = vmatpush1.msra.mxu0 %v955_v38  ;;  %2880 = vmatpush1.msra.mxu1 %v955_v38  ;;  %v3550_v19 = vld [vmem:[#allocation2 + $0x88] sm:$0xff]  ;;  %v3568_v22 = vld [vmem:[#allocation2 + $0x60] sm:$0xff]  ;;  %v3574_v23 = vld [vmem:[#allocation2 + $0xf0] sm:$0xff] }
 0x195   : > { %1010 = vmatprep.subr.mxu0 %v953_v39  ;;  %2865 = vmatprep.subr.mxu1 %v953_v39  ;;  %v3556_v20 = vld [vmem:[#allocation2 + $0xe8] sm:$0xff]  ;;  %v3586_v25 = vld [vmem:[#allocation2 + $0x78] sm:$0xff]  ;;  %v3597_v28 = vld [vmem:[#allocation2 + $0x40] sm:$0xff] }
 0x196   : > { %1011 = vmatpush1.msra.mxu0 %v952_v40  ;;  %2881 = vmatpush1.msra.mxu1 %v952_v40  ;;  %v3580_v24 = vld [vmem:[#allocation2 + $0x8] sm:$0xff]  ;;  %v3589_v26 = vld [vmem:[#allocation2 + $0x38] sm:$0xff]  ;;  %v3605_v30 = vld [vmem:[#allocation2 + $0xe0] sm:$0xff] }
 0x197   : > { %1012 = vmatprep.subr.mxu0 %v950_v41  ;;  %2866 = vmatprep.subr.mxu1 %v950_v41  ;;  %v3595_v27 = vld [vmem:[#allocation2 + $0x58] sm:$0xff]  ;;  %v3603_v29 = vld [vmem:[#allocation2 + $0xc8] sm:$0xff]  ;;  %v3611_v31 = vld [vmem:[#allocation2 + $0x90] sm:$0xff] }
 0x198   : > { %1013 = vmatpush1.msra.mxu0 %v949_v42  ;;  %2882 = vmatpush1.msra.mxu1 %v949_v42  ;;  %v3613_v32 = vld [vmem:[#allocation2 + $0x70] sm:$0xff]  ;;  %v3619_v33 = vld [vmem:[#allocation2 + $0xc0] sm:$0xff] }
 0x199   : > { %1014 = vmatprep.subr.mxu0 %v947_v43  ;;  %2867 = vmatprep.subr.mxu1 %v947_v43 }
 0x19a   : > { %1015 = vmatpush1.msra.mxu0 %v946_v44  ;;  %2883 = vmatpush1.msra.mxu1 %v946_v44 }
 0x19b   : > { %1016 = vmatprep.subr.mxu0 %v944_v45  ;;  %2868 = vmatprep.subr.mxu1 %v944_v45 }
 0x19c   : > { %1017 = vmatpush1.msra.mxu0 %v943_v46  ;;  %2884 = vmatpush1.msra.mxu1 %v943_v46 }
 0x19d   : > { %1018 = vmatprep.subr.mxu0 %v941_v47  ;;  %2869 = vmatprep.subr.mxu1 %v941_v47 }
 0x19e   : > { %1019 = vmatpush1.msra.mxu0 %v940_v48  ;;  %2885 = vmatpush1.msra.mxu1 %v940_v48 }
 0x19f   : > { %1052 = vmatprep.mubr.f32.mxu0 %v3018_v52  ;;  %1196 = vmatprep.mubr.f32.mxu1 %v3018_v52 }
 0x1a0   : > { %1053 = vmatmul.mubr.f32.vlgmr.msra.gmra.mxu0 %v3431_v49  ;;  %1197 = vmatmul.mubr.f32.vlgmr.msra.gmra.mxu1 %v3433_v50 }
 0x1a1   : > { %2758 = vmatprep.subr.mxu1 %v987_v51  ;;  %1058 = vmatprep.mubr.f32.mxu0 %v3018_v52 }
 0x1a2   : > { %2759 = vmatpush3.msra.mxu1 %v987_v51  ;;  %1202 = vmatprep.mubr.f32.mxu1 %v3018_v52 }
 0x1a3   : > { %2760 = vmatprep.subr.mxu1 %v984_v53 }
 0x1a4   : > { %2761 = vmatpush3.msra.mxu1 %v984_v53  ;;  %1059 = vmatmul.mubr.f32.gmra.mxu0 %v3446_v54 }
 0x1a5   : > { %1203 = vmatmul.mubr.f32.gmra.mxu1 %v3449_v55  ;;  %2762 = vmatprep.subr.mxu1 %v981_v56 }
 0x1a6   : > { %2763 = vmatpush3.msra.mxu1 %v981_v56  ;;  %1064 = vmatprep.mubr.f32.mxu0 %v3018_v52 }
 0x1a7   : > { %2764 = vmatprep.subr.mxu1 %v978_v57  ;;  %1208 = vmatprep.mubr.f32.mxu1 %v3018_v52 }
 0x1a8   : > { %2765 = vmatpush3.msra.mxu1 %v978_v57  ;;  %1065 = vmatmul.mubr.f32.gmra.mxu0 %v3459_v58 }
 0x1a9   : > { %1209 = vmatmul.mubr.f32.gmra.mxu1 %v3462_v59  ;;  %2766 = vmatprep.subr.mxu1 %v975_v60 }
 0x1aa   : > { %2767 = vmatpush3.msra.mxu1 %v975_v60  ;;  %1070 = vmatprep.mubr.f32.mxu0 %v3018_v52 }
 0x1ab   : > { %2768 = vmatprep.subr.mxu1 %v972_v61  ;;  %1214 = vmatprep.mubr.f32.mxu1 %v3018_v52 }
 0x1ac   : > { %2769 = vmatpush3.msra.mxu1 %v972_v61  ;;  %1071 = vmatmul.mubr.f32.gmra.mxu0 %v3473_v62 }
 0x1ad   : > { %1215 = vmatmul.mubr.f32.gmra.mxu1 %v3476_v63  ;;  %2770 = vmatprep.subr.mxu1 %v969_v0 }
 0x1ae   : > { %2771 = vmatpush3.msra.mxu1 %v969_v0  ;;  %1076 = vmatprep.mubr.f32.mxu0 %v3018_v52 }
 0x1af   : > { %2772 = vmatprep.subr.mxu1 %v966_v1  ;;  %1220 = vmatprep.mubr.f32.mxu1 %v3018_v52 }
 0x1b0   : > { %2773 = vmatpush3.msra.mxu1 %v966_v1  ;;  %1077 = vmatmul.mubr.f32.gmra.mxu0 %v3487_v2 }
 0x1b1   : > { %1221 = vmatmul.mubr.f32.gmra.mxu1 %v3490_v3  ;;  %2774 = vmatprep.subr.mxu1 %v963_v4 }
 0x1b2   : > { %2775 = vmatpush3.msra.mxu1 %v963_v4  ;;  %1082 = vmatprep.mubr.f32.mxu0 %v3018_v52 }
 0x1b3   : > { %2776 = vmatprep.subr.mxu1 %v960_v5  ;;  %1226 = vmatprep.mubr.f32.mxu1 %v3018_v52 }
 0x1b4   : > { %2777 = vmatpush3.msra.mxu1 %v960_v5  ;;  %1083 = vmatmul.mubr.f32.gmra.mxu0 %v3501_v6 }
 0x1b5   : > { %1227 = vmatmul.mubr.f32.gmra.mxu1 %v3504_v7  ;;  %2778 = vmatprep.subr.mxu1 %v957_v8 }
 0x1b6   : > { %2779 = vmatpush3.msra.mxu1 %v957_v8  ;;  %1088 = vmatprep.mubr.f32.mxu0 %v3018_v52 }
 0x1b7   : > { %2780 = vmatprep.subr.mxu1 %v954_v9  ;;  %1232 = vmatprep.mubr.f32.mxu1 %v3018_v52 }
 0x1b8   : > { %2781 = vmatpush3.msra.mxu1 %v954_v9  ;;  %1089 = vmatmul.mubr.f32.gmra.mxu0 %v3515_v10 }
 0x1b9   : > { %1233 = vmatmul.mubr.f32.gmra.mxu1 %v3518_v11  ;;  %2782 = vmatprep.subr.mxu1 %v951_v12 }
 0x1ba   : > { %2783 = vmatpush3.msra.mxu1 %v951_v12  ;;  %1094 = vmatprep.mubr.f32.mxu0 %v3018_v52 }
 0x1bb   : > { %2784 = vmatprep.subr.mxu1 %v948_v13  ;;  %1238 = vmatprep.mubr.f32.mxu1 %v3018_v52 }
 0x1bc   : > { %2785 = vmatpush3.msra.mxu1 %v948_v13  ;;  %1095 = vmatmul.mubr.f32.gmra.mxu0 %v3529_v14 }
 0x1bd   : > { %1239 = vmatmul.mubr.f32.gmra.mxu1 %v3532_v15  ;;  %2786 = vmatprep.subr.mxu1 %v945_v16 }
 0x1be   : > { %2787 = vmatpush3.msra.mxu1 %v945_v16  ;;  %1100 = vmatprep.mubr.f32.mxu0 %v3018_v52 }
 0x1bf   : > { %2788 = vmatprep.subr.mxu1 %v942_v17  ;;  %2790 = vmatprep.mubr.f32.mxu1 %v3431_v49 }
 0x1c0   : > { %2789 = vmatpush3.msra.mxu1 %v942_v17  ;;  %1101 = vmatmul.mubr.f32.gmra.mxu0 %v3543_v18 }
 0x1c1   : > { %2791 = vmatmul.mubr.f32.vlgmr.msra.gmra.mxu1 %v3446_v54  ;;  %1106 = vmatprep.mubr.f32.mxu0 %v3018_v52 }
 0x1c2   : > { %2793 = vmatprep.mubr.f32.mxu1 %v3459_v58 }
 0x1c4   : > { %1107 = vmatmul.mubr.f32.gmra.mxu0 %v3550_v19 }
 0x1c5   : > { %2794 = vmatmul.mubr.f32.gmra.mxu1 %v3473_v62  ;;  %1112 = vmatprep.mubr.f32.mxu0 %v3018_v52 }
 0x1c6   : > { %2796 = vmatprep.mubr.f32.mxu1 %v3487_v2 }
 0x1c8   : > { %1113 = vmatmul.mubr.f32.gmra.mxu0 %v3556_v20 }
 0x1c9   : > { %2797 = vmatmul.mubr.f32.gmra.mxu1 %v3501_v6  ;;  %1118 = vmatprep.mubr.f32.mxu0 %v3018_v52 }
 0x1ca   : > { %2799 = vmatprep.mubr.f32.mxu1 %v3515_v10 }
 0x1cc   : > { %1119 = vmatmul.mubr.f32.gmra.mxu0 %v3562_v21 }
 0x1cd   : > { %2800 = vmatmul.mubr.f32.gmra.mxu1 %v3529_v14  ;;  %1124 = vmatprep.mubr.f32.mxu0 %v3018_v52 }
 0x1ce   : > { %2802 = vmatprep.mubr.f32.mxu1 %v3543_v18 }
 0x1d0   : > { %1125 = vmatmul.mubr.f32.gmra.mxu0 %v3568_v22 }
 0x1d1   : > { %2803 = vmatmul.mubr.f32.gmra.mxu1 %v3550_v19  ;;  %1130 = vmatprep.mubr.f32.mxu0 %v3018_v52 }
 0x1d2   : > { %2805 = vmatprep.mubr.f32.mxu1 %v3556_v20 }
 0x1d4   : > { %1131 = vmatmul.mubr.f32.gmra.mxu0 %v3574_v23 }
 0x1d5   : > { %2806 = vmatmul.mubr.f32.gmra.mxu1 %v3562_v21  ;;  %1136 = vmatprep.mubr.f32.mxu0 %v3018_v52 }
 0x1d6   : > { %2808 = vmatprep.mubr.f32.mxu1 %v3568_v22 }
 0x1d8   : > { %1137 = vmatmul.mubr.f32.gmra.mxu0 %v3580_v24 }
 0x1d9   : > { %2809 = vmatmul.mubr.f32.gmra.mxu1 %v3574_v23  ;;  %1142 = vmatprep.mubr.f32.mxu0 %v3018_v52 }
 0x1da   : > { %2811 = vmatprep.mubr.f32.mxu1 %v3580_v24 }
 0x1dc   : > { %1143 = vmatmul.mubr.f32.gmra.mxu0 %v3586_v25 }
 0x1dd   : > { %2812 = vmatmul.mubr.f32.gmra.mxu1 %v3586_v25  ;;  %1148 = vmatprep.mubr.f32.mxu0 %v3018_v52 }
 0x1de   : > { %2814 = vmatprep.mubr.f32.mxu1 %v3589_v26 }
 0x1e0   : > { %1149 = vmatmul.mubr.f32.gmra.mxu0 %v3589_v26 }
 0x1e1   : > { %2815 = vmatmul.mubr.f32.gmra.mxu1 %v3595_v27  ;;  %1154 = vmatprep.mubr.f32.mxu0 %v3018_v52 }
 0x1e2   : > { %2817 = vmatprep.mubr.f32.mxu1 %v3597_v28 }
 0x1e4   : > { %1155 = vmatmul.mubr.f32.gmra.mxu0 %v3595_v27 }
 0x1e5   : > { %2818 = vmatmul.mubr.f32.gmra.mxu1 %v3603_v29  ;;  %1160 = vmatprep.mubr.f32.mxu0 %v3018_v52 }
 0x1e6   : > { %2820 = vmatprep.mubr.f32.mxu1 %v3605_v30 }
 0x1e8   : > { %1161 = vmatmul.mubr.f32.gmra.mxu0 %v3597_v28 }
 0x1e9   : > { %2821 = vmatmul.mubr.f32.gmra.mxu1 %v3611_v31  ;;  %1166 = vmatprep.mubr.f32.mxu0 %v3018_v52 }
 0x1ea   : > { %2823 = vmatprep.mubr.f32.mxu1 %v3613_v32 }
 0x1ec   : > { %1167 = vmatmul.mubr.f32.gmra.mxu0 %v3603_v29 }
 0x1ed   : > { %2824 = vmatmul.mubr.f32.gmra.mxu1 %v3619_v33  ;;  %1172 = vmatprep.mubr.f32.mxu0 %v3018_v52 }
 0x1ee   : > { %2826 = vmatprep.mubr.f32.mxu1 %v3433_v50 }
 0x1f0   : > { %1173 = vmatmul.mubr.f32.gmra.mxu0 %v3605_v30 }
 0x1f1   : > { %2827 = vmatmul.mubr.f32.gmra.mxu1 %v3449_v55  ;;  %1178 = vmatprep.mubr.f32.mxu0 %v3018_v52 }
 0x1f2   : > { %2829 = vmatprep.mubr.f32.mxu1 %v3462_v59 }
 0x1f4   : > { %1179 = vmatmul.mubr.f32.gmra.mxu0 %v3611_v31 }
 0x1f5   : > { %2830 = vmatmul.mubr.f32.gmra.mxu1 %v3476_v63  ;;  %1184 = vmatprep.mubr.f32.mxu0 %v3018_v52 }
 0x1f6   : > { %2832 = vmatprep.mubr.f32.mxu1 %v3490_v3 }
 0x1f8   : > { %1185 = vmatmul.mubr.f32.gmra.mxu0 %v3613_v32 }
 0x1f9   : > { %2833 = vmatmul.mubr.f32.gmra.mxu1 %v3504_v7  ;;  %1190 = vmatprep.mubr.f32.mxu0 %v3018_v52 }
 0x1fa   : > { %2835 = vmatprep.mubr.f32.mxu1 %v3518_v11 }
 0x1fc   : > { %1191 = vmatmul.mubr.f32.gmra.mxu0 %v3619_v33 }
 0x1fd   : > { %2836 = vmatmul.mubr.f32.gmra.mxu1 %v3532_v15 }
 0x260   : > { %v1054_v34 = vpop.f32.mrf.mxu0  ;;  %v1198_v35 = vpop.f32.mrf.mxu1 }
 0x261   : > { %v2081_v36 = vmul.f32 %v1054_v34, %v3431_v49  ;;  %v2105_v40 = vmul.f32 %v1198_v35, %v3433_v50 }
 0x262   : > { %v3640_v37 = vpop.f32.mrf.mxu0  ;;  %v3642_v38 = vpop.f32.mrf.mxu1 }
 0x263   : > { %4778 = vst [vmem:[#allocation4_spill] sm:$0xff] %v3642_v38  ;;  %2113 = vadd.xlane.f32.xlu1 %v2081_v36 }
 0x264   : > { %v1060_v39 = vpop.f32.mrf.mxu0 }
 0x265   : > { %v1204_v41 = vpop.f32.mrf.mxu1  ;;  %v2082_v42 = vmul.f32 %v1060_v39, %v3446_v54 }
 0x266   : > { %v3646_v43 = vpop.f32.mrf.mxu0  ;;  %v2106_v46 = vmul.f32 %v1204_v41, %v3449_v55 }
 0x267   : > { %v3648_v44 = vpop.f32.mrf.mxu1  ;;  %2161 = vadd.xlane.f32.xlu1 %v2105_v40  ;;  %2115 = vadd.xlane.f32.xlu0 %v2082_v42 }
 0x268   : > { %v1066_v45 = vpop.f32.mrf.mxu0 }
 0x269   : > { %v2083_v47 = vmul.f32 %v1066_v45, %v3459_v58  ;;  %v1210_v48 = vpop.f32.mrf.mxu1 }
 0x26a   : > { %v3652_v49 = vpop.f32.mrf.mxu0  ;;  %v2107_v52 = vmul.f32 %v1210_v48, %v3462_v59 }
 0x26b   : > { %v3654_v51 = vpop.f32.mrf.mxu1  ;;  %2163 = vadd.xlane.f32.xlu0 %v2106_v46  ;;  %2117 = vadd.xlane.f32.xlu1 %v2083_v47 }
 0x26c   : > { %4779 = vst [vmem:[#allocation5_spill] sm:$0xff] %v3654_v51  ;;  %v1072_v50 = vpop.f32.mrf.mxu0 }
 0x26d   : > { %v2084_v53 = vmul.f32 %v1072_v50, %v3473_v62  ;;  %v1216_v54 = vpop.f32.mrf.mxu1 }
 0x26e   : > { %v3658_v56 = vpop.f32.mrf.mxu0  ;;  %v2108_v58 = vmul.f32 %v1216_v54, %v3476_v63  ;;  %v1470_v63 = vlaneseq }
 0x26f   : > { %v3660_v57 = vpop.f32.mrf.mxu1  ;;  %2165 = vadd.xlane.f32.xlu1 %v2107_v52  ;;  %2119 = vadd.xlane.f32.xlu0 %v2084_v53 }
 0x270   : > { %4780 = vst [vmem:[#allocation6_spill] sm:$0xff] %v3660_v57  ;;  %v1078_v55 = vpop.f32.mrf.mxu0 }
 0x271   : > { %v2085_v60 = vmul.f32 %v1078_v55, %v3487_v2  ;;  %v1222_v61 = vpop.f32.mrf.mxu1 }
 0x272   : > { %v3664_v0 = vpop.f32.mrf.mxu0  ;;  %v2109_v62 = vmul.f32 %v1222_v61, %v3490_v3  ;;  %v3680_v3 = vand.u32 127, %v1470_v63 }
 0x273   : > { %v3666_v1 = vpop.f32.mrf.mxu1  ;;  %2167 = vadd.xlane.f32.xlu0 %v2108_v58  ;;  %2121 = vadd.xlane.f32.xlu1 %v2085_v60 }
 0x274   : > { %4781 = vst [vmem:[#allocation7_spill] sm:$0xff] %v3666_v1  ;;  %v1084_v59 = vpop.f32.mrf.mxu0  ;;  %vm1472_vm0 = vcmp.lt.s32.totalorder %v3680_v3, 16 }
 0x275   : > { %v2086_v4 = vmul.f32 %v1084_v59, %v3501_v6  ;;  %v1228_v5 = vpop.f32.mrf.mxu1 }
 0x276   : > { %v3670_v8 = vpop.f32.mrf.mxu0  ;;  %v2110_v12 = vmul.f32 %v1228_v5, %v3504_v7 }
 0x277   : > { %v3672_v9 = vpop.f32.mrf.mxu1  ;;  %2169 = vadd.xlane.f32.xlu1 %v2109_v62  ;;  %2123 = vadd.xlane.f32.xlu0 %v2086_v4 }
 0x278   : > { %4782 = vst [vmem:[#allocation8_spill] sm:$0xff] %v3672_v9  ;;  %v1090_v2 = vpop.f32.mrf.mxu0 }
 0x279   : > { %v2087_v13 = vmul.f32 %v1090_v2, %v3515_v10  ;;  %v1234_v15 = vpop.f32.mrf.mxu1 }
 0x27a   : > { %v3676_v16 = vpop.f32.mrf.mxu0  ;;  %v2111_v34 = vmul.f32 %v1234_v15, %v3518_v11 }
 0x27b   : > { %4783 = vst [vmem:[#allocation9_spill] sm:$0xff] %v3676_v16  ;;  %v3678_v17 = vpop.f32.mrf.mxu1  ;;  %2171 = vadd.xlane.f32.xlu0 %v2110_v12  ;;  %2125 = vadd.xlane.f32.xlu1 %v2087_v13 }
 0x27c   : > { %4784 = vst [vmem:[#allocation10_spill] sm:$0xff] %v3678_v17  ;;  %v1096_v6 = vpop.f32.mrf.mxu0 }
 0x27d   : > { %v2088_v35 = vmul.f32 %v1096_v6, %v3529_v14  ;;  %v3684_v36 = vpop.f32.mrf.mxu1 }
 0x27e   : > { %v3686_v39 = vpop.f32.mrf.mxu0 }
 0x27f   : > { %v3688_v7 = vpop.f32.mrf.mxu1  ;;  %2173 = vadd.xlane.f32.xlu1 %v2111_v34  ;;  %2127 = vadd.xlane.f32.xlu0 %v2088_v35 }
 0x280   : > { %4785 = vst [vmem:[#allocation11_spill] sm:$0xff] %v3688_v7  ;;  %v1102_v10 = vpop.f32.mrf.mxu0 }
 0x281   : > { %v2089_v40 = vmul.f32 %v1102_v10, %v3543_v18  ;;  %v2792_v41 = vpop.f32.mrf.mxu1 }
 0x282   : > { %v3694_v42 = vsel %vm1472_vm0, %v2792_v41, -inf  ;;  %v3696_v11 = vpop.f32.mrf.mxu0 }
 0x283   : > { %4786 = vst [vmem:[#allocation12_spill] sm:$0xff] %v3696_v11  ;;  %v1311_v14 = vpop.f32.mrf.mxu1  ;;  %1507 = vmax.xlane.f32.xlu0 %v3694_v42  ;;  %2129 = vadd.xlane.f32.xlu1 %v2089_v40 }
 0x284   : > { %v1108_v45 = vpop.f32.mrf.mxu0  ;;  %v3701_v47 = vsel %vm1472_vm0, %v1311_v14, -inf }
 0x285   : > { %v2795_v46 = vpop.f32.mrf.mxu1  ;;  %v2090_v50 = vmul.f32 %v1108_v45, %v3550_v19 }
 0x286   : > { %v3705_v18 = vsel %vm1472_vm0, %v2795_v46, -inf  ;;  %v3707_v48 = vpop.f32.mrf.mxu0 }
 0x287   : > { %v1321_v52 = vpop.f32.mrf.mxu1  ;;  %1505 = vmax.xlane.f32.xlu0 %v3701_v47  ;;  %1511 = vmax.xlane.f32.xlu1 %v3705_v18 }
 0x288   : > { %v1114_v53 = vpop.f32.mrf.mxu0  ;;  %v3714_v55 = vsel %vm1472_vm0, %v1321_v52, -inf }
 0x289   : > { %v2798_v54 = vpop.f32.mrf.mxu1  ;;  %v2091_v12 = vmul.f32 %v1114_v53, %v3556_v20 }
 0x28a   : > { %v3716_v58 = vpop.f32.mrf.mxu0  ;;  %v3721_v19 = vsel %vm1472_vm0, %v2798_v54, -inf }
 0x28b   : > { %4787 = vst [vmem:[#allocation13_spill] sm:$0xff] %v3716_v58  ;;  %v1331_v60 = vpop.f32.mrf.mxu1  ;;  %1509 = vmax.xlane.f32.xlu1 %v3714_v55  ;;  %2131 = vadd.xlane.f32.xlu0 %v2090_v50 }
 0x28c   : > { %v1120_v61 = vpop.f32.mrf.mxu0  ;;  %v3725_v62 = vsel %vm1472_vm0, %v1331_v60, -inf }
 0x28d   : > { %v2801_v59 = vpop.f32.mrf.mxu1  ;;  %v2092_v5 = vmul.f32 %v1120_v61, %v3562_v21 }
 0x28e   : > { %v3727_v4 = vpop.f32.mrf.mxu0  ;;  %v3737_v10 = vsel %vm1472_vm0, %v2801_v59, -inf }
 0x28f   : > { %1515 = vmax.xlane.f32.xlu1 %v3721_v19  ;;  %1513 = vmax.xlane.f32.xlu0 %v3725_v62  ;;  %v1341_v63 = vpop.f32.mrf.mxu1 }
 0x290   : > { %v1126_v2 = vpop.f32.mrf.mxu0  ;;  %v3741_v21 = vsel %vm1472_vm0, %v1341_v63, -inf }
 0x291   : > { %v2804_v13 = vpop.f32.mrf.mxu1  ;;  %v2093_v60 = vmul.f32 %v1126_v2, %v3568_v22 }
 0x292   : > { %v3733_v15 = vpop.f32.mrf.mxu0  ;;  %v3749_v45 = vsel %vm1472_vm0, %v2804_v13, -inf }
 0x293   : > { %4788 = vst [vmem:[#allocation14_spill] sm:$0xff] %v3733_v15  ;;  %2133 = vadd.xlane.f32.xlu1 %v2091_v12  ;;  %2135 = vadd.xlane.f32.xlu0 %v2092_v5  ;;  %v1351_v6 = vpop.f32.mrf.mxu1 }
 0x294   : > { %v1132_v34 = vpop.f32.mrf.mxu0  ;;  %v3753_v46 = vsel %vm1472_vm0, %v1351_v6, -inf }
 0x295   : > { %v2807_v35 = vpop.f32.mrf.mxu1  ;;  %v2094_v52 = vmul.f32 %v1132_v34, %v3574_v23 }
 0x296   : > { %v3743_v40 = vpop.f32.mrf.mxu0  ;;  %v3765_v63 = vsel %vm1472_vm0, %v2807_v35, -inf }
 0x297   : > { %1519 = vmax.xlane.f32.xlu1 %v3737_v10  ;;  %1517 = vmax.xlane.f32.xlu0 %v3741_v21  ;;  %v1361_v20 = vpop.f32.mrf.mxu1 }
 0x298   : > { %v1138_v41 = vpop.f32.mrf.mxu0  ;;  %v3769_v23 = vsel %vm1472_vm0, %v1361_v20, -inf }
 0x299   : > { %v2810_v14 = vpop.f32.mrf.mxu1  ;;  %v2095_v35 = vmul.f32 %v1138_v41, %v3580_v24 }
 0x29a   : > { %v3755_v50 = vpop.f32.mrf.mxu0  ;;  %v3775_v2 = vsel %vm1472_vm0, %v2810_v14, -inf }
 0x29b   : > { %4789 = vst [vmem:[#allocation15_spill] sm:$0xff] %v3755_v50  ;;  %1523 = vmax.xlane.f32.xlu1 %v3749_v45  ;;  %1521 = vmax.xlane.f32.xlu0 %v3753_v46  ;;  %v1371_v53 = vpop.f32.mrf.mxu1 }
 0x29c   : > { %v1144_v54 = vpop.f32.mrf.mxu0  ;;  %v3779_v13 = vsel %vm1472_vm0, %v1371_v53, -inf }
 0x29d   : > { %v2813_v61 = vpop.f32.mrf.mxu1  ;;  %v2096_v34 = vmul.f32 %v1144_v54, %v3586_v25 }
 0x29e   : > { %v3761_v59 = vpop.f32.mrf.mxu0 }
 0x29f   : > { %2137 = vadd.xlane.f32.xlu1 %v2093_v60  ;;  %2139 = vadd.xlane.f32.xlu0 %v2094_v52  ;;  %v1381_v5 = vpop.f32.mrf.mxu1  ;;  %v3789_v60 = vsel %vm1472_vm0, %v2813_v61, -inf }
 0x2a0   : > { %v1150_v12 = vpop.f32.mrf.mxu0  ;;  %v3793_v53 = vsel %vm1472_vm0, %v1381_v5, -inf }
 0x2a1   : > { %v2816_v22 = vpop.f32.mrf.mxu1  ;;  %v2097_v17 = vmul.f32 %v1150_v12, %v3589_v26 }
 0x2a2   : > { %v3781_v6 = vpop.f32.mrf.mxu0  ;;  %v3801_v54 = vsel %vm1472_vm0, %v2816_v22, -inf }
 0x2a3   : > { %1527 = vmax.xlane.f32.xlu1 %v3765_v63  ;;  %1525 = vmax.xlane.f32.xlu0 %v3769_v23  ;;  %4790 = vst [vmem:[#allocation16_spill] sm:$0xff] %v3781_v6  ;;  %v1391_v20 = vpop.f32.mrf.mxu1 }
 0x2a4   : > { %v1156_v52 = vpop.f32.mrf.mxu0  ;;  %v3805_v61 = vsel %vm1472_vm0, %v1391_v20, -inf }
 0x2a5   : > { %v2819_v14 = vpop.f32.mrf.mxu1 }
 0x2a6   : > { %v3795_v25 = vpop.f32.mrf.mxu0  ;;  %v3815_v20 = vsel %vm1472_vm0, %v2819_v14, -inf }
 0x2a7   : > { %1531 = vmax.xlane.f32.xlu1 %v3775_v2  ;;  %1529 = vmax.xlane.f32.xlu0 %v3779_v13  ;;  %v1401_v24 = vpop.f32.mrf.mxu1 }
 0x2a8   : > { %v1162_v41 = vpop.f32.mrf.mxu0 }
 0x2a9   : > { %v2822_v5 = vpop.f32.mrf.mxu1 }
 0x2ab   : > { %2141 = vadd.xlane.f32.xlu1 %v2095_v35  ;;  %2143 = vadd.xlane.f32.xlu0 %v2096_v34  ;;  %v2098_v34 = vmul.f32 %v1156_v52, %v3595_v27  ;;  %v3810_v35 = vpop.f32.mrf.mxu0  ;;  %v1411_v7 = vpop.f32.mrf.mxu1  ;;  %v3819_v27 = vsel %vm1472_vm0, %v1401_v24, -inf  ;;  %v2099_v24 = vmul.f32 %v1162_v41, %v3597_v28 }
 0x2ac   : > { %4791 = vst [vmem:[#allocation17_spill] sm:$0xff] %v3810_v35  ;;  %v3831_v12 = vsel %vm1472_vm0, %v1411_v7, -inf }
 0x2ad   : > { %v1168_v22 = vpop.f32.mrf.mxu0  ;;  %v2825_v1 = vpop.f32.mrf.mxu1 }
 0x2ae   : > { %v3841_v35 = vsel %vm1472_vm0, %v2825_v1, -inf }
 0x2af   : > { %1535 = vmax.xlane.f32.xlu1 %v3789_v60  ;;  %1533 = vmax.xlane.f32.xlu0 %v3793_v53  ;;  %v3823_v52 = vpop.f32.mrf.mxu0  ;;  %v1421_v26 = vpop.f32.mrf.mxu1 }
 0x2b0   : > { %v3845_v7 = vsel %vm1472_vm0, %v1421_v26, -inf }
 0x2b1   : > { %v1174_v14 = vpop.f32.mrf.mxu0  ;;  %v2828_v51 = vpop.f32.mrf.mxu1 }
 0x2b2   : > { %v3851_v41 = vsel %vm1472_vm0, %v2828_v51, -inf }
 0x2b3   : > { %1539 = vmax.xlane.f32.xlu1 %v3801_v54  ;;  %1537 = vmax.xlane.f32.xlu0 %v3805_v61  ;;  %v3837_v38 = vpop.f32.mrf.mxu0 }
 0x2b4   : > { %4792 = vst [vmem:[#allocation18_spill] sm:$0xff] %v3837_v38  ;;  %v2101_v38 = vmul.f32 %v1174_v14, %v3605_v30 }
 0x2b7   : > { %2145 = vadd.xlane.f32.xlu1 %v2097_v17  ;;  %2147 = vadd.xlane.f32.xlu0 %v2098_v34  ;;  %v3827_v17 = vsel %vm1472_vm0, %v2822_v5, -inf  ;;  %v2100_v34 = vmul.f32 %v1168_v22, %v3603_v29  ;;  %v1431_v5 = vpop.f32.mrf.mxu1  ;;  %v1180_v29 = vpop.f32.mrf.mxu0 }
 0x2b8   : > { %v3855_v22 = vsel %vm1472_vm0, %v1431_v5, -inf }
 0x2b9   : > { %v2831_v28 = vpop.f32.mrf.mxu1  ;;  %v3857_v1 = vpop.f32.mrf.mxu0 }
 0x2ba   : > { %v3867_v5 = vsel %vm1472_vm0, %v2831_v28, -inf }
 0x2bb   : > { %1543 = vmax.xlane.f32.xlu1 %v3815_v20  ;;  %1541 = vmax.xlane.f32.xlu0 %v3819_v27  ;;  %v1441_v26 = vpop.f32.mrf.mxu1 }
 0x2bd   : > { %v2834_v51 = vpop.f32.mrf.mxu1 }
 0x2bf   : > { %1547 = vmax.xlane.f32.xlu1 %v3827_v17  ;;  %1545 = vmax.xlane.f32.xlu0 %v3831_v12 }
 0x2c3   : > { %2149 = vadd.xlane.f32.xlu1 %v2099_v24  ;;  %2151 = vadd.xlane.f32.xlu0 %v2100_v34  ;;  %v2102_v34 = vmul.f32 %v1180_v29, %v3611_v31  ;;  %v1186_v24 = vpop.f32.mrf.mxu0  ;;  %v3871_v31 = vsel %vm1472_vm0, %v1441_v26, -inf  ;;  %v1451_v29 = vpop.f32.mrf.mxu1 }
 0x2c4   : > { %v3881_v14 = vsel %vm1472_vm0, %v1451_v29, -inf  ;;  %v2103_v28 = vmul.f32 %v1186_v24, %v3613_v32 }
 0x2c5   : > { %v3863_v6 = vpop.f32.mrf.mxu0  ;;  %v2837_v30 = vpop.f32.mrf.mxu1 }
 0x2c6   : > { %4793 = vst [vmem:[#allocation19_spill] sm:$0xff] %v3863_v6  ;;  %v3889_v6 = vsel %vm1472_vm0, %v2837_v30, -inf }
 0x2c7   : > { %1551 = vmax.xlane.f32.xlu1 %v3841_v35  ;;  %1549 = vmax.xlane.f32.xlu0 %v3845_v7  ;;  %v1192_v50 = vpop.f32.mrf.mxu0  ;;  %v1461_v26 = vpop.f32.mrf.mxu1 }
 0x2cb   : > { %1555 = vmax.xlane.f32.xlu1 %v3851_v41  ;;  %1553 = vmax.xlane.f32.xlu0 %v3855_v22 }
 0x2cf   : > { %2153 = vadd.xlane.f32.xlu1 %v2101_v38  ;;  %2155 = vadd.xlane.f32.xlu0 %v2102_v34  ;;  %v3877_v38 = vsel %vm1472_vm0, %v2834_v51, -inf  ;;  %v2104_v34 = vmul.f32 %v1192_v50, %v3619_v33  ;;  %v3893_v51 = vsel %vm1472_vm0, %v1461_v26, -inf }
 0x2d0   : > { %4794 = vst [vmem:[#allocation20_spill] sm:$0xff] %v3893_v51 }
 0x2d3   : > { %1559 = vmax.xlane.f32.xlu1 %v3867_v5  ;;  %1557 = vmax.xlane.f32.xlu0 %v3871_v31 }
 0x2d7   : > { %1563 = vmax.xlane.f32.xlu1 %v3877_v38  ;;  %1561 = vmax.xlane.f32.xlu0 %v3881_v14 }
 0x2db   : > { %2157 = vadd.xlane.f32.xlu1 %v2103_v28  ;;  %2159 = vadd.xlane.f32.xlu0 %v2104_v34 }
 0x2df   : > { %1567 = vmax.xlane.f32.xlu1 %v3889_v6  ;;  %1565 = vmax.xlane.f32.xlu0 %v3893_v51 }
 0x2ec   : > { %v3897_v32 = vpop.xlane.xlu1 %2113 }
 0x2f0   : > { %v3899_v24 = vpop.xlane.xlu1 %2161  ;;  %v3901_v33 = vpop.xlane.xlu0 %2115 }
 0x2f1   : > { %4795 = vst [vmem:[#allocation21_spill] sm:$0xff] %v3899_v24 }
 0x2f4   : > { %v3903_v50 = vpop.xlane.xlu0 %2163  ;;  %v3905_v29 = vpop.xlane.xlu1 %2117 }
 0x2f8   : > { %v3907_v30 = vpop.xlane.xlu1 %2165  ;;  %v3909_v28 = vpop.xlane.xlu0 %2119 }
 0x2f9   : > { %4796 = vst [vmem:[#allocation22_spill] sm:$0xff] %v3907_v30 }
 0x2fc   : > { %v3911_v34 = vpop.xlane.xlu0 %2167  ;;  %v3913_v26 = vpop.xlane.xlu1 %2121 }
 0x2fd   : > { %4797 = vst [vmem:[#allocation23_spill] sm:$0xff] %v3911_v34  ;;  %4798 = vst [vmem:[#allocation24_spill] sm:$0xff] %v3913_v26 }
 0x300   : > { %v3915_v15 = vpop.xlane.xlu1 %2169  ;;  %v3917_v51 = vpop.xlane.xlu0 %2123 }
 0x301   : > { %4799 = vst [vmem:[#allocation25_spill] sm:$0xff] %v3915_v15 }
 0x304   : > { %v3919_v58 = vpop.xlane.xlu0 %2171  ;;  %v3921_v24 = vpop.xlane.xlu1 %2125 }
 0x305   : > { %4800 = vst [vmem:[#allocation26_spill] sm:$0xff] %v3919_v58  ;;  %4801 = vst [vmem:[#allocation27_spill] sm:$0xff] %v3921_v24 }
 0x308   : > { %v3923_v11 = vpop.xlane.xlu1 %2173  ;;  %v3925_v9 = vpop.xlane.xlu0 %2127 }
 0x309   : > { %4802 = vst [vmem:[#allocation28_spill] sm:$0xff] %v3923_v11 }
 0x30c   : > { %v1508_v16 = vpop.xlane.xlu0 %1507  ;;  %v3927_v30 = vpop.xlane.xlu1 %2129 }
 0x30d   : > { %4803 = vst [vmem:[#allocation29_spill] sm:$0xff] %v3927_v30  ;;  %vm1570_vm1 = vcmp.eq.f32.partialorder %v3694_v42, %v1508_v16 }
 0x30e   : > { %v3931_v34 = vsel %vm1570_vm1, %v3680_v3, 128 }
 0x30f   : > { %4804 = vst [vmem:[#allocation30_spill] sm:$0xff] %v3931_v34  ;;  %v1648_v15 = vshra.s32 %v3931_v34, 16 }
 0x310   : > { %v1506_v57 = vpop.xlane.xlu0 %1505  ;;  %v1512_v26 = vpop.xlane.xlu1 %1511 }
 0x311   : > { %vm1569_vm2 = vcmp.eq.f32.partialorder %v3701_v47, %v1506_v57  ;;  %vm1572_vm3 = vcmp.eq.f32.partialorder %v3705_v18, %v1512_v26  ;;  %v3936_v58 = vcvt.s32.f32 %v1648_v15 }
 0x312   : > { %v3939_v11 = vsel %vm1569_vm2, %v3680_v3, 128  ;;  %v3942_v30 = vsel %vm1572_vm3, %v3680_v3, 128 }
 0x313   : > { %4805 = vst [vmem:[#allocation31_spill] sm:$0xff] %v3936_v58  ;;  %4806 = vst [vmem:[#allocation32_spill] sm:$0xff] %v3939_v11  ;;  %1651 = vmin.xlane.f32.xlu0 %v3936_v58  ;;  %v1634_v16 = vshra.s32 %v3939_v11, 16  ;;  %v1676_v47 = vshra.s32 %v3942_v30, 16 }
 0x314   : > { %4807 = vst [vmem:[#allocation33_spill] sm:$0xff] %v3942_v30  ;;  %v1510_v42 = vpop.xlane.xlu1 %1509  ;;  %v3946_v34 = vpop.xlane.xlu0 %2131 }
 0x315   : > { %vm1571_vm4 = vcmp.eq.f32.partialorder %v3714_v55, %v1510_v42  ;;  %v3949_v57 = vcvt.s32.f32 %v1634_v16  ;;  %v3957_v58 = vcvt.s32.f32 %v1676_v47 }
 0x316   : > { %v3953_v18 = vsel %vm1571_vm4, %v3680_v3, 128 }
 0x317   : > { %4808 = vst [vmem:[#allocation34_spill] sm:$0xff] %v3949_v57  ;;  %4809 = vst [vmem:[#allocation35_spill] sm:$0xff] %v3953_v18  ;;  %1637 = vmin.xlane.f32.xlu0 %v3949_v57  ;;  %v1662_v11 = vshra.s32 %v3953_v18, 16 }
 0x318   : > { %v1516_v15 = vpop.xlane.xlu1 %1515  ;;  %v1514_v26 = vpop.xlane.xlu0 %1513  ;;  %4810 = vst [vmem:[#allocation36_spill] sm:$0xff] %v3957_v58 }
 0x319   : > { %vm1574_vm5 = vcmp.eq.f32.partialorder %v3721_v19, %v1516_v15  ;;  %vm1573_vm6 = vcmp.eq.f32.partialorder %v3725_v62, %v1514_v26  ;;  %v3969_v42 = vcvt.s32.f32 %v1662_v11 }
 0x31a   : > { %v3961_v24 = vsel %vm1574_vm5, %v3680_v3, 128  ;;  %v3973_v19 = vsel %vm1573_vm6, %v3680_v3, 128 }
 0x31b   : > { %4811 = vst [vmem:[#allocation37_spill] sm:$0xff] %v3961_v24  ;;  %1679 = vmin.xlane.f32.xlu0 %v3957_v58  ;;  %4812 = vst [vmem:[#allocation38_spill] sm:$0xff] %v3969_v42  ;;  %v1704_v30 = vshra.s32 %v3961_v24, 16  ;;  %v1690_v26 = vshra.s32 %v3973_v19, 16 }
 0x31c   : > { %v3965_v55 = vpop.xlane.xlu1 %2133  ;;  %v3967_v16 = vpop.xlane.xlu0 %2135  ;;  %4813 = vst [vmem:[#allocation39_spill] sm:$0xff] %v3973_v19 }
 0x31d   : > { %v3977_v62 = vcvt.s32.f32 %v1704_v30  ;;  %v3985_v58 = vcvt.s32.f32 %v1690_v26 }
 0x31f   : > { %1665 = vmin.xlane.f32.xlu0 %v3969_v42  ;;  %4815 = vst [vmem:[#allocation41_spill] sm:$0xff] %v3985_v58 }
 0x320   : > { %v1520_v47 = vpop.xlane.xlu1 %1519  ;;  %v1518_v15 = vpop.xlane.xlu0 %1517 }
 0x321   : > { %vm1576_vm7 = vcmp.eq.f32.partialorder %v3737_v10, %v1520_v47  ;;  %vm1575_vm8 = vcmp.eq.f32.partialorder %v3741_v21, %v1518_v15 }
 0x322   : > { %v3981_v18 = vsel %vm1576_vm7, %v3680_v3, 128  ;;  %v3989_v57 = vsel %vm1575_vm8, %v3680_v3, 128 }
 0x323   : > { %4814 = vst [vmem:[#allocation40_spill] sm:$0xff] %v3981_v18  ;;  %1707 = vmin.xlane.f32.xlu0 %v3977_v62  ;;  %v1732_v42 = vshra.s32 %v3981_v18, 16  ;;  %4816 = vst [vmem:[#allocation42_spill] sm:$0xff] %v3989_v57  ;;  %v1718_v47 = vshra.s32 %v3989_v57, 16 }
 0x324   : > { %v1524_v11 = vpop.xlane.xlu1 %1523  ;;  %v1522_v24 = vpop.xlane.xlu0 %1521 }
 0x325   : > { %vm1578_vm9 = vcmp.eq.f32.partialorder %v3749_v45, %v1524_v11  ;;  %v3997_v21 = vcvt.s32.f32 %v1732_v42  ;;  %vm1577_vm10 = vcmp.eq.f32.partialorder %v3753_v46, %v1522_v24  ;;  %v4005_v45 = vcvt.s32.f32 %v1718_v47 }
 0x326   : > { %v4001_v15 = vsel %vm1578_vm9, %v3680_v3, 128 }
 0x327   : > { %1693 = vmin.xlane.f32.xlu0 %v3985_v58  ;;  %4817 = vst [vmem:[#allocation43_spill] sm:$0xff] %v3997_v21  ;;  %4818 = vst [vmem:[#allocation44_spill] sm:$0xff] %v4001_v15  ;;  %v1760_v11 = vshra.s32 %v4001_v15, 16  ;;  %v4009_v58 = vsel %vm1577_vm10, %v3680_v3, 128 }
 0x328   : > { %v3993_v10 = vpop.xlane.xlu1 %2137  ;;  %v3995_v30 = vpop.xlane.xlu0 %2139  ;;  %4819 = vst [vmem:[#allocation45_spill] sm:$0xff] %v4005_v45  ;;  %4820 = vst [vmem:[#allocation46_spill] sm:$0xff] %v4009_v58  ;;  %v1746_v46 = vshra.s32 %v4009_v58, 16 }
 0x329   : > { %v4013_v19 = vcvt.s32.f32 %v1760_v11 }
 0x32b   : > { %1735 = vmin.xlane.f32.xlu0 %v3997_v21  ;;  %4821 = vst [vmem:[#allocation47_spill] sm:$0xff] %v4013_v19 }
 0x32c   : > { %v1528_v26 = vpop.xlane.xlu1 %1527  ;;  %v1526_v18 = vpop.xlane.xlu0 %1525 }
 0x32d   : > { %vm1580_vm11 = vcmp.eq.f32.partialorder %v3765_v63, %v1528_v26  ;;  %vm1579_vm12 = vcmp.eq.f32.partialorder %v3769_v23, %v1526_v18  ;;  %v4025_v63 = vcvt.s32.f32 %v1746_v46 }
 0x32e   : > { %v4017_v24 = vsel %vm1580_vm11, %v3680_v3, 128  ;;  %v4029_v11 = vsel %vm1579_vm12, %v3680_v3, 128 }
 0x32f   : > { %1721 = vmin.xlane.f32.xlu0 %v4005_v45  ;;  %4822 = vst [vmem:[#allocation48_spill] sm:$0xff] %v4017_v24  ;;  %4823 = vst [vmem:[#allocation49_spill] sm:$0xff] %v4025_v63  ;;  %v1788_v26 = vshra.s32 %v4017_v24, 16  ;;  %v1774_v18 = vshra.s32 %v4029_v11, 16 }
 0x330   : > { %v1532_v42 = vpop.xlane.xlu1 %1531  ;;  %v1530_v57 = vpop.xlane.xlu0 %1529  ;;  %4824 = vst [vmem:[#allocation50_spill] sm:$0xff] %v4029_v11 }
 0x331   : > { %vm1582_vm13 = vcmp.eq.f32.partialorder %v3775_v2, %v1532_v42  ;;  %v4033_v23 = vcvt.s32.f32 %v1788_v26  ;;  %vm1581_vm14 = vcmp.eq.f32.partialorder %v3779_v13, %v1530_v57  ;;  %v4041_v21 = vcvt.s32.f32 %v1774_v18 }
 0x332   : > { %v4045_v42 = vsel %vm1581_vm14, %v3680_v3, 128 }
 0x333   : > { %1763 = vmin.xlane.f32.xlu0 %v4013_v19  ;;  %4825 = vst [vmem:[#allocation51_spill] sm:$0xff] %v4033_v23  ;;  %v4037_v19 = vsel %vm1582_vm13, %v3680_v3, 128  ;;  %4827 = vst [vmem:[#allocation53_spill] sm:$0xff] %v4041_v21  ;;  %v1802_v57 = vshra.s32 %v4045_v42, 16 }
 0x334   : > { %v4021_v47 = vpop.xlane.xlu1 %2141  ;;  %v4023_v15 = vpop.xlane.xlu0 %2143  ;;  %4826 = vst [vmem:[#allocation52_spill] sm:$0xff] %v4037_v19  ;;  %v1816_v2 = vshra.s32 %v4037_v19, 16  ;;  %4828 = vst [vmem:[#allocation54_spill] sm:$0xff] %v4045_v42 }
 0x336   : > { %v4053_v13 = vcvt.s32.f32 %v1816_v2 }
 0x337   : > { %1749 = vmin.xlane.f32.xlu0 %v4025_v63 }
 0x338   : > { %v1536_v58 = vpop.xlane.xlu1 %1535  ;;  %v1534_v45 = vpop.xlane.xlu0 %1533  ;;  %4829 = vst [vmem:[#allocation55_spill] sm:$0xff] %v4053_v13 }
 0x339   : > { %vm1584_vm15 = vcmp.eq.f32.partialorder %v3789_v60, %v1536_v58  ;;  %vm1583_vm1 = vcmp.eq.f32.partialorder %v3793_v53, %v1534_v45  ;;  %v4061_v58 = vcvt.s32.f32 %v1802_v57 }
 0x33a   : > { %v4057_v18 = vsel %vm1584_vm15, %v3680_v3, 128 }
 0x33b   : > { %1791 = vmin.xlane.f32.xlu0 %v4033_v23  ;;  %4830 = vst [vmem:[#allocation56_spill] sm:$0xff] %v4057_v18  ;;  %4831 = vst [vmem:[#allocation57_spill] sm:$0xff] %v4061_v58  ;;  %v1844_v60 = vshra.s32 %v4057_v18, 16 }
 0x33c   : > { %v1540_v46 = vpop.xlane.xlu1 %1539  ;;  %v1538_v24 = vpop.xlane.xlu0 %1537 }
 0x33d   : > { %vm1586_vm2 = vcmp.eq.f32.partialorder %v3801_v54, %v1540_v46  ;;  %v4069_v63 = vcvt.s32.f32 %v1844_v60  ;;  %vm1585_vm3 = vcmp.eq.f32.partialorder %v3805_v61, %v1538_v24 }
 0x33e   : > { %v4073_v45 = vsel %vm1586_vm2, %v3680_v3, 128  ;;  %v4083_v46 = vsel %vm1585_vm3, %v3680_v3, 128 }
 0x33f   : > { %1777 = vmin.xlane.f32.xlu0 %v4041_v21  ;;  %v4065_v21 = vsel %vm1583_vm1, %v3680_v3, 128  ;;  %4833 = vst [vmem:[#allocation59_spill] sm:$0xff] %v4069_v63  ;;  %4834 = vst [vmem:[#allocation60_spill] sm:$0xff] %v4073_v45  ;;  %v1872_v54 = vshra.s32 %v4073_v45, 16  ;;  %v1858_v61 = vshra.s32 %v4083_v46, 16 }
 0x340   : > { %v4049_v26 = vpop.xlane.xlu1 %2145  ;;  %v4051_v11 = vpop.xlane.xlu0 %2147  ;;  %4832 = vst [vmem:[#allocation58_spill] sm:$0xff] %v4065_v21  ;;  %v1830_v53 = vshra.s32 %v4065_v21, 16  ;;  %4835 = vst [vmem:[#allocation61_spill] sm:$0xff] %v4083_v46 }
 0x342   : > { %v4079_v18 = vcvt.s32.f32 %v1830_v53 }
 0x343   : > { %1819 = vmin.xlane.f32.xlu0 %v4053_v13  ;;  %v4098_v13 = vcvt.s32.f32 %v1858_v61 }
 0x344   : > { %v1544_v19 = vpop.xlane.xlu1 %1543  ;;  %v1542_v23 = vpop.xlane.xlu0 %1541 }
 0x345   : > { %vm1588_vm4 = vcmp.eq.f32.partialorder %v3815_v20, %v1544_v19  ;;  %vm1587_vm5 = vcmp.eq.f32.partialorder %v3819_v27, %v1542_v23  ;;  %4837 = vst [vmem:[#allocation63_spill] sm:$0xff] %v4098_v13 }
 0x346   : > { %v4093_v24 = vsel %vm1588_vm4, %v3680_v3, 128  ;;  %v4101_v20 = vsel %vm1587_vm5, %v3680_v3, 128 }
 0x347   : > { %1805 = vmin.xlane.f32.xlu0 %v4061_v58  ;;  %v4089_v58 = vcvt.s32.f32 %v1872_v54  ;;  %4836 = vst [vmem:[#allocation62_spill] sm:$0xff] %v4093_v24  ;;  %4838 = vst [vmem:[#allocation64_spill] sm:$0xff] %v4101_v20  ;;  %v1886_v54 = vshra.s32 %v4101_v20, 16 }
 0x348   : > { %v1548_v2 = vpop.xlane.xlu1 %1547  ;;  %v1546_v42 = vpop.xlane.xlu0 %1545 }
 0x349   : > { %vm1590_vm6 = vcmp.eq.f32.partialorder %v3827_v17, %v1548_v2  ;;  %vm1589_vm7 = vcmp.eq.f32.partialorder %v3831_v12, %v1546_v42  ;;  %v4116_v17 = vcvt.s32.f32 %v1886_v54  ;;  %v2178_v42 = vsub.f32 %v3901_v33, %v3646_v43  ;;  %v4148_v43 = vld [vmem:[%s4737_s3] ss:$0 sm:$0xff] }
 0x34a   : > { %v4111_v23 = vsel %vm1590_vm6, %v3680_v3, 128  ;;  %v4119_v2 = vsel %vm1589_vm7, %v3680_v3, 128  ;;  %v2180_v33 = vsub.f32 %v3909_v28, %v3658_v56 }
 0x34b   : > { %1847 = vmin.xlane.f32.xlu0 %v4069_v63  ;;  %v1900_v63 = vshra.s32 %v4093_v24, 16  ;;  %4839 = vst [vmem:[#allocation65_spill] sm:$0xff] %v4111_v23  ;;  %v1928_v24 = vshra.s32 %v4111_v23, 16 }
 0x34c   : > { %v4077_v57 = vpop.xlane.xlu0 %2151  ;;  %v4085_v60 = vpop.xlane.xlu1 %2149 }
 0x34d   : > { %v4108_v27 = vcvt.s32.f32 %v1900_v63  ;;  %v4127_v12 = vcvt.s32.f32 %v1928_v24 }
 0x34f   : > { %1833 = vmin.xlane.f32.xlu0 %v4079_v18 }
 0x350   : > { %v1550_v21 = vpop.xlane.xlu0 %1549  ;;  %v1552_v53 = vpop.xlane.xlu1 %1551 }
 0x351   : > { %vm1592_vm8 = vcmp.eq.f32.partialorder %v3841_v35, %v1552_v53  ;;  %vm1591_vm10 = vcmp.eq.f32.partialorder %v3845_v7, %v1550_v21 }
 0x352   : > { %v4132_v54 = vsel %vm1592_vm8, %v3680_v3, 128  ;;  %v4153_v7 = vsel %vm1591_vm10, %v3680_v3, 128 }
 0x353   : > { %1875 = vmin.xlane.f32.xlu0 %v4089_v58  ;;  %4840 = vst [vmem:[#allocation66_spill] sm:$0xff] %v4132_v54  ;;  %v1956_v53 = vshra.s32 %v4132_v54, 16  ;;  %v2182_v54 = vsub.f32 %v3917_v51, %v3670_v8  ;;  %v2184_v8 = vsub.f32 %v3925_v9, %v3686_v39  ;;  %v2186_v9 = vsub.f32 %v3946_v34, %v3707_v48 }
 0x354   : > { %v1554_v45 = vpop.xlane.xlu0 %1553  ;;  %v1556_v46 = vpop.xlane.xlu1 %1555  ;;  %v2188_v48 = vsub.f32 %v3967_v16, %v3727_v4  ;;  %v2190_v4 = vsub.f32 %v3995_v30, %v3743_v40  ;;  %v2192_v40 = vsub.f32 %v4023_v15, %v3761_v59 }
 0x355   : > { %vm1594_vm11 = vcmp.eq.f32.partialorder %v3851_v41, %v1556_v46  ;;  %vm1593_vm12 = vcmp.eq.f32.partialorder %v3855_v22, %v1554_v45 }
 0x356   : > { %v4165_v56 = vsel %vm1594_vm11, %v3680_v3, 128  ;;  %v4178_v51 = vsel %vm1593_vm12, %v3680_v3, 128  ;;  %v2231_v15 = vadd.f32 %v4148_v43, %v2192_v40 }
 0x357   : > { %1861 = vmin.xlane.f32.xlu0 %v4098_v13  ;;  %v1914_v13 = vshra.s32 %v4119_v2, 16  ;;  %v1984_v46 = vshra.s32 %v4165_v56, 16  ;;  %v1970_v22 = vshra.s32 %v4178_v51, 16 }
 0x358   : > { %v4105_v19 = vpop.xlane.xlu0 %2155  ;;  %v4123_v63 = vpop.xlane.xlu1 %2153 }
 0x359   : > { %v4143_v24 = vcvt.s32.f32 %v1914_v13  ;;  %v1942_v13 = vshra.s32 %v4153_v7, 16  ;;  %v4186_v45 = vcvt.s32.f32 %v1984_v46  ;;  %v2225_v46 = vadd.f32 %v4148_v43, %v2186_v9 }
 0x35a   : > { %v2229_v9 = vadd.f32 %v4148_v43, %v2190_v4  ;;  %v2202_v4 = vsub.f32 %v3903_v50, %v3648_v44  ;;  %v4842_v50 = vld [vmem:[#allocation6_spill] sm:$0xff] }
 0x35b   : > { %1903 = vmin.xlane.f32.xlu0 %v4108_v27 }
 0x35c   : > { %v1558_v61 = vpop.xlane.xlu0 %1557  ;;  %v1560_v21 = vpop.xlane.xlu1 %1559  ;;  %v2261_v59 = vsel %vm1472_vm0, %v2229_v9, inf  ;;  %v2241_v44 = vadd.f32 %v4148_v43, %v2202_v4 }
 0x35d   : > { %vm1596_vm13 = vcmp.eq.f32.partialorder %v3867_v5, %v1560_v21  ;;  %v2223_v5 = vadd.f32 %v4148_v43, %v2184_v8  ;;  %vm1595_vm14 = vcmp.eq.f32.partialorder %v3871_v31, %v1558_v61 }
 0x35e   : > { %v4191_v39 = vsel %vm1596_vm13, %v3680_v3, 128  ;;  %v4206_v34 = vsel %vm1595_vm14, %v3680_v3, 128 }
 0x35f   : > { %1889 = vmin.xlane.f32.xlu0 %v4116_v17  ;;  %v2012_v21 = vshra.s32 %v4191_v39, 16  ;;  %v1998_v61 = vshra.s32 %v4206_v34, 16 }
 0x360   : > { %v1562_v20 = vpop.xlane.xlu0 %1561  ;;  %v1564_v41 = vpop.xlane.xlu1 %1563 }
 0x361   : > { %vm1597_vm9 = vcmp.eq.f32.partialorder %v3881_v14, %v1562_v20  ;;  %v2217_v20 = vadd.f32 %v4148_v43, %v2178_v42  ;;  %v2219_v42 = vadd.f32 %v4148_v43, %v2180_v33  ;;  %v2221_v33 = vadd.f32 %v4148_v43, %v2182_v54 }
 0x362   : > { %v4135_v23 = vsel %vm1597_vm9, %v3680_v3, 128  ;;  %vm1598_vm15 = vcmp.eq.f32.partialorder %v3877_v38, %v1564_v41  ;;  %v4214_v8 = vcvt.s32.f32 %v2012_v21  ;;  %v4227_v41 = vcvt.s32.f32 %v1998_v61 }
 0x363   : > { %1931 = vmin.xlane.f32.xlu0 %v4127_v12  ;;  %v2026_v35 = vshra.s32 %v4135_v23, 16  ;;  %v2249_v28 = vsel %vm1472_vm0, %v2217_v20, inf  ;;  %v2251_v20 = vsel %vm1472_vm0, %v2219_v42, inf  ;;  %v2253_v54 = vsel %vm1472_vm0, %v2221_v33, inf }
 0x364   : > { %v2255_v42 = vsel %vm1472_vm0, %v2223_v5, inf  ;;  %v4219_v16 = vsel %vm1598_vm15, %v3680_v3, 128  ;;  %v2227_v33 = vadd.f32 %v4148_v43, %v2188_v48  ;;  %v2194_v5 = vsub.f32 %v4051_v11, %v3795_v25  ;;  %v2960_v11 = vld [vmem:[#allocation2 + $0x98] sm:$0xff] }
 0x365   : > { %v4141_v14 = vcvt.s32.f32 %v2026_v35  ;;  %v4160_v35 = vcvt.s32.f32 %v1956_v53  ;;  %v4173_v53 = vcvt.s32.f32 %v1942_v13  ;;  %v4193_v13 = vpop.xlane.xlu1 %2157  ;;  %v2040_v38 = vshra.s32 %v4219_v16, 16 }
 0x366   : > { %v2177_v48 = vsub.f32 %v3897_v32, %v3640_v37  ;;  %v2233_v25 = vadd.f32 %v4148_v43, %v2194_v5  ;;  %v2179_v61 = vsub.f32 %v3905_v29, %v3652_v49  ;;  %v2198_v37 = vsub.f32 %v4105_v19, %v3857_v1 }
 0x367   : > { %2029 = vmin.xlane.f32.xlu1 %v4141_v14  ;;  %1917 = vmin.xlane.f32.xlu0 %v4143_v24 }
 0x368   : > { %v2237_v19 = vadd.f32 %v4148_v43, %v2198_v37 }
 0x369   : > { %v1568_v31 = vpop.xlane.xlu1 %1567 }
 0x36a   : > { %vm1600_vm1 = vcmp.eq.f32.partialorder %v3889_v6, %v1568_v31  ;;  %v2112_v31 = vmul.f32 %v2960_v11, %v3684_v36  ;;  %v2218_v36 = vadd.f32 %v4148_v43, %v2179_v61  ;;  %v2269_v5 = vsel %vm1472_vm0, %v2237_v19, inf }
 0x36b   : > { %2282 = vmin.xlane.f32.xlu1 %v2249_v28  ;;  %1959 = vmin.xlane.f32.xlu0 %v4160_v35  ;;  %v4201_v28 = vcvt.s32.f32 %v1970_v22  ;;  %v4232_v30 = vsel %vm1600_vm1, %v3680_v3, 128  ;;  %v2259_v22 = vsel %vm1472_vm0, %v2227_v33, inf }
 0x36c   : > { %v2068_v6 = vshra.s32 %v4232_v30, 16  ;;  %v2250_v33 = vsel %vm1472_vm0, %v2218_v36, inf }
 0x36e   : > { %v4247_v21 = vcvt.s32.f32 %v2068_v6  ;;  %v2160_v6 = vpop.xlane.xlu0 %2159 }
 0x36f   : > { %2286 = vmin.xlane.f32.xlu1 %v2251_v20  ;;  %1945 = vmin.xlane.f32.xlu0 %v4173_v53  ;;  %v2257_v20 = vsel %vm1472_vm0, %v2225_v46, inf  ;;  %v2263_v46 = vsel %vm1472_vm0, %v2231_v15, inf  ;;  %v4846_v15 = vld [vmem:[#allocation8_spill] sm:$0xff] }
 0x373   : > { %2290 = vmin.xlane.f32.xlu1 %v2253_v54  ;;  %1987 = vmin.xlane.f32.xlu0 %v4186_v45  ;;  %v4239_v54 = vcvt.s32.f32 %v2040_v38  ;;  %v4843_v38 = vld [vmem:[#allocation23_spill] sm:$0xff] }
 0x374   : > { %v2204_v40 = vsub.f32 %v4843_v38, %v4842_v50 }
 0x376   : > { %v2243_v37 = vadd.f32 %v4148_v43, %v2204_v40 }
 0x377   : > { %2294 = vmin.xlane.f32.xlu1 %v2255_v42  ;;  %1973 = vmin.xlane.f32.xlu0 %v4201_v28  ;;  %v2196_v42 = vsub.f32 %v4077_v57, %v3823_v52  ;;  %v2265_v52 = vsel %vm1472_vm0, %v2233_v25, inf  ;;  %v2216_v57 = vadd.f32 %v4148_v43, %v2177_v48  ;;  %v4847_v48 = vld [vmem:[#allocation26_spill] sm:$0xff]  ;;  %v4849_v25 = vld [vmem:[#allocation29_spill] sm:$0xff] }
 0x379   : > { %v2235_v32 = vadd.f32 %v4148_v43, %v2196_v42  ;;  %v2248_v29 = vsel %vm1472_vm0, %v2216_v57, inf  ;;  %v2206_v42 = vsub.f32 %v4847_v48, %v4846_v15  ;;  %v1194_v57 = vpop.f32.mrf.mxu0 }
 0x37b   : > { %2298 = vmin.xlane.f32.xlu1 %v2257_v20  ;;  %2015 = vmin.xlane.f32.xlu0 %v4214_v8  ;;  %v4841_v20 = vld [vmem:[#allocation24_spill] sm:$0xff]  ;;  %v2267_v1 = vsel %vm1472_vm0, %v2235_v32, inf  ;;  %v1566_v32 = vpop.xlane.xlu0 %1565  ;;  %v2245_v4 = vadd.f32 %v4148_v43, %v2206_v42 }
 0x37c   : > { %v2181_v49 = vsub.f32 %v4841_v20, %v3664_v0  ;;  %v4845_v0 = vld [vmem:[#allocation27_spill] sm:$0xff]  ;;  %v4850_v20 = vld [vmem:[#allocation13_spill] sm:$0xff] }
 0x37d   : > { %v2277_v50 = vsel %vm1472_vm0, %v2245_v4, inf }
 0x37f   : > { %2302 = vmin.xlane.f32.xlu1 %v2259_v22  ;;  %2001 = vmin.xlane.f32.xlu0 %v4227_v41  ;;  %v4844_v22 = vld [vmem:[#allocation9_spill] sm:$0xff] }
 0x380   : > { %v2183_v9 = vsub.f32 %v4845_v0, %v4844_v22 }
 0x383   : > { %2306 = vmin.xlane.f32.xlu1 %v2261_v59  ;;  %2043 = vmin.xlane.f32.xlu0 %v4239_v54  ;;  %v2220_v59 = vadd.f32 %v4148_v43, %v2181_v49  ;;  %v2187_v49 = vsub.f32 %v3965_v55, %v4850_v20  ;;  %v4852_v55 = vld [vmem:[#allocation14_spill] sm:$0xff] }
 0x384   : > { %v2189_v40 = vsub.f32 %v3993_v10, %v4852_v55 }
 0x385   : > { %v2252_v61 = vsel %vm1472_vm0, %v2220_v59, inf  ;;  %v2226_v0 = vadd.f32 %v4148_v43, %v2187_v49  ;;  %v4853_v59 = vld [vmem:[#allocation15_spill] sm:$0xff]  ;;  %v4858_v49 = vld [vmem:[#allocation17_spill] sm:$0xff] }
 0x386   : > { %v2191_v15 = vsub.f32 %v4021_v47, %v4853_v59  ;;  %v2228_v42 = vadd.f32 %v4148_v43, %v2189_v40 }
 0x387   : > { %2310 = vmin.xlane.f32.xlu1 %v2263_v46  ;;  %2071 = vmin.xlane.f32.xlu0 %v4247_v21  ;;  %v4848_v46 = vld [vmem:[#allocation12_spill] sm:$0xff]  ;;  %v2258_v48 = vsel %vm1472_vm0, %v2226_v0, inf  ;;  %v4861_v0 = vld [vmem:[#allocation18_spill] sm:$0xff] }
 0x388   : > { %v2185_v11 = vsub.f32 %v4849_v25, %v4848_v46  ;;  %v4854_v46 = vld [vmem:[#allocation30_spill] sm:$0xff]  ;;  %v2260_v47 = vsel %vm1472_vm0, %v2228_v42, inf }
 0x389   : > { %v1647_v25 = vand.u32 65535, %v4854_v46 }
 0x38a   : > { %v2224_v36 = vadd.f32 %v4148_v43, %v2185_v11 }
 0x38b   : > { %2314 = vmin.xlane.f32.xlu1 %v2265_v52  ;;  %2175 = vadd.xlane.f32.xlu0 %v2112_v31  ;;  %v2273_v31 = vsel %vm1472_vm0, %v2241_v44, inf  ;;  %v2222_v52 = vadd.f32 %v4148_v43, %v2183_v9  ;;  %v1649_v20 = vcvt.s32.f32 %v1647_v25  ;;  %v4864_v25 = vld [vmem:[#allocation19_spill] sm:$0xff] }
 0x38c   : > { %v2256_v38 = vsel %vm1472_vm0, %v2224_v36, inf }
 0x38d   : > { %v2254_v19 = vsel %vm1472_vm0, %v2222_v52, inf  ;;  %v2230_v52 = vadd.f32 %v4148_v43, %v2191_v15  ;;  %v4862_v15 = vld [vmem:[#allocation36_spill] sm:$0xff] }
 0x38f   : > { %2318 = vmin.xlane.f32.xlu1 %v2267_v1  ;;  %2280 = vmin.xlane.f32.xlu0 %v2248_v29  ;;  %v2200_v1 = vsub.f32 %v2160_v6, %v1194_v57  ;;  %v2275_v29 = vsel %vm1472_vm0, %v2243_v37, inf  ;;  %v4857_v57 = vld [vmem:[#allocation32_spill] sm:$0xff] }
 0x390   : > { %v1633_v4 = vand.u32 65535, %v4857_v57 }
 0x391   : > { %v2239_v9 = vadd.f32 %v4148_v43, %v2200_v1  ;;  %v2195_v1 = vsub.f32 %v4085_v60, %v4858_v49  ;;  %v4867_v49 = vld [vmem:[#allocation4_spill] sm:$0xff] }
 0x392   : > { %v1635_v40 = vcvt.s32.f32 %v1633_v4 }
 0x393   : > { %2322 = vmin.xlane.f32.xlu1 %v2269_v5  ;;  %2284 = vmin.xlane.f32.xlu0 %v2250_v33  ;;  %v4851_v33 = vld [vmem:[#allocation20_spill] sm:$0xff]  ;;  %v2271_v10 = vsel %vm1472_vm0, %v2239_v9, inf  ;;  %v2197_v9 = vsub.f32 %v4123_v63, %v4861_v0  ;;  %v2234_v59 = vadd.f32 %v4148_v43, %v2195_v1  ;;  %v4868_v1 = vld [vmem:[#allocation21_spill] sm:$0xff] }
 0x394   : > { %vm1599_vm2 = vcmp.eq.f32.partialorder %v4851_v33, %v1566_v32  ;;  %v4856_v32 = vld [vmem:[#allocation31_spill] sm:$0xff]  ;;  %v4859_v33 = vld [vmem:[#allocation34_spill] sm:$0xff]  ;;  %v4870_v0 = vld [vmem:[#allocation5_spill] sm:$0xff] }
 0x395   : > { %v4314_v22 = vsel %vm1599_vm2, %v3680_v3, 128  ;;  %v2266_v63 = vsel %vm1472_vm0, %v2234_v59, inf }
 0x396   : > { %v2054_v5 = vshra.s32 %v4314_v22, 16 }
 0x397   : > { %2330 = vmin.xlane.f32.xlu1 %v2273_v31  ;;  %2288 = vmin.xlane.f32.xlu0 %v2252_v61  ;;  %v4855_v61 = vld [vmem:[#allocation16_spill] sm:$0xff] }
 0x398   : > { %v4331_v31 = vcvt.s32.f32 %v2054_v5  ;;  %v2193_v37 = vsub.f32 %v4049_v26, %v4855_v61  ;;  %v2262_v26 = vsel %vm1472_vm0, %v2230_v52, inf  ;;  %v2199_v61 = vsub.f32 %v4193_v13, %v4864_v25  ;;  %v4865_v52 = vld [vmem:[#allocation38_spill] sm:$0xff] }
 0x39b   : > { %2334 = vmin.xlane.f32.xlu1 %v2275_v29  ;;  %2292 = vmin.xlane.f32.xlu0 %v2254_v19  ;;  %v2232_v19 = vadd.f32 %v4148_v43, %v2193_v37 }
 0x39c   : > { %v4305_v44 = vpop.xlane.xlu0 %1651 }
 0x39d   : > { %vm1653_vm3 = vcmp.eq.f32.partialorder %v4856_v32, %v4305_v44  ;;  %v2264_v60 = vsel %vm1472_vm0, %v2232_v19, inf  ;;  %v4866_v32 = vld [vmem:[#allocation37_spill] sm:$0xff]  ;;  %v2238_v19 = vadd.f32 %v4148_v43, %v2199_v61  ;;  %v4874_v61 = vld [vmem:[#allocation7_spill] sm:$0xff] }
 0x39e   : > { %v1654_v29 = vsel %vm1653_vm3, %v1649_v20, inf  ;;  %v1703_v57 = vand.u32 65535, %v4866_v32 }
 0x39f   : > { %2338 = vmin.xlane.f32.xlu1 %v2277_v50  ;;  %2296 = vmin.xlane.f32.xlu0 %v2256_v38  ;;  %v4860_v50 = vld [vmem:[#allocation33_spill] sm:$0xff] }
 0x3a0   : > { %v4318_v6 = vpop.xlane.xlu0 %1637  ;;  %v1675_v38 = vand.u32 65535, %v4860_v50 }
 0x3a1   : > { %vm1639_vm4 = vcmp.eq.f32.partialorder %v4859_v33, %v4318_v6  ;;  %v4869_v33 = vld [vmem:[#allocation39_spill] sm:$0xff] }
 0x3a2   : > { %v1640_v5 = vsel %vm1639_vm4, %v1635_v40, inf  ;;  %v1677_v46 = vcvt.s32.f32 %v1675_v38  ;;  %v1689_v50 = vand.u32 65535, %v4869_v33  ;;  %v1705_v40 = vcvt.s32.f32 %v1703_v57  ;;  %v4876_v57 = vld [vmem:[#allocation43_spill] sm:$0xff]  ;;  %v4878_v33 = vld [vmem:[#allocation45_spill] sm:$0xff] }
 0x3a3   : > { %2300 = vmin.xlane.f32.xlu0 %v2258_v48  ;;  %2326 = vmin.xlane.f32.xlu1 %v2271_v10  ;;  %v4863_v48 = vld [vmem:[#allocation35_spill] sm:$0xff] }
 0x3a4   : > { %v4329_v11 = vpop.xlane.xlu0 %1679  ;;  %v1661_v10 = vand.u32 65535, %v4863_v48  ;;  %v4872_v48 = vld [vmem:[#allocation41_spill] sm:$0xff]  ;;  %v1691_v25 = vcvt.s32.f32 %v1689_v50  ;;  %v4879_v50 = vld [vmem:[#allocation44_spill] sm:$0xff] }
 0x3a5   : > { %vm1681_vm5 = vcmp.eq.f32.partialorder %v4862_v15, %v4329_v11 }
 0x3a6   : > { %v1682_v37 = vsel %vm1681_vm5, %v1677_v46, inf  ;;  %v1663_v20 = vcvt.s32.f32 %v1661_v10 }
 0x3a7   : > { %2304 = vmin.xlane.f32.xlu0 %v2260_v47  ;;  %2057 = vmin.xlane.f32.xlu1 %v4331_v31  ;;  %v2236_v47 = vadd.f32 %v4148_v43, %v2197_v9  ;;  %v4871_v9 = vld [vmem:[#allocation22_spill] sm:$0xff] }
 0x3a8   : > { %v4342_v36 = vpop.xlane.xlu0 %1665 }
 0x3a9   : > { %vm1667_vm6 = vcmp.eq.f32.partialorder %v4865_v52, %v4342_v36  ;;  %v2268_v13 = vsel %vm1472_vm0, %v2236_v47, inf }
 0x3ab   : > { %2308 = vmin.xlane.f32.xlu0 %v2262_v26  ;;  %1655 = vmin.xlane.f32.xlu1 %v1654_v29  ;;  %v2201_v26 = vsub.f32 %v4868_v1, %v4867_v49  ;;  %v1668_v29 = vsel %vm1667_vm6, %v1663_v20, inf  ;;  %v4877_v20 = vld [vmem:[#allocation42_spill] sm:$0xff] }
 0x3ac   : > { %v4352_v55 = vpop.xlane.xlu0 %1707  ;;  %v1717_v49 = vand.u32 65535, %v4877_v20  ;;  %v4885_v20 = vld [vmem:[#allocation50_spill] sm:$0xff] }
 0x3ad   : > { %vm1709_vm7 = vcmp.eq.f32.partialorder %v3977_v62, %v4352_v55  ;;  %v2240_v15 = vadd.f32 %v4148_v43, %v2201_v26  ;;  %v4873_v62 = vld [vmem:[#allocation40_spill] sm:$0xff] }
 0x3ae   : > { %v1710_v59 = vsel %vm1709_vm7, %v1705_v40, inf  ;;  %v1731_v10 = vand.u32 65535, %v4873_v62  ;;  %v1759_v40 = vand.u32 65535, %v4879_v50 }
 0x3af   : > { %2312 = vmin.xlane.f32.xlu0 %v2264_v60  ;;  %1641 = vmin.xlane.f32.xlu1 %v1640_v5  ;;  %v2203_v60 = vsub.f32 %v4871_v9, %v4870_v0  ;;  %v2270_v5 = vsel %vm1472_vm0, %v2238_v19, inf  ;;  %v2272_v47 = vsel %vm1472_vm0, %v2240_v15, inf  ;;  %v1719_v9 = vcvt.s32.f32 %v1717_v49  ;;  %v4881_v15 = vld [vmem:[#allocation46_spill] sm:$0xff] }
 0x3b0   : > { %v4362_v42 = vpop.xlane.xlu0 %1693  ;;  %v1733_v26 = vcvt.s32.f32 %v1731_v10  ;;  %v1761_v10 = vcvt.s32.f32 %v1759_v40  ;;  %v1773_v49 = vand.u32 65535, %v4885_v20  ;;  %v4892_v20 = vld [vmem:[#allocation59_spill] sm:$0xff] }
 0x3b1   : > { %vm1695_vm8 = vcmp.eq.f32.partialorder %v4872_v48, %v4362_v42  ;;  %v2242_v32 = vadd.f32 %v4148_v43, %v2203_v60  ;;  %v1745_v48 = vand.u32 65535, %v4881_v15 }
 0x3b2   : > { %v1696_v52 = vsel %vm1695_vm8, %v1691_v25, inf }
 0x3b3   : > { %2316 = vmin.xlane.f32.xlu0 %v2266_v63  ;;  %1683 = vmin.xlane.f32.xlu1 %v1682_v37  ;;  %v4875_v63 = vld [vmem:[#allocation25_spill] sm:$0xff] }
 0x3b4   : > { %v4372_v4 = vpop.xlane.xlu0 %1735  ;;  %v2205_v37 = vsub.f32 %v4875_v63, %v4874_v61  ;;  %v4882_v61 = vld [vmem:[#allocation49_spill] sm:$0xff]  ;;  %v4883_v63 = vld [vmem:[#allocation48_spill] sm:$0xff] }
 0x3b5   : > { %vm1737_vm9 = vcmp.eq.f32.partialorder %v4876_v57, %v4372_v4  ;;  %v4884_v57 = vld [vmem:[#allocation51_spill] sm:$0xff] }
 0x3b6   : > { %v2244_v19 = vadd.f32 %v4148_v43, %v2205_v37  ;;  %v1787_v37 = vand.u32 65535, %v4883_v63  ;;  %v4891_v63 = vld [vmem:[#allocation56_spill] sm:$0xff] }
 0x3b7   : > { %2320 = vmin.xlane.f32.xlu0 %v2268_v13  ;;  %1669 = vmin.xlane.f32.xlu1 %v1668_v29  ;;  %v2274_v13 = vsel %vm1472_vm0, %v2242_v32, inf  ;;  %v1738_v29 = vsel %vm1737_vm9, %v1733_v26, inf }
 0x3b8   : > { %v4382_v38 = vpop.xlane.xlu0 %1721  ;;  %v2276_v60 = vsel %vm1472_vm0, %v2244_v19, inf  ;;  %v4886_v19 = vld [vmem:[#allocation53_spill] sm:$0xff] }
 0x3b9   : > { %vm1723_vm10 = vcmp.eq.f32.partialorder %v4878_v33, %v4382_v38  ;;  %v4887_v33 = vld [vmem:[#allocation52_spill] sm:$0xff] }
 0x3ba   : > { %v1815_v50 = vand.u32 65535, %v4887_v33 }
 0x3bb   : > { %2324 = vmin.xlane.f32.xlu0 %v2270_v5  ;;  %1711 = vmin.xlane.f32.xlu1 %v1710_v59  ;;  %v1724_v5 = vsel %vm1723_vm10, %v1719_v9, inf  ;;  %v4880_v59 = vld [vmem:[#allocation47_spill] sm:$0xff]  ;;  %v1775_v9 = vcvt.s32.f32 %v1773_v49  ;;  %v4893_v49 = vld [vmem:[#allocation58_spill] sm:$0xff] }
 0x3bc   : > { %v4392_v46 = vpop.xlane.xlu0 %1763 }
 0x3bd   : > { %vm1765_vm11 = vcmp.eq.f32.partialorder %v4880_v59, %v4392_v46  ;;  %v4889_v59 = vld [vmem:[#allocation54_spill] sm:$0xff] }
 0x3be   : > { %v1766_v25 = vsel %vm1765_vm11, %v1761_v10, inf  ;;  %v1801_v15 = vand.u32 65535, %v4889_v59  ;;  %v1817_v10 = vcvt.s32.f32 %v1815_v50  ;;  %v4894_v50 = vld [vmem:[#allocation60_spill] sm:$0xff] }
 0x3bf   : > { %2328 = vmin.xlane.f32.xlu0 %v2272_v47  ;;  %1697 = vmin.xlane.f32.xlu1 %v1696_v52  ;;  %v1747_v52 = vcvt.s32.f32 %v1745_v48 }
 0x3c0   : > { %v4402_v1 = vpop.xlane.xlu0 %1749 }
 0x3c1   : > { %vm1751_vm12 = vcmp.eq.f32.partialorder %v4882_v61, %v4402_v1  ;;  %v4890_v61 = vld [vmem:[#allocation57_spill] sm:$0xff] }
 0x3c2   : > { %v1752_v32 = vsel %vm1751_vm12, %v1747_v52, inf }
 0x3c3   : > { %2332 = vmin.xlane.f32.xlu0 %v2274_v13  ;;  %1739 = vmin.xlane.f32.xlu1 %v1738_v29  ;;  %v1789_v13 = vcvt.s32.f32 %v1787_v37  ;;  %v1843_v37 = vand.u32 65535, %v4891_v63 }
 0x3c4   : > { %v4410_v0 = vpop.xlane.xlu0 %1791 }
 0x3c5   : > { %vm1793_vm13 = vcmp.eq.f32.partialorder %v4884_v57, %v4410_v0 }
 0x3c6   : > { %v1794_v29 = vsel %vm1793_vm13, %v1789_v13, inf  ;;  %v1829_v13 = vand.u32 65535, %v4893_v49 }
 0x3c7   : > { %2336 = vmin.xlane.f32.xlu0 %v2276_v60  ;;  %1725 = vmin.xlane.f32.xlu1 %v1724_v5  ;;  %v4888_v5 = vld [vmem:[#allocation55_spill] sm:$0xff] }
 0x3c8   : > { %v4417_v62 = vpop.xlane.xlu0 %1777 }
 0x3c9   : > { %vm1779_vm14 = vcmp.eq.f32.partialorder %v4886_v19, %v4417_v62  ;;  %v1845_v19 = vcvt.s32.f32 %v1843_v37  ;;  %v4896_v37 = vld [vmem:[#allocation63_spill] sm:$0xff] }
 0x3ca   : > { %v1780_v60 = vsel %vm1779_vm14, %v1775_v9, inf  ;;  %v1871_v9 = vand.u32 65535, %v4894_v50 }
 0x3cb   : > { %1767 = vmin.xlane.f32.xlu1 %v1766_v25 }
 0x3cc   : > { %v4422_v47 = vpop.xlane.xlu0 %1819 }
 0x3cd   : > { %vm1821_vm15 = vcmp.eq.f32.partialorder %v4888_v5, %v4422_v47  ;;  %v1831_v5 = vcvt.s32.f32 %v1829_v13 }
 0x3ce   : > { %v1822_v25 = vsel %vm1821_vm15, %v1817_v10, inf }
 0x3cf   : > { %1753 = vmin.xlane.f32.xlu1 %v1752_v32  ;;  %v1803_v32 = vcvt.s32.f32 %v1801_v15  ;;  %v4895_v15 = vld [vmem:[#allocation61_spill] sm:$0xff] }
 0x3d0   : > { %v4427_v26 = vpop.xlane.xlu0 %1805  ;;  %v1857_v10 = vand.u32 65535, %v4895_v15 }
 0x3d1   : > { %vm1807_vm1 = vcmp.eq.f32.partialorder %v4890_v61, %v4427_v26  ;;  %v1873_v61 = vcvt.s32.f32 %v1871_v9 }
 0x3d2   : > { %v1808_v57 = vsel %vm1807_vm1, %v1803_v32, inf  ;;  %v1859_v49 = vcvt.s32.f32 %v1857_v10 }
 0x3d3   : > { %1795 = vmin.xlane.f32.xlu1 %v1794_v29 }
 0x3d4   : > { %v4432_v40 = vpop.xlane.xlu0 %1847 }
 0x3d5   : > { %vm1849_vm2 = vcmp.eq.f32.partialorder %v4892_v20, %v4432_v40 }
 0x3d6   : > { %v1850_v33 = vsel %vm1849_vm2, %v1845_v19, inf }
 0x3d7   : > { %1781 = vmin.xlane.f32.xlu1 %v1780_v60 }
 0x3d8   : > { %v4437_v48 = vpop.xlane.xlu0 %1833 }
 0x3d9   : > { %vm1835_vm3 = vcmp.eq.f32.partialorder %v4079_v18, %v4437_v48  ;;  %v4897_v18 = vld [vmem:[#allocation62_spill] sm:$0xff] }
 0x3da   : > { %v1836_v59 = vsel %vm1835_vm3, %v1831_v5, inf  ;;  %v1899_v32 = vand.u32 65535, %v4897_v18 }
 0x3db   : > { %1823 = vmin.xlane.f32.xlu1 %v1822_v25 }
 0x3dc   : > { %v4442_v52 = vpop.xlane.xlu0 %1875  ;;  %v1901_v5 = vcvt.s32.f32 %v1899_v32 }
 0x3dd   : > { %vm1877_vm4 = vcmp.eq.f32.partialorder %v4089_v58, %v4442_v52  ;;  %v4898_v58 = vld [vmem:[#allocation64_spill] sm:$0xff] }
 0x3de   : > { %v1878_v63 = vsel %vm1877_vm4, %v1873_v61, inf  ;;  %v1885_v19 = vand.u32 65535, %v4898_v58 }
 0x3df   : > { %1809 = vmin.xlane.f32.xlu1 %v1808_v57  ;;  %v2025_v57 = vand.u32 65535, %v4135_v23 }
 0x3e0   : > { %v4447_v29 = vpop.xlane.xlu0 %1861 }
 0x3e1   : > { %vm1863_vm5 = vcmp.eq.f32.partialorder %v4896_v37, %v4447_v29  ;;  %v2027_v9 = vcvt.s32.f32 %v2025_v57 }
 0x3e2   : > { %v1864_v13 = vsel %vm1863_vm5, %v1859_v49, inf  ;;  %v4900_v49 = vld [vmem:[#allocation66_spill] sm:$0xff] }
 0x3e3   : > { %1851 = vmin.xlane.f32.xlu1 %v1850_v33 }
 0x3e4   : > { %v4452_v60 = vpop.xlane.xlu0 %1903 }
 0x3e5   : > { %vm1905_vm6 = vcmp.eq.f32.partialorder %v4108_v27, %v4452_v60  ;;  %v4899_v27 = vld [vmem:[#allocation65_spill] sm:$0xff] }
 0x3e6   : > { %v1927_v15 = vand.u32 65535, %v4899_v27  ;;  %v1983_v27 = vand.u32 65535, %v4165_v56  ;;  %v2011_v56 = vand.u32 65535, %v4191_v39  ;;  %v2039_v39 = vand.u32 65535, %v4219_v16 }
 0x3e7   : > { %1837 = vmin.xlane.f32.xlu1 %v1836_v59  ;;  %v1906_v59 = vsel %vm1905_vm6, %v1901_v5, inf }
 0x3e8   : > { %v4457_v25 = vpop.xlane.xlu0 %1889 }
 0x3e9   : > { %vm1891_vm8 = vcmp.eq.f32.partialorder %v4116_v17, %v4457_v25  ;;  %v1929_v17 = vcvt.s32.f32 %v1927_v15 }
 0x3eb   : > { %1879 = vmin.xlane.f32.xlu1 %v1878_v63  ;;  %v1887_v63 = vcvt.s32.f32 %v1885_v19 }
 0x3ec   : > { %v4463_v20 = vpop.xlane.xlu0 %1931 }
 0x3ed   : > { %v1892_v37 = vsel %vm1891_vm8, %v1887_v63, inf  ;;  %vm1933_vm9 = vcmp.eq.f32.partialorder %v4127_v12, %v4463_v20 }
 0x3ee   : > { %v1934_v57 = vsel %vm1933_vm9, %v1929_v17, inf }
 0x3ef   : > { %1865 = vmin.xlane.f32.xlu1 %v1864_v13  ;;  %v1955_v13 = vand.u32 65535, %v4900_v49 }
 0x3f0   : > { %v4468_v33 = vpop.xlane.xlu1 %2029  ;;  %v4470_v50 = vpop.xlane.xlu0 %1917 }
 0x3f1   : > { %vm2031_vm7 = vcmp.eq.f32.partialorder %v4141_v14, %v4468_v33  ;;  %v1913_v14 = vand.u32 65535, %v4119_v2  ;;  %vm1919_vm10 = vcmp.eq.f32.partialorder %v4143_v24, %v4470_v50  ;;  %v1941_v2 = vand.u32 65535, %v4153_v7 }
 0x3f2   : > { %v2032_v23 = vsel %vm2031_vm7, %v2027_v9, inf  ;;  %v1957_v24 = vcvt.s32.f32 %v1955_v13  ;;  %v1969_v7 = vand.u32 65535, %v4178_v51  ;;  %v1997_v51 = vand.u32 65535, %v4206_v34 }
 0x3f3   : > { %2033 = vmin.xlane.f32.xlu0 %v2032_v23  ;;  %1907 = vmin.xlane.f32.xlu1 %v1906_v59  ;;  %v1915_v12 = vcvt.s32.f32 %v1913_v14 }
 0x3f4   : > { %v4477_v10 = vpop.xlane.xlu1 %2282  ;;  %v4479_v61 = vpop.xlane.xlu0 %1959 }
 0x3f5   : > { %v1920_v9 = vsel %vm1919_vm10, %v1915_v12, inf  ;;  %vm1961_vm11 = vcmp.eq.f32.partialorder %v4160_v35, %v4479_v61  ;;  %v1943_v35 = vcvt.s32.f32 %v1941_v2  ;;  %v2013_v2 = vcvt.s32.f32 %v2011_v56 }
 0x3f6   : > { %v1962_v59 = vsel %vm1961_vm11, %v1957_v24, inf }
 0x3f7   : > { %1893 = vmin.xlane.f32.xlu1 %v1892_v37 }
 0x3f8   : > { %v4484_v18 = vpop.xlane.xlu1 %2286  ;;  %v4486_v32 = vpop.xlane.xlu0 %1945 }
 0x3f9   : > { %vm1947_vm12 = vcmp.eq.f32.partialorder %v4173_v53, %v4486_v32  ;;  %v1985_v53 = vcvt.s32.f32 %v1983_v27  ;;  %v1999_v27 = vcvt.s32.f32 %v1997_v51 }
 0x3fa   : > { %v1948_v37 = vsel %vm1947_vm12, %v1943_v35, inf }
 0x3fb   : > { %1935 = vmin.xlane.f32.xlu1 %v1934_v57 }
 0x3fc   : > { %v4491_v58 = vpop.xlane.xlu1 %2290  ;;  %v4493_v19 = vpop.xlane.xlu0 %1987 }
 0x3fd   : > { %vm1989_vm13 = vcmp.eq.f32.partialorder %v4186_v45, %v4493_v19  ;;  %v1971_v45 = vcvt.s32.f32 %v1969_v7  ;;  %v2041_v7 = vcvt.s32.f32 %v2039_v39  ;;  %v2053_v39 = vand.u32 65535, %v4314_v22 }
 0x3fe   : > { %v1990_v57 = vsel %vm1989_vm13, %v1985_v53, inf  ;;  %v4901_v53 = vld [vmem:[#allocation11_spill] sm:$0xff] }
 0x3ff   : > { %1921 = vmin.xlane.f32.xlu1 %v1920_v9 }
 0x400   : > { %v4498_v5 = vpop.xlane.xlu1 %2294  ;;  %v4500_v23 = vpop.xlane.xlu0 %1973 }
 0x401   : > { %vm1975_vm14 = vcmp.eq.f32.partialorder %v4201_v28, %v4500_v23 }
 0x402   : > { %v1976_v12 = vsel %vm1975_vm14, %v1971_v45, inf }
 0x403   : > { %1963 = vmin.xlane.f32.xlu1 %v1962_v59 }
 0x404   : > { %v4505_v15 = vpop.xlane.xlu1 %2298  ;;  %v4507_v63 = vpop.xlane.xlu0 %2015 }
 0x405   : > { %vm2017_vm15 = vcmp.eq.f32.partialorder %v4214_v8, %v4507_v63  ;;  %v2067_v8 = vand.u32 65535, %v4232_v30 }
 0x406   : > { %v2018_v28 = vsel %vm2017_vm15, %v2013_v2, inf }
 0x407   : > { %1949 = vmin.xlane.f32.xlu1 %v1948_v37  ;;  %v2069_v16 = vcvt.s32.f32 %v2067_v8 }
 0x408   : > { %v4512_v14 = vpop.xlane.xlu1 %2302  ;;  %v4514_v17 = vpop.xlane.xlu0 %2001 }
 0x409   : > { %vm2003_vm1 = vcmp.eq.f32.partialorder %v4227_v41, %v4514_v17 }
 0x40a   : > { %v2004_v35 = vsel %vm2003_vm1, %v1999_v27, inf }
 0x40b   : > { %1991 = vmin.xlane.f32.xlu1 %v1990_v57 }
 0x40c   : > { %v4519_v49 = vpop.xlane.xlu1 %2306  ;;  %v4521_v13 = vpop.xlane.xlu0 %2043 }
 0x40d   : > { %vm2045_vm2 = vcmp.eq.f32.partialorder %v4239_v54, %v4521_v13 }
 0x40e   : > { %v2046_v41 = vsel %vm2045_vm2, %v2041_v7, inf }
 0x40f   : > { %1977 = vmin.xlane.f32.xlu1 %v1976_v12 }
 0x410   : > { %v4526_v9 = vpop.xlane.xlu1 %2310  ;;  %v4528_v24 = vpop.xlane.xlu0 %2071 }
 0x411   : > { %vm2073_vm3 = vcmp.eq.f32.partialorder %v4247_v21, %v4528_v24 }
 0x412   : > { %v2074_v54 = vsel %vm2073_vm3, %v2069_v16, inf }
 0x413   : > { %2019 = vmin.xlane.f32.xlu1 %v2018_v28 }
 0x414   : > { %v4533_v59 = vpop.xlane.xlu1 %2314  ;;  %v2176_v34 = vpop.xlane.xlu0 %2175 }
 0x415   : > { %v2208_v57 = vsub.f32 %v2176_v34, %v4901_v53  ;;  %v4904_v34 = vld [vmem:[#allocation28_spill] sm:$0xff] }
 0x417   : > { %2005 = vmin.xlane.f32.xlu1 %v2004_v35  ;;  %v2247_v45 = vadd.f32 %v4148_v43, %v2208_v57  ;;  %v4903_v35 = vld [vmem:[#allocation10_spill] sm:$0xff]  ;;  %v2055_v57 = vcvt.s32.f32 %v2053_v39 }
 0x418   : > { %v4538_v37 = vpop.xlane.xlu1 %2318  ;;  %v2281_v51 = vpop.xlane.xlu0 %2280  ;;  %v2207_v8 = vsub.f32 %v4904_v34, %v4903_v35 }
 0x419   : > { %v2279_v30 = vsel %vm1472_vm0, %v2247_v45, inf }
 0x41a   : > { %v2246_v45 = vadd.f32 %v4148_v43, %v2207_v8  ;;  %v1686_v43 = vcvt.f32.s32 %v4329_v11 }
 0x41b   : > { %2047 = vmin.xlane.f32.xlu1 %v2046_v41  ;;  %v1658_v41 = vcvt.f32.s32 %v4305_v44  ;;  %v2377_v44 = vsub.f32 0.0, %v4477_v10 }
 0x41c   : > { %v4543_v56 = vpop.xlane.xlu1 %2322  ;;  %v2285_v21 = vpop.xlane.xlu0 %2284  ;;  %v2278_v39 = vsel %vm1472_vm0, %v2246_v45, inf  ;;  %v1687_v45 = vshll.u32 %v1686_v43, 16 }
 0x41d   : > { %v2378_v43 = vsub.f32 0.0, %v2285_v21  ;;  %v1742_v21 = vcvt.f32.s32 %v4372_v4 }
 0x41f   : > { %2075 = vmin.xlane.f32.xlu1 %v2074_v54  ;;  %v1659_v54 = vshll.u32 %v1658_v41, 16 }
 0x420   : > { %v4546_v12 = vpop.xlane.xlu1 %2330  ;;  %v4559_v7 = vpop.xlane.xlu0 %2288 }
 0x423   : > { %2342 = vmin.xlane.f32.xlu1 %v2279_v30  ;;  %v1644_v30 = vcvt.f32.s32 %v4318_v6 }
 0x424   : > { %v4550_v2 = vpop.xlane.xlu1 %2334  ;;  %v4568_v34 = vpop.xlane.xlu0 %2292 }
 0x428   : > { %v4552_v28 = vpop.xlane.xlu1 %2338 }
 0x429   : > { %4902 = vst [vmem:[#allocation24_spill] sm:$0xff] %v4552_v28 }
 0x42c   : > { %v4555_v27 = vpop.xlane.xlu1 %2326 }
 0x430   : > { %v4561_v53 = vpop.xlane.xlu1 %2057 }
 0x431   : > { %4905 = vst [vmem:[#allocation6_spill] sm:$0xff] %v4561_v53  ;;  %vm2059_vm4 = vcmp.eq.f32.partialorder %v4331_v31, %v4561_v53 }
 0x432   : > { %v2060_v16 = vsel %vm2059_vm4, %v2055_v57, inf  ;;  %v1645_v57 = vshll.u32 %v1644_v30, 16 }
 0x433   : > { %2061 = vmin.xlane.f32.xlu0 %v2060_v16  ;;  %v2376_v16 = vsub.f32 0.0, %v2281_v51  ;;  %v1714_v51 = vcvt.f32.s32 %v4352_v55 }
 0x434   : > { %v1656_v22 = vpop.xlane.xlu1 %1655 }
 0x435   : > { %v1657_v35 = vcvt.f32.s32 %v1656_v22  ;;  %v4576_v22 = vpop.xlane.xlu0 %2296 }
 0x437   : > { %v1660_v28 = vadd.s32 %v1659_v54, %v1657_v35  ;;  %2340 = vmin.xlane.f32.xlu0 %v2278_v39  ;;  %v1672_v54 = vcvt.f32.s32 %v4342_v36 }
 0x438   : > { %v1642_v31 = vpop.xlane.xlu1 %1641 }
 0x439   : > { %vm2345_vm5 = vcmp.eq.s32.totalorder %v3680_v3, %v1660_v28  ;;  %v1643_v8 = vcvt.f32.s32 %v1642_v31  ;;  %v2379_v28 = vsub.f32 0.0, %v4484_v18  ;;  %v1673_v39 = vshll.u32 %v1672_v54, 16  ;;  %v4584_v31 = vpop.xlane.xlu0 %2300 }
 0x43a   : > { %v2409_v41 = vsel %vm2345_vm5, %v2377_v44, -inf }
 0x43b   : > { %2441 = vst [vmem:[%s3249_s8 + $0x8] sm:$0xff] %v2409_v41  ;;  %v1646_v6 = vadd.s32 %v1645_v57, %v1643_v8  ;;  %v1715_v8 = vshll.u32 %v1714_v51, 16  ;;  %v1700_v41 = vcvt.f32.s32 %v4362_v42 }
 0x43c   : > { %v1684_v53 = vpop.xlane.xlu1 %1683 }
 0x43d   : > { %vm2344_vm0 = vcmp.eq.s32.totalorder %v3680_v3, %v1646_v6  ;;  %v1685_v10 = vcvt.f32.s32 %v1684_v53 }
 0x43e   : > { %v2408_v30 = vsel %vm2344_vm0, %v2376_v16, -inf  ;;  %v2381_v16 = vsub.f32 0.0, %v4491_v58  ;;  %v1728_v58 = vcvt.f32.s32 %v4382_v38 }
 0x43f   : > { %2440 = vst [vmem:[%s3249_s8] sm:$0xff] %v2408_v30  ;;  %v1688_v11 = vadd.s32 %v1687_v45, %v1685_v10  ;;  %v4591_v45 = vpop.xlane.xlu0 %2304  ;;  %v1701_v10 = vshll.u32 %v1700_v41, 16 }
 0x440   : > { %v1670_v35 = vpop.xlane.xlu1 %1669 }
 0x441   : > { %vm2347_vm6 = vcmp.eq.s32.totalorder %v3680_v3, %v1688_v11  ;;  %v1671_v44 = vcvt.f32.s32 %v1670_v35 }
 0x442   : > { %v2411_v57 = vsel %vm2347_vm6, %v2379_v28, -inf  ;;  %v2380_v28 = vsub.f32 0.0, %v4559_v7  ;;  %v1770_v7 = vcvt.f32.s32 %v4392_v46 }
 0x443   : > { %2443 = vst [vmem:[%s3249_s8 + $0x18] sm:$0xff] %v2411_v57  ;;  %v1674_v36 = vadd.s32 %v1673_v39, %v1671_v44  ;;  %v1743_v39 = vshll.u32 %v1742_v21, 16  ;;  %v4599_v44 = vpop.xlane.xlu0 %2308  ;;  %v2385_v21 = vsub.f32 0.0, %v4505_v15  ;;  %v1784_v15 = vcvt.f32.s32 %v4417_v62 }
 0x444   : > { %v1712_v53 = vpop.xlane.xlu1 %1711 }
 0x445   : > { %vm2346_vm7 = vcmp.eq.s32.totalorder %v3680_v3, %v1674_v36  ;;  %v1713_v18 = vcvt.f32.s32 %v1712_v53  ;;  %v2383_v36 = vsub.f32 0.0, %v4498_v5  ;;  %v1729_v53 = vshll.u32 %v1728_v58, 16 }
 0x446   : > { %v2410_v6 = vsel %vm2346_vm7, %v2378_v43, -inf  ;;  %v1756_v5 = vcvt.f32.s32 %v4402_v1 }
 0x447   : > { %2442 = vst [vmem:[%s3249_s8 + $0x10] sm:$0xff] %v2410_v6  ;;  %v1716_v55 = vadd.s32 %v1715_v8, %v1713_v18  ;;  %v2382_v18 = vsub.f32 0.0, %v4568_v34  ;;  %v4607_v6 = vpop.xlane.xlu0 %2312  ;;  %v1798_v34 = vcvt.f32.s32 %v4410_v0 }
 0x448   : > { %v1698_v54 = vpop.xlane.xlu1 %1697 }
 0x449   : > { %vm2349_vm8 = vcmp.eq.s32.totalorder %v3680_v3, %v1716_v55  ;;  %v1699_v30 = vcvt.f32.s32 %v1698_v54 }
 0x44a   : > { %v2413_v11 = vsel %vm2349_vm8, %v2381_v16, -inf  ;;  %v1771_v16 = vshll.u32 %v1770_v7, 16  ;;  %v1785_v7 = vshll.u32 %v1784_v15, 16 }
 0x44b   : > { %2445 = vst [vmem:[%s3249_s8 + $0x28] sm:$0xff] %v2413_v11  ;;  %v1702_v42 = vadd.s32 %v1701_v10, %v1699_v30  ;;  %v1757_v11 = vshll.u32 %v1756_v5, 16 }
 0x44c   : > { %v1740_v35 = vpop.xlane.xlu1 %1739 }
 0x44d   : > { %vm2348_vm9 = vcmp.eq.s32.totalorder %v3680_v3, %v1702_v42  ;;  %v1741_v51 = vcvt.f32.s32 %v1740_v35 }
 0x44e   : > { %v2412_v57 = vsel %vm2348_vm9, %v2380_v28, -inf  ;;  %v4615_v28 = vpop.xlane.xlu0 %2316 }
 0x44f   : > { %2444 = vst [vmem:[%s3249_s8 + $0x20] sm:$0xff] %v2412_v57  ;;  %v1744_v4 = vadd.s32 %v1743_v39, %v1741_v51  ;;  %v2384_v39 = vsub.f32 0.0, %v4576_v22  ;;  %v1799_v51 = vshll.u32 %v1798_v34, 16  ;;  %v1826_v22 = vcvt.f32.s32 %v4422_v47 }
 0x450   : > { %v1726_v43 = vpop.xlane.xlu1 %1725  ;;  %v2388_v34 = vsub.f32 0.0, %v4591_v45  ;;  %v1882_v45 = vcvt.f32.s32 %v4442_v52 }
 0x451   : > { %vm2351_vm10 = vcmp.eq.s32.totalorder %v3680_v3, %v1744_v4  ;;  %v1727_v8 = vcvt.f32.s32 %v1726_v43 }
 0x452   : > { %v2415_v41 = vsel %vm2351_vm10, %v2383_v36, -inf  ;;  %v2387_v36 = vsub.f32 0.0, %v4512_v14  ;;  %v4623_v43 = vpop.xlane.xlu0 %2320  ;;  %v1812_v14 = vcvt.f32.s32 %v4427_v26 }
 0x453   : > { %2447 = vst [vmem:[%s3249_s8 + $0x38] sm:$0xff] %v2415_v41  ;;  %v1730_v38 = vadd.s32 %v1729_v53, %v1727_v8 }
 0x454   : > { %v1768_v55 = vpop.xlane.xlu1 %1767 }
 0x455   : > { %vm2350_vm11 = vcmp.eq.s32.totalorder %v3680_v3, %v1730_v38  ;;  %v1769_v54 = vcvt.f32.s32 %v1768_v55  ;;  %v2386_v38 = vsub.f32 0.0, %v4584_v31  ;;  %v1827_v55 = vshll.u32 %v1826_v22, 16 }
 0x456   : > { %v2414_v10 = vsel %vm2350_vm11, %v2382_v18, -inf  ;;  %v4631_v5 = vpop.xlane.xlu0 %2324  ;;  %v1854_v31 = vcvt.f32.s32 %v4432_v40  ;;  %v1883_v22 = vshll.u32 %v1882_v45, 16 }
 0x457   : > { %2446 = vst [vmem:[%s3249_s8 + $0x30] sm:$0xff] %v2414_v10  ;;  %v1772_v46 = vadd.s32 %v1771_v16, %v1769_v54  ;;  %v2389_v10 = vsub.f32 0.0, %v4519_v49  ;;  %v1840_v49 = vcvt.f32.s32 %v4437_v48 }
 0x458   : > { %v1754_v30 = vpop.xlane.xlu1 %1753 }
 0x459   : > { %vm2353_vm12 = vcmp.eq.s32.totalorder %v3680_v3, %v1772_v46  ;;  %v1755_v42 = vcvt.f32.s32 %v1754_v30 }
 0x45a   : > { %v2417_v35 = vsel %vm2353_vm12, %v2385_v21, -inf  ;;  %v1813_v21 = vshll.u32 %v1812_v14, 16 }
 0x45b   : > { %2449 = vst [vmem:[%s3249_s8 + $0x48] sm:$0xff] %v2417_v35  ;;  %v1758_v1 = vadd.s32 %v1757_v11, %v1755_v42  ;;  %v4639_v42 = vpop.xlane.xlu0 %2328 }
 0x45c   : > { %v1796_v58 = vpop.xlane.xlu1 %1795 }
 0x45d   : > { %vm2352_vm13 = vcmp.eq.s32.totalorder %v3680_v3, %v1758_v1  ;;  %v1797_v57 = vcvt.f32.s32 %v1796_v58  ;;  %v1855_v1 = vshll.u32 %v1854_v31, 16 }
 0x45e   : > { %v2416_v4 = vsel %vm2352_vm13, %v2384_v39, -inf }
 0x45f   : > { %2448 = vst [vmem:[%s3249_s8 + $0x40] sm:$0xff] %v2416_v4  ;;  %v1800_v0 = vadd.s32 %v1799_v51, %v1797_v57  ;;  %v2391_v51 = vsub.f32 0.0, %v4526_v9  ;;  %v1841_v57 = vshll.u32 %v1840_v49, 16  ;;  %v1868_v9 = vcvt.f32.s32 %v4447_v29 }
 0x460   : > { %v1782_v53 = vpop.xlane.xlu1 %1781 }
 0x461   : > { %vm2355_vm14 = vcmp.eq.s32.totalorder %v3680_v3, %v1800_v0  ;;  %v1783_v8 = vcvt.f32.s32 %v1782_v53  ;;  %v4647_v0 = vpop.xlane.xlu0 %2332  ;;  %v2390_v53 = vsub.f32 0.0, %v4599_v44  ;;  %v1869_v14 = vshll.u32 %v1868_v9, 16 }
 0x462   : > { %v2419_v41 = vsel %vm2355_vm14, %v2387_v36, -inf  ;;  %v2036_v44 = vcvt.f32.s32 %v4468_v33 }
 0x463   : > { %2451 = vst [vmem:[%s3249_s8 + $0x58] sm:$0xff] %v2419_v41  ;;  %v1786_v62 = vadd.s32 %v1785_v7, %v1783_v8 }
 0x464   : > { %v1824_v18 = vpop.xlane.xlu1 %1823 }
 0x465   : > { %vm2354_vm15 = vcmp.eq.s32.totalorder %v3680_v3, %v1786_v62  ;;  %v1825_v16 = vcvt.f32.s32 %v1824_v18  ;;  %v1910_v62 = vcvt.f32.s32 %v4452_v60  ;;  %v2337_v18 = vpop.xlane.xlu0 %2336 }
 0x466   : > { %v2418_v54 = vsel %vm2354_vm15, %v2386_v38, -inf  ;;  %v2393_v38 = vsub.f32 0.0, %v4533_v59  ;;  %v2037_v59 = vshll.u32 %v2036_v44, 16 }
 0x467   : > { %2450 = vst [vmem:[%s3249_s8 + $0x50] sm:$0xff] %v2418_v54  ;;  %v1828_v47 = vadd.s32 %v1827_v55, %v1825_v16 }
 0x468   : > { %v1810_v46 = vpop.xlane.xlu1 %1809 }
 0x469   : > { %vm2357_vm1 = vcmp.eq.s32.totalorder %v3680_v3, %v1828_v47  ;;  %v1811_v30 = vcvt.f32.s32 %v1810_v46  ;;  %v1911_v47 = vshll.u32 %v1910_v62, 16  ;;  %v2392_v46 = vsub.f32 0.0, %v4607_v6 }
 0x46a   : > { %v2421_v11 = vsel %vm2357_vm1, %v2389_v10, -inf  ;;  %v1896_v10 = vcvt.f32.s32 %v4457_v25  ;;  %v1938_v6 = vcvt.f32.s32 %v4463_v20 }
 0x46b   : > { %2453 = vst [vmem:[%s3249_s8 + $0x68] sm:$0xff] %v2421_v11  ;;  %v1814_v26 = vadd.s32 %v1813_v21, %v1811_v30 }
 0x46c   : > { %v1852_v35 = vpop.xlane.xlu1 %1851 }
 0x46d   : > { %vm2356_vm2 = vcmp.eq.s32.totalorder %v3680_v3, %v1814_v26  ;;  %v1853_v39 = vcvt.f32.s32 %v1852_v35  ;;  %v2395_v35 = vsub.f32 0.0, %v4538_v37  ;;  %v1939_v37 = vshll.u32 %v1938_v6, 16 }
 0x46e   : > { %v2420_v58 = vsel %vm2356_vm2, %v2388_v34, -inf  ;;  %v1897_v34 = vshll.u32 %v1896_v10, 16  ;;  %v2050_v6 = vcvt.f32.s32 %v4521_v13 }
 0x46f   : > { %2452 = vst [vmem:[%s3249_s8 + $0x60] sm:$0xff] %v2420_v58  ;;  %v1856_v40 = vadd.s32 %v1855_v1, %v1853_v39  ;;  %v2404_v1 = vsub.f32 0.0, %v2337_v18 }
 0x470   : > { %v1838_v15 = vpop.xlane.xlu1 %1837 }
 0x471   : > { %vm2359_vm3 = vcmp.eq.s32.totalorder %v3680_v3, %v1856_v40  ;;  %v1839_v4 = vcvt.f32.s32 %v1838_v15 }
 0x472   : > { %v2423_v36 = vsel %vm2359_vm3, %v2391_v51, -inf  ;;  %v2394_v51 = vsub.f32 0.0, %v4615_v28 }
 0x473   : > { %2455 = vst [vmem:[%s3249_s8 + $0x78] sm:$0xff] %v2423_v36  ;;  %v1842_v48 = vadd.s32 %v1841_v57, %v1839_v4  ;;  %v1924_v57 = vcvt.f32.s32 %v4470_v50  ;;  %v2397_v36 = vsub.f32 0.0, %v4543_v56  ;;  %v2396_v50 = vsub.f32 0.0, %v4623_v43 }
 0x474   : > { %v1880_v7 = vpop.xlane.xlu1 %1879 }
 0x475   : > { %vm2358_vm4 = vcmp.eq.s32.totalorder %v3680_v3, %v1842_v48  ;;  %v1881_v8 = vcvt.f32.s32 %v1880_v7  ;;  %v1966_v7 = vcvt.f32.s32 %v4479_v61  ;;  %v2399_v61 = vsub.f32 0.0, %v4555_v27 }
 0x476   : > { %v2422_v41 = vsel %vm2358_vm4, %v2390_v53, -inf  ;;  %v1925_v53 = vshll.u32 %v1924_v57, 16 }
 0x477   : > { %2454 = vst [vmem:[%s3249_s8 + $0x70] sm:$0xff] %v2422_v41  ;;  %v1884_v52 = vadd.s32 %v1883_v22, %v1881_v8  ;;  %v1967_v41 = vshll.u32 %v1966_v7, 16  ;;  %v4907_v7 = vld [vmem:[#allocation6_spill] sm:$0xff] }
 0x478   : > { %v1866_v55 = vpop.xlane.xlu1 %1865 }
 0x479   : > { %vm2361_vm5 = vcmp.eq.s32.totalorder %v3680_v3, %v1884_v52  ;;  %v1867_v16 = vcvt.f32.s32 %v1866_v55  ;;  %v1952_v52 = vcvt.f32.s32 %v4486_v32  ;;  %v2398_v32 = vsub.f32 0.0, %v4631_v5 }
 0x47a   : > { %v2425_v29 = vsel %vm2361_vm5, %v2393_v38, -inf }
 0x47b   : > { %2457 = vst [vmem:[%s3249_s8 + $0x88] sm:$0xff] %v2425_v29  ;;  %v1870_v54 = vadd.s32 %v1869_v14, %v1867_v16  ;;  %v1953_v55 = vshll.u32 %v1952_v52, 16  ;;  %v1994_v14 = vcvt.f32.s32 %v4493_v19  ;;  %v2401_v19 = vsub.f32 0.0, %v4546_v12 }
 0x47c   : > { %v2034_v60 = vpop.xlane.xlu0 %2033  ;;  %v1908_v21 = vpop.xlane.xlu1 %1907 }
 0x47d   : > { %vm2360_vm0 = vcmp.eq.s32.totalorder %v3680_v3, %v1870_v54  ;;  %v2035_v31 = vcvt.f32.s32 %v2034_v60  ;;  %v1909_v33 = vcvt.f32.s32 %v1908_v21  ;;  %v1995_v54 = vshll.u32 %v1994_v14, 16 }
 0x47e   : > { %v2424_v30 = vsel %vm2360_vm0, %v2392_v46, -inf }
 0x47f   : > { %2456 = vst [vmem:[%s3249_s8 + $0x80] sm:$0xff] %v2424_v30  ;;  %v2038_v11 = vadd.s32 %v2037_v59, %v2035_v31  ;;  %v1912_v26 = vadd.s32 %v1911_v47, %v1909_v33  ;;  %v1980_v47 = vcvt.f32.s32 %v4500_v23  ;;  %v2022_v59 = vcvt.f32.s32 %v4507_v63 }
 0x480   : > { %v1894_v25 = vpop.xlane.xlu1 %1893  ;;  %v2400_v23 = vsub.f32 0.0, %v4639_v42  ;;  %v2403_v63 = vsub.f32 0.0, %v4550_v2 }
 0x481   : > { %vm2372_vm6 = vcmp.eq.s32.totalorder %v3680_v3, %v2038_v11  ;;  %vm2363_vm7 = vcmp.eq.s32.totalorder %v3680_v3, %v1912_v26  ;;  %v1895_v49 = vcvt.f32.s32 %v1894_v25  ;;  %v1981_v21 = vshll.u32 %v1980_v47, 16 }
 0x482   : > { %v2436_v39 = vsel %vm2372_vm6, %v2404_v1, -inf  ;;  %v2427_v58 = vsel %vm2363_vm7, %v2395_v35, -inf  ;;  %v2023_v11 = vshll.u32 %v2022_v59, 16  ;;  %v2008_v26 = vcvt.f32.s32 %v4514_v17 }
 0x483   : > { %2468 = vst [vmem:[%s3249_s8 + $0xe0] sm:$0xff] %v2436_v39  ;;  %2459 = vst [vmem:[%s3249_s8 + $0x98] sm:$0xff] %v2427_v58  ;;  %v1898_v40 = vadd.s32 %v1897_v34, %v1895_v49  ;;  %v2402_v17 = vsub.f32 0.0, %v4647_v0 }
 0x484   : > { %v1936_v15 = vpop.xlane.xlu1 %1935  ;;  %v2009_v25 = vshll.u32 %v2008_v26, 16 }
 0x485   : > { %vm2362_vm8 = vcmp.eq.s32.totalorder %v3680_v3, %v1898_v40  ;;  %v1937_v20 = vcvt.f32.s32 %v1936_v15  ;;  %v2051_v40 = vshll.u32 %v2050_v6, 16 }
 0x486   : > { %v2426_v45 = vsel %vm2362_vm8, %v2394_v51, -inf  ;;  %v2078_v51 = vcvt.f32.s32 %v4528_v24 }
 0x487   : > { %2458 = vst [vmem:[%s3249_s8 + $0x90] sm:$0xff] %v2426_v45  ;;  %v1940_v4 = vadd.s32 %v1939_v37, %v1937_v20  ;;  %v4906_v37 = vld [vmem:[#allocation24_spill] sm:$0xff] }
 0x488   : > { %v1922_v48 = vpop.xlane.xlu1 %1921  ;;  %v2405_v57 = vsub.f32 0.0, %v4906_v37  ;;  %v2079_v45 = vshll.u32 %v2078_v51, 16 }
 0x489   : > { %vm2365_vm9 = vcmp.eq.s32.totalorder %v3680_v3, %v1940_v4  ;;  %v1923_v28 = vcvt.f32.s32 %v1922_v48 }
 0x48a   : > { %v2429_v22 = vsel %vm2365_vm9, %v2397_v36, -inf }
 0x48b   : > { %2461 = vst [vmem:[%s3249_s8 + $0xa8] sm:$0xff] %v2429_v22  ;;  %v1926_v9 = vadd.s32 %v1925_v53, %v1923_v28  ;;  %v2064_v28 = vcvt.f32.s32 %v4907_v7 }
 0x48c   : > { %v1964_v8 = vpop.xlane.xlu1 %1963 }
 0x48d   : > { %vm2364_vm10 = vcmp.eq.s32.totalorder %v3680_v3, %v1926_v9  ;;  %v1965_v56 = vcvt.f32.s32 %v1964_v8  ;;  %v2065_v9 = vshll.u32 %v2064_v28, 16 }
 0x48e   : > { %v2428_v62 = vsel %vm2364_vm10, %v2396_v50, -inf }
 0x48f   : > { %2460 = vst [vmem:[%s3249_s8 + $0xa0] sm:$0xff] %v2428_v62  ;;  %v1968_v38 = vadd.s32 %v1967_v41, %v1965_v56 }
 0x490   : > { %v1950_v18 = vpop.xlane.xlu1 %1949 }
 0x491   : > { %vm2367_vm11 = vcmp.eq.s32.totalorder %v3680_v3, %v1968_v38  ;;  %v1951_v43 = vcvt.f32.s32 %v1950_v18 }
 0x492   : > { %v2431_v44 = vsel %vm2367_vm11, %v2399_v61, -inf }
 0x493   : > { %2463 = vst [vmem:[%s3249_s8 + $0xb8] sm:$0xff] %v2431_v44  ;;  %v1954_v16 = vadd.s32 %v1953_v55, %v1951_v43 }
 0x494   : > { %v1992_v29 = vpop.xlane.xlu1 %1991 }
 0x495   : > { %vm2366_vm12 = vcmp.eq.s32.totalorder %v3680_v3, %v1954_v16  ;;  %v1993_v27 = vcvt.f32.s32 %v1992_v29 }
 0x496   : > { %v2430_v10 = vsel %vm2366_vm12, %v2398_v32, -inf }
 0x497   : > { %2462 = vst [vmem:[%s3249_s8 + $0xb0] sm:$0xff] %v2430_v10  ;;  %v1996_v46 = vadd.s32 %v1995_v54, %v1993_v27 }
 0x498   : > { %v1978_v60 = vpop.xlane.xlu1 %1977 }
 0x499   : > { %vm2369_vm13 = vcmp.eq.s32.totalorder %v3680_v3, %v1996_v46  ;;  %v1979_v5 = vcvt.f32.s32 %v1978_v60 }
 0x49a   : > { %v2433_v31 = vsel %vm2369_vm13, %v2401_v19, -inf }
 0x49b   : > { %2465 = vst [vmem:[%s3249_s8 + $0xc8] sm:$0xff] %v2433_v31  ;;  %v1982_v33 = vadd.s32 %v1981_v21, %v1979_v5 }
 0x49c   : > { %v2020_v30 = vpop.xlane.xlu1 %2019 }
 0x49d   : > { %vm2368_vm14 = vcmp.eq.s32.totalorder %v3680_v3, %v1982_v33  ;;  %v2021_v12 = vcvt.f32.s32 %v2020_v30 }
 0x49e   : > { %v2432_v34 = vsel %vm2368_vm14, %v2400_v23, -inf }
 0x49f   : > { %2464 = vst [vmem:[%s3249_s8 + $0xc0] sm:$0xff] %v2432_v34  ;;  %v2024_v35 = vadd.s32 %v2023_v11, %v2021_v12 }
 0x4a0   : > { %v2006_v1 = vpop.xlane.xlu1 %2005 }
 0x4a1   : > { %vm2371_vm15 = vcmp.eq.s32.totalorder %v3680_v3, %v2024_v35  ;;  %v2007_v42 = vcvt.f32.s32 %v2006_v1 }
 0x4a2   : > { %v2435_v49 = vsel %vm2371_vm15, %v2403_v63, -inf }
 0x4a3   : > { %2467 = vst [vmem:[%s3249_s8 + $0xd8] sm:$0xff] %v2435_v49  ;;  %v2010_v39 = vadd.s32 %v2009_v25, %v2007_v42 }
 0x4a4   : > { %v2048_v58 = vpop.xlane.xlu1 %2047 }
 0x4a5   : > { %vm2370_vm1 = vcmp.eq.s32.totalorder %v3680_v3, %v2010_v39  ;;  %v2049_v2 = vcvt.f32.s32 %v2048_v58 }
 0x4a6   : > { %v2434_v15 = vsel %vm2370_vm1, %v2402_v17, -inf }
 0x4a7   : > { %2466 = vst [vmem:[%s3249_s8 + $0xd0] sm:$0xff] %v2434_v15  ;;  %v2052_v13 = vadd.s32 %v2051_v40, %v2049_v2 }
 0x4a8   : > { %v2076_v20 = vpop.xlane.xlu1 %2075 }
 0x4a9   : > { %vm2373_vm2 = vcmp.eq.s32.totalorder %v3680_v3, %v2052_v13  ;;  %v2077_v4 = vcvt.f32.s32 %v2076_v20 }
 0x4aa   : > { %v2437_v36 = vsel %vm2373_vm2, %v2405_v57, -inf }
 0x4ab   : > { %2469 = vst [vmem:[%s3249_s8 + $0xe8] sm:$0xff] %v2437_v36  ;;  %v2080_v0 = vadd.s32 %v2079_v45, %v2077_v4 }
 0x4ac   : > { %v2343_v48 = vpop.xlane.xlu1 %2342 }
 0x4ad   : > { %vm2375_vm3 = vcmp.eq.s32.totalorder %v3680_v3, %v2080_v0  ;;  %v2407_v24 = vsub.f32 0.0, %v2343_v48 }
 0x4af   : > { %v2439_v53 = vsel %vm2375_vm3, %v2407_v24, -inf }
 0x4b0   : > { %2471 = vst [vmem:[%s3249_s8 + $0xf8] sm:$0xff] %v2439_v53 }
 0x4bc   : > { %v2062_v22 = vpop.xlane.xlu0 %2061 }
 0x4bd   : > { %v2063_v50 = vcvt.f32.s32 %v2062_v22 }
 0x4bf   : > { %v2066_v8 = vadd.s32 %v2065_v9, %v2063_v50 }
 0x4c0   : > { %v2341_v41 = vpop.xlane.xlu0 %2340 }
 0x4c1   : > { %vm2374_vm4 = vcmp.eq.s32.totalorder %v3680_v3, %v2066_v8  ;;  %v2406_v52 = vsub.f32 0.0, %v2341_v41 }
 0x4c3   : > { %v2438_v56 = vsel %vm2374_vm4, %v2406_v52, -inf }
 0x4c4   : > { %2470 = vst [vmem:[%s3249_s8 + $0xf0] sm:$0xff] %v2438_v56 }
 0x4c5 PF: > { %s14_s21 = sadd.s32 1, %s3015_s21   ;;  %s4908_s15 = smov %s2995_s16 }
 0x4c6   : > { %p11_p0 = scmp.ge.s32.totalorder %s14_s21, 10   ;;  %s4909_s16 = smov %s3095_s28 }
 0x4c7   : > { %s4910_s17 = smov %s3007_s19  ;;  %s4911_s18 = smov %s3011_s20 }
 0x4c8   : > { %s4912_s19 = smov %s4915_s22  ;;  %s4913_s20 = smov %s4919_s23 }
 0x4c9   :  { %13 = sbr.rel (!%p11_p0) target bundleno = 4 (0x4), region = 105 }

</bundles_post_ra>
